<compile_context>
chip_gen: v7x
topology: tpu7x:2x2x1
jax: 0.10.0
libtpu: 0.0.40
codegen_flags: <defaults>
</compile_context>

<pallas_src>
import functools

import jax
import jax.numpy as jnp
from jax.experimental import pallas as pl
from jax.experimental.pallas import tpu as pltpu


def _round_up(x, m):
    return (x + m - 1) // m * m


# ----------------------------- Pallas kernels ------------------------------ #
def _matmul_bias_act_kernel(a_ref, b_ref, bias_ref, o_ref, *, apply_relu):
    # bf16 x bf16 -> f32 accumulation on the MXU.
    acc = jnp.dot(a_ref[...], b_ref[...], preferred_element_type=jnp.float32)
    acc = acc + bias_ref[...]                    # (1, N) f32 bias broadcasts over rows
    if apply_relu:
        acc = jnp.maximum(acc, 0.0)
    o_ref[...] = acc.astype(o_ref.dtype)


def pallas_linear(a, w, b, *, relu, out_dtype, tm=256):
    """a: (M, K) bf16, w: (K, N) bf16, b: (1, N) f32  ->  (M, N) out_dtype.

    Grid over M only; K and N blocks span the full (unpadded) arrays, which is
    valid since block dim == array dim.  Edge blocks along M are masked by
    Pallas, and garbage overhang rows never contaminate valid rows (matmul is
    row-independent in M).
    """
    M, K = a.shape
    N = w.shape[1]
    tm = min(tm, _round_up(M, 16))
    grid = (pl.cdiv(M, tm),)
    return pl.pallas_call(
        functools.partial(_matmul_bias_act_kernel, apply_relu=relu),
        out_shape=jax.ShapeDtypeStruct((M, N), out_dtype),
        grid=grid,
        in_specs=[
            pl.BlockSpec((tm, K), lambda i: (i, 0)),
            pl.BlockSpec((K, N), lambda i: (0, 0)),
            pl.BlockSpec((1, N), lambda i: (0, 0)),
        ],
        out_specs=pl.BlockSpec((tm, N), lambda i: (i, 0)),
        compiler_params=pltpu.CompilerParams(
            dimension_semantics=("parallel",)),
    )(a, w, b)


def _fused_fc_kernel(x_ref, w1_ref, b1_ref, w2_ref, b2_ref, o_ref):
    # fc1 (+bias +ReLU) and fc2 (+bias) fused in one kernel; M is tiny.
    h = jnp.dot(x_ref[...], w1_ref[...], preferred_element_type=jnp.float32)
    h = jnp.maximum(h + b1_ref[...], 0.0)
    out = jnp.dot(h.astype(jnp.bfloat16), w2_ref[...],
                  preferred_element_type=jnp.float32)
    o_ref[...] = out + b2_ref[...]


def fused_fc(x, w1, b1, w2, b2):
    """x: (M, K1) bf16, w1: (K1, H) bf16, b1: (1, H) f32,
    w2: (H, N2) bf16 (N2 lane-padded), b2: (1, N2) f32 -> (M, N2) f32."""
    M, K1 = x.shape
    H = w1.shape[1]
    N2 = w2.shape[1]
    mb = _round_up(M, 16)
    return pl.pallas_call(
        _fused_fc_kernel,
        out_shape=jax.ShapeDtypeStruct((M, N2), jnp.float32),
        grid=(1,),
        in_specs=[
            pl.BlockSpec((mb, K1), lambda i: (0, 0)),
            pl.BlockSpec((K1, H), lambda i: (0, 0)),
            pl.BlockSpec((1, H), lambda i: (0, 0)),
            pl.BlockSpec((H, N2), lambda i: (0, 0)),
            pl.BlockSpec((1, N2), lambda i: (0, 0)),
        ],
        out_specs=pl.BlockSpec((mb, N2), lambda i: (0, 0)),
        compiler_params=pltpu.CompilerParams(
            dimension_semantics=("arbitrary",)),
    )(x, w1, b1, w2, b2)


# ------------------------------- conv glue --------------------------------- #
def _im2col_nhwc(x, k, stride):
    """x: (N, H, W, C) -> patches (N*Ho*Wo, k*k*C) with (kh, kw, c) column order."""
    N, H, W, C = x.shape
    Ho = (H - k) // stride + 1
    Wo = (W - k) // stride + 1
    cols = []
    for kh in range(k):
        for kw in range(k):
            cols.append(
                jax.lax.slice(
                    x,
                    (0, kh, kw, 0),
                    (N, kh + stride * (Ho - 1) + 1, kw + stride * (Wo - 1) + 1, C),
                    (1, stride, stride, 1),
                ))  # (N, Ho, Wo, C)
    patches = jnp.stack(cols, axis=3)               # (N, Ho, Wo, k*k, C)
    return patches.reshape(N * Ho * Wo, k * k * C), Ho, Wo


def conv2d_nhwc(x, w_packed, b_packed, k, stride, *, relu=True,
                out_dtype=jnp.bfloat16):
    """x: (N, H, W, C) bf16; w_packed: (k*k*C, OC) bf16; b_packed: (1, OC) f32.
    Returns NHWC (N, Ho, Wo, OC) in out_dtype (no NCHW<->NHWC transposes)."""
    N = x.shape[0]
    OC = w_packed.shape[1]
    patches, Ho, Wo = _im2col_nhwc(x, k, stride)
    out = pallas_linear(patches, w_packed, b_packed, relu=relu, out_dtype=out_dtype)
    return out.reshape(N, Ho, Wo, OC)


# --------------------------------- model ----------------------------------- #
def init_dqn_params(key, in_channels, num_actions):
    """PyTorch-layout f32 params (same init scheme as the original)."""
    def uniform(key, shape, fan_in):
        bound = 1.0 / jnp.sqrt(fan_in)
        return jax.random.uniform(key, shape, jnp.float32, -bound, bound)

    ks = jax.random.split(key, 10)
    p = {}
    p["w1"] = uniform(ks[0], (32, in_channels, 8, 8), in_channels * 8 * 8)
    p["b1"] = uniform(ks[1], (32,), in_channels * 8 * 8)
    p["w2"] = uniform(ks[2], (64, 32, 4, 4), 32 * 4 * 4)
    p["b2"] = uniform(ks[3], (64,), 32 * 4 * 4)
    p["w3"] = uniform(ks[4], (64, 64, 3, 3), 64 * 3 * 3)
    p["b3"] = uniform(ks[5], (64,), 64 * 3 * 3)
    p["fc1_w"] = uniform(ks[6], (512, 7 * 7 * 64), 7 * 7 * 64)   # torch (out, in)
    p["fc1_b"] = uniform(ks[7], (512,), 7 * 7 * 64)
    p["fc2_w"] = uniform(ks[8], (num_actions, 512), 512)
    p["fc2_b"] = uniform(ks[9], (num_actions,), 512)
    return p


def pack_params(p, num_actions):
    """One-time weight packing: bf16, matmul-ready layouts, no per-forward work."""
    def conv_pack(w):
        OC, IC, k, _ = w.shape
        # (OC, IC, kh, kw) -> (kh, kw, IC, OC) -> (k*k*IC, OC); matches im2col order.
        return jnp.transpose(w, (2, 3, 1, 0)).reshape(k * k * IC, OC).astype(jnp.bfloat16)

    packed = {
        "w1": conv_pack(p["w1"]), "b1": p["b1"].reshape(1, -1),
        "w2": conv_pack(p["w2"]), "b2": p["b2"].reshape(1, -1),
        "w3": conv_pack(p["w3"]), "b3": p["b3"].reshape(1, -1),
    }

    # fc1: torch flattens NCHW as (c, h, w); our NHWC flatten is (h, w, c).
    # Permute fc1 weight columns once so no transpose is needed at runtime.
    hid, in_features = p["fc1_w"].shape
    c3 = p["w3"].shape[0]
    s = int(round((in_features // c3) ** 0.5))
    fc1 = p["fc1_w"].reshape(hid, c3, s, s)                       # (o, c, h, w)
    packed["fc1_w"] = (jnp.transpose(fc1, (2, 3, 1, 0))
                       .reshape(s * s * c3, hid).astype(jnp.bfloat16))
    packed["fc1_b"] = p["fc1_b"].reshape(1, -1)

    # fc2: transpose to (H, A) and lane-pad the tiny action dim to 128 once.
    n_pad = _round_up(num_actions, 128)
    packed["fc2_w"] = (jnp.zeros((hid, n_pad), jnp.bfloat16)
                       .at[:, :num_actions].set(p["fc2_w"].T.astype(jnp.bfloat16)))
    packed["fc2_b"] = (jnp.zeros((1, n_pad), jnp.float32)
                       .at[0, :num_actions].set(p["fc2_b"]))
    return packed


def dqn_forward(packed, x, *, num_actions):
    # x: (N, C, 84, 84) f32 NCHW (PyTorch convention) -> NHWC bf16 once.
    x = jnp.transpose(x, (0, 2, 3, 1)).astype(jnp.bfloat16)
    x = conv2d_nhwc(x, packed["w1"], packed["b1"], 8, 4)          # (N, 20, 20, 32)
    x = conv2d_nhwc(x, packed["w2"], packed["b2"], 4, 2)          # (N,  9,  9, 64)
    x = conv2d_nhwc(x, packed["w3"], packed["b3"], 3, 1)          # (N,  7,  7, 64)
    n = x.shape[0]
    x = x.reshape(n, -1)                                          # (N, 3136) (h, w, c) order
    out = fused_fc(x, packed["fc1_w"], packed["fc1_b"],
                   packed["fc2_w"], packed["fc2_b"])              # (N, 128) f32
    return out[:, :num_actions]


# ----------------------------- pure-JAX reference --------------------------- #
def ref_forward(p, x):
    def conv(x, w, b, stride):
        y = jax.lax.conv_general_dilated(
            x, w, (stride, stride), "VALID",
            dimension_numbers=("NCHW", "OIHW", "NCHW"))
        return jax.nn.relu(y + b[None, :, None, None])
    x = conv(x, p["w1"], p["b1"], 4)
    x = conv(x, p["w2"], p["b2"], 2)
    x = conv(x, p["w3"], p["b3"], 1)
    x = x.reshape(x.shape[0], -1)
    x = jax.nn.relu(x @ p["fc1_w"].T + p["fc1_b"])
    return x @ p["fc2_w"].T + p["fc2_b"]


if __name__ == "__main__":
    key = jax.random.PRNGKey(0)
    k_param, k_x = jax.random.split(key)

    batch = 2
    in_channels = 4          # stacked Atari frames
    num_actions = 6          # Pong-v4 action space
    # Spatial size must be 84x84 so the conv stack yields 7*7*64 fc1 in-features.
    x = jax.random.uniform(k_x, (batch, in_channels, 84, 84), jnp.float32)

    params = init_dqn_params(k_param, in_channels, num_actions)
    packed = pack_params(params, num_actions)

    fwd = jax.jit(functools.partial(dqn_forward, num_actions=num_actions))
    out = jax.block_until_ready(fwd(packed, x))

    assert out.shape == (batch, num_actions), out.shape
    assert bool(jnp.all(jnp.isfinite(out)))

    # bf16 operands -> small deviation vs the f32 reference; loose tolerance.
    ref = ref_forward(params, x)
    err = float(jnp.max(jnp.abs(out - ref)))
    scale = float(jnp.max(jnp.abs(ref)))
    assert err <= 0.1 * max(1.0, scale), (err, scale)

    print("KERNEL_OK")
</pallas_src>

<mosaic_0001>
module attributes {stable_mosaic.version = 11 : i64} {
  func.func @_matmul_bias_act_kernel(%arg0: i32, %arg1: memref<256x256xbf16, #tpu.memory_space<vmem>>, %arg2: memref<256x32xbf16, #tpu.memory_space<vmem>>, %arg3: memref<1x32xf32, #tpu.memory_space<vmem>>, %arg4: memref<256x32xbf16, #tpu.memory_space<vmem>>) attributes {dimension_semantics = [#tpu.dimension_semantics<parallel>], iteration_bounds = array<i64: 4>, scalar_prefetch = 0 : i64, scratch_operands = 0 : i64, tpu.core_type = #tpu.core_type<tc>, window_params = [{transform_indices = @transform_0, window_bounds = array<i64: 256, 256>}, {pipeline_mode = #tpu.pipeline_mode<synchronous>, transform_indices = @transform_1, window_bounds = array<i64: 256, 32>}, {pipeline_mode = #tpu.pipeline_mode<synchronous>, transform_indices = @transform_2, window_bounds = array<i64: 1, 32>}, {transform_indices = @transform_3, window_bounds = array<i64: 256, 32>}]} {
    %c0 = arith.constant 0 : index
    %c0_0 = arith.constant 0 : index
    %0 = vector.load %arg1[%c0, %c0_0] : memref<256x256xbf16, #tpu.memory_space<vmem>>, vector<256x256xbf16>
    %c0_1 = arith.constant 0 : index
    %c0_2 = arith.constant 0 : index
    %1 = vector.load %arg2[%c0_1, %c0_2] : memref<256x32xbf16, #tpu.memory_space<vmem>>, vector<256x32xbf16>
    %cst = arith.constant dense<0.000000e+00> : vector<256x32xf32>
    %2 = tpu.matmul %0, %1, %cst {dimension_numbers = #tpu.dot_dimension_numbers<[1], [0], [0], [1], [0, 0, 1, 1], [], []>} : vector<256x256xbf16>, vector<256x32xbf16>, vector<256x32xf32> -> vector<256x32xf32>
    %c0_3 = arith.constant 0 : index
    %c0_4 = arith.constant 0 : index
    %3 = vector.load %arg3[%c0_3, %c0_4] : memref<1x32xf32, #tpu.memory_space<vmem>>, vector<1x32xf32>
    %4 = vector.broadcast %3 : vector<1x32xf32> to vector<256x32xf32>
    %5 = arith.addf %2, %4 : vector<256x32xf32>
    %cst_5 = arith.constant 0.000000e+00 : f32
    %6 = vector.broadcast %cst_5 : f32 to vector<256x32xf32>
    %7 = arith.maximumf %5, %6 : vector<256x32xf32>
    %8 = arith.truncf %7 : vector<256x32xf32> to vector<256x32xbf16>
    %c0_6 = arith.constant 0 : index
    %c0_7 = arith.constant 0 : index
    %9 = vector.load %arg4[%c0_6, %c0_7] : memref<256x32xbf16, #tpu.memory_space<vmem>>, vector<256x32xbf16>
    tpu.vector_store %arg4[%c0_6, %c0_7], %8 {strides = array<i32>} : memref<256x32xbf16, #tpu.memory_space<vmem>>, vector<256x32xbf16>,
    return
  }
  func.func @transform_0(%arg0: i32) -> (i32, i32) {
    %c0_i32 = arith.constant 0 : i32
    %c0_i32_0 = arith.constant 0 : i32
    return %arg0, %c0_i32 : i32, i32
  }
  func.func @transform_1(%arg0: i32) -> (i32, i32) {
    %c0_i32 = arith.constant 0 : i32
    %c0_i32_0 = arith.constant 0 : i32
    %c0_i32_1 = arith.constant 0 : i32
    return %c0_i32, %c0_i32_0 : i32, i32
  }
  func.func @transform_2(%arg0: i32) -> (i32, i32) {
    %c0_i32 = arith.constant 0 : i32
    %c0_i32_0 = arith.constant 0 : i32
    %c0_i32_1 = arith.constant 0 : i32
    return %c0_i32, %c0_i32_0 : i32, i32
  }
  func.func @transform_3(%arg0: i32) -> (i32, i32) {
    %c0_i32 = arith.constant 0 : i32
    %c0_i32_0 = arith.constant 0 : i32
    return %arg0, %c0_i32 : i32, i32
  }
}

module attributes {stable_mosaic.version = 11 : i64} {
  func.func @_matmul_bias_act_kernel(%arg0: i32, %arg1: memref<176x512xbf16, #tpu.memory_space<vmem>>, %arg2: memref<512x64xbf16, #tpu.memory_space<vmem>>, %arg3: memref<1x64xf32, #tpu.memory_space<vmem>>, %arg4: memref<176x64xbf16, #tpu.memory_space<vmem>>) attributes {dimension_semantics = [#tpu.dimension_semantics<parallel>], iteration_bounds = array<i64: 1>, scalar_prefetch = 0 : i64, scratch_operands = 0 : i64, tpu.core_type = #tpu.core_type<tc>, window_params = [{transform_indices = @transform_0, window_bounds = array<i64: 176, 512>}, {pipeline_mode = #tpu.pipeline_mode<synchronous>, transform_indices = @transform_1, window_bounds = array<i64: 512, 64>}, {pipeline_mode = #tpu.pipeline_mode<synchronous>, transform_indices = @transform_2, window_bounds = array<i64: 1, 64>}, {transform_indices = @transform_3, window_bounds = array<i64: 176, 64>}]} {
    %c0 = arith.constant 0 : index
    %c0_0 = arith.constant 0 : index
    %0 = vector.load %arg1[%c0, %c0_0] : memref<176x512xbf16, #tpu.memory_space<vmem>>, vector<176x512xbf16>
    %c0_1 = arith.constant 0 : index
    %c0_2 = arith.constant 0 : index
    %1 = vector.load %arg2[%c0_1, %c0_2] : memref<512x64xbf16, #tpu.memory_space<vmem>>, vector<512x64xbf16>
    %cst = arith.constant dense<0.000000e+00> : vector<176x64xf32>
    %2 = tpu.matmul %0, %1, %cst {dimension_numbers = #tpu.dot_dimension_numbers<[1], [0], [0], [1], [0, 0, 1, 1], [], []>} : vector<176x512xbf16>, vector<512x64xbf16>, vector<176x64xf32> -> vector<176x64xf32>
    %c0_3 = arith.constant 0 : index
    %c0_4 = arith.constant 0 : index
    %3 = vector.load %arg3[%c0_3, %c0_4] : memref<1x64xf32, #tpu.memory_space<vmem>>, vector<1x64xf32>
    %4 = vector.broadcast %3 : vector<1x64xf32> to vector<176x64xf32>
    %5 = arith.addf %2, %4 : vector<176x64xf32>
    %cst_5 = arith.constant 0.000000e+00 : f32
    %6 = vector.broadcast %cst_5 : f32 to vector<176x64xf32>
    %7 = arith.maximumf %5, %6 : vector<176x64xf32>
    %8 = arith.truncf %7 : vector<176x64xf32> to vector<176x64xbf16>
    %c0_6 = arith.constant 0 : index
    %c0_7 = arith.constant 0 : index
    %9 = vector.load %arg4[%c0_6, %c0_7] : memref<176x64xbf16, #tpu.memory_space<vmem>>, vector<176x64xbf16>
    tpu.vector_store %arg4[%c0_6, %c0_7], %8 {strides = array<i32>} : memref<176x64xbf16, #tpu.memory_space<vmem>>, vector<176x64xbf16>,
    return
  }
  func.func @transform_0(%arg0: i32) -> (i32, i32) {
    %c0_i32 = arith.constant 0 : i32
    %c0_i32_0 = arith.constant 0 : i32
    return %arg0, %c0_i32 : i32, i32
  }
  func.func @transform_1(%arg0: i32) -> (i32, i32) {
    %c0_i32 = arith.constant 0 : i32
    %c0_i32_0 = arith.constant 0 : i32
    %c0_i32_1 = arith.constant 0 : i32
    return %c0_i32, %c0_i32_0 : i32, i32
  }
  func.func @transform_2(%arg0: i32) -> (i32, i32) {
    %c0_i32 = arith.constant 0 : i32
    %c0_i32_0 = arith.constant 0 : i32
    %c0_i32_1 = arith.constant 0 : i32
    return %c0_i32, %c0_i32_0 : i32, i32
  }
  func.func @transform_3(%arg0: i32) -> (i32, i32) {
    %c0_i32 = arith.constant 0 : i32
    %c0_i32_0 = arith.constant 0 : i32
    return %arg0, %c0_i32 : i32, i32
  }
}

module attributes {stable_mosaic.version = 11 : i64} {
  func.func @_matmul_bias_act_kernel(%arg0: i32, %arg1: memref<112x576xbf16, #tpu.memory_space<vmem>>, %arg2: memref<576x64xbf16, #tpu.memory_space<vmem>>, %arg3: memref<1x64xf32, #tpu.memory_space<vmem>>, %arg4: memref<112x64xbf16, #tpu.memory_space<vmem>>) attributes {dimension_semantics = [#tpu.dimension_semantics<parallel>], iteration_bounds = array<i64: 1>, scalar_prefetch = 0 : i64, scratch_operands = 0 : i64, tpu.core_type = #tpu.core_type<tc>, window_params = [{transform_indices = @transform_0, window_bounds = array<i64: 112, 576>}, {pipeline_mode = #tpu.pipeline_mode<synchronous>, transform_indices = @transform_1, window_bounds = array<i64: 576, 64>}, {pipeline_mode = #tpu.pipeline_mode<synchronous>, transform_indices = @transform_2, window_bounds = array<i64: 1, 64>}, {transform_indices = @transform_3, window_bounds = array<i64: 112, 64>}]} {
    %c0 = arith.constant 0 : index
    %c0_0 = arith.constant 0 : index
    %0 = vector.load %arg1[%c0, %c0_0] : memref<112x576xbf16, #tpu.memory_space<vmem>>, vector<112x576xbf16>
    %c0_1 = arith.constant 0 : index
    %c0_2 = arith.constant 0 : index
    %1 = vector.load %arg2[%c0_1, %c0_2] : memref<576x64xbf16, #tpu.memory_space<vmem>>, vector<576x64xbf16>
    %cst = arith.constant dense<0.000000e+00> : vector<112x64xf32>
    %2 = tpu.matmul %0, %1, %cst {dimension_numbers = #tpu.dot_dimension_numbers<[1], [0], [0], [1], [0, 0, 1, 1], [], []>} : vector<112x576xbf16>, vector<576x64xbf16>, vector<112x64xf32> -> vector<112x64xf32>
    %c0_3 = arith.constant 0 : index
    %c0_4 = arith.constant 0 : index
    %3 = vector.load %arg3[%c0_3, %c0_4] : memref<1x64xf32, #tpu.memory_space<vmem>>, vector<1x64xf32>
    %4 = vector.broadcast %3 : vector<1x64xf32> to vector<112x64xf32>
    %5 = arith.addf %2, %4 : vector<112x64xf32>
    %cst_5 = arith.constant 0.000000e+00 : f32
    %6 = vector.broadcast %cst_5 : f32 to vector<112x64xf32>
    %7 = arith.maximumf %5, %6 : vector<112x64xf32>
    %8 = arith.truncf %7 : vector<112x64xf32> to vector<112x64xbf16>
    %c0_6 = arith.constant 0 : index
    %c0_7 = arith.constant 0 : index
    %9 = vector.load %arg4[%c0_6, %c0_7] : memref<112x64xbf16, #tpu.memory_space<vmem>>, vector<112x64xbf16>
    tpu.vector_store %arg4[%c0_6, %c0_7], %8 {strides = array<i32>} : memref<112x64xbf16, #tpu.memory_space<vmem>>, vector<112x64xbf16>,
    return
  }
  func.func @transform_0(%arg0: i32) -> (i32, i32) {
    %c0_i32 = arith.constant 0 : i32
    %c0_i32_0 = arith.constant 0 : i32
    return %arg0, %c0_i32 : i32, i32
  }
  func.func @transform_1(%arg0: i32) -> (i32, i32) {
    %c0_i32 = arith.constant 0 : i32
    %c0_i32_0 = arith.constant 0 : i32
    %c0_i32_1 = arith.constant 0 : i32
    return %c0_i32, %c0_i32_0 : i32, i32
  }
  func.func @transform_2(%arg0: i32) -> (i32, i32) {
    %c0_i32 = arith.constant 0 : i32
    %c0_i32_0 = arith.constant 0 : i32
    %c0_i32_1 = arith.constant 0 : i32
    return %c0_i32, %c0_i32_0 : i32, i32
  }
  func.func @transform_3(%arg0: i32) -> (i32, i32) {
    %c0_i32 = arith.constant 0 : i32
    %c0_i32_0 = arith.constant 0 : i32
    return %arg0, %c0_i32 : i32, i32
  }
}

module attributes {stable_mosaic.version = 11 : i64} {
  func.func @_fused_fc_kernel(%arg0: i32, %arg1: memref<16x3136xbf16, #tpu.memory_space<vmem>>, %arg2: memref<3136x512xbf16, #tpu.memory_space<vmem>>, %arg3: memref<1x512xf32, #tpu.memory_space<vmem>>, %arg4: memref<512x128xbf16, #tpu.memory_space<vmem>>, %arg5: memref<1x128xf32, #tpu.memory_space<vmem>>, %arg6: memref<16x128xf32, #tpu.memory_space<vmem>>) attributes {dimension_semantics = [#tpu.dimension_semantics<arbitrary>], iteration_bounds = array<i64: 1>, scalar_prefetch = 0 : i64, scratch_operands = 0 : i64, tpu.core_type = #tpu.core_type<tc>, window_params = [{transform_indices = @transform_0, window_bounds = array<i64: 16, 3136>}, {pipeline_mode = #tpu.pipeline_mode<synchronous>, transform_indices = @transform_1, window_bounds = array<i64: 3136, 512>}, {pipeline_mode = #tpu.pipeline_mode<synchronous>, transform_indices = @transform_2, window_bounds = array<i64: 1, 512>}, {pipeline_mode = #tpu.pipeline_mode<synchronous>, transform_indices = @transform_3, window_bounds = array<i64: 512, 128>}, {pipeline_mode = #tpu.pipeline_mode<synchronous>, transform_indices = @transform_4, window_bounds = array<i64: 1, 128>}, {transform_indices = @transform_5, window_bounds = array<i64: 16, 128>}]} {
    %c0 = arith.constant 0 : index
    %c0_0 = arith.constant 0 : index
    %0 = vector.load %arg1[%c0, %c0_0] : memref<16x3136xbf16, #tpu.memory_space<vmem>>, vector<16x3136xbf16>
    %c0_1 = arith.constant 0 : index
    %c0_2 = arith.constant 0 : index
    %1 = vector.load %arg2[%c0_1, %c0_2] : memref<3136x512xbf16, #tpu.memory_space<vmem>>, vector<3136x512xbf16>
    %cst = arith.constant dense<0.000000e+00> : vector<16x512xf32>
    %2 = tpu.matmul %0, %1, %cst {dimension_numbers = #tpu.dot_dimension_numbers<[1], [0], [0], [1], [0, 0, 1, 1], [], []>} : vector<16x3136xbf16>, vector<3136x512xbf16>, vector<16x512xf32> -> vector<16x512xf32>
    %c0_3 = arith.constant 0 : index
    %c0_4 = arith.constant 0 : index
    %3 = vector.load %arg3[%c0_3, %c0_4] : memref<1x512xf32, #tpu.memory_space<vmem>>, vector<1x512xf32>
    %4 = vector.broadcast %3 : vector<1x512xf32> to vector<16x512xf32>
    %5 = arith.addf %2, %4 : vector<16x512xf32>
    %cst_5 = arith.constant 0.000000e+00 : f32
    %6 = vector.broadcast %cst_5 : f32 to vector<16x512xf32>
    %7 = arith.maximumf %5, %6 : vector<16x512xf32>
    %8 = arith.truncf %7 : vector<16x512xf32> to vector<16x512xbf16>
    %c0_6 = arith.constant 0 : index
    %c0_7 = arith.constant 0 : index
    %9 = vector.load %arg4[%c0_6, %c0_7] : memref<512x128xbf16, #tpu.memory_space<vmem>>, vector<512x128xbf16>
    %cst_8 = arith.constant dense<0.000000e+00> : vector<16x128xf32>
    %10 = tpu.matmul %8, %9, %cst_8 {dimension_numbers = #tpu.dot_dimension_numbers<[1], [0], [0], [1], [0, 0, 1, 1], [], []>} : vector<16x512xbf16>, vector<512x128xbf16>, vector<16x128xf32> -> vector<16x128xf32>
    %c0_9 = arith.constant 0 : index
    %c0_10 = arith.constant 0 : index
    %11 = vector.load %arg5[%c0_9, %c0_10] : memref<1x128xf32, #tpu.memory_space<vmem>>, vector<1x128xf32>
    %12 = vector.broadcast %11 : vector<1x128xf32> to vector<16x128xf32>
    %13 = arith.addf %10, %12 : vector<16x128xf32>
    %c0_11 = arith.constant 0 : index
    %c0_12 = arith.constant 0 : index
    %14 = vector.load %arg6[%c0_11, %c0_12] : memref<16x128xf32, #tpu.memory_space<vmem>>, vector<16x128xf32>
    tpu.vector_store %arg6[%c0_11, %c0_12], %13 {strides = array<i32>} : memref<16x128xf32, #tpu.memory_space<vmem>>, vector<16x128xf32>,
    return
  }
  func.func @transform_0(%arg0: i32) -> (i32, i32) {
    %c0_i32 = arith.constant 0 : i32
    %c0_i32_0 = arith.constant 0 : i32
    %c0_i32_1 = arith.constant 0 : i32
    return %c0_i32, %c0_i32_0 : i32, i32
  }
  func.func @transform_1(%arg0: i32) -> (i32, i32) {
    %c0_i32 = arith.constant 0 : i32
    %c0_i32_0 = arith.constant 0 : i32
    %c0_i32_1 = arith.constant 0 : i32
    return %c0_i32, %c0_i32_0 : i32, i32
  }
  func.func @transform_2(%arg0: i32) -> (i32, i32) {
    %c0_i32 = arith.constant 0 : i32
    %c0_i32_0 = arith.constant 0 : i32
    %c0_i32_1 = arith.constant 0 : i32
    return %c0_i32, %c0_i32_0 : i32, i32
  }
  func.func @transform_3(%arg0: i32) -> (i32, i32) {
    %c0_i32 = arith.constant 0 : i32
    %c0_i32_0 = arith.constant 0 : i32
    %c0_i32_1 = arith.constant 0 : i32
    return %c0_i32, %c0_i32_0 : i32, i32
  }
  func.func @transform_4(%arg0: i32) -> (i32, i32) {
    %c0_i32 = arith.constant 0 : i32
    %c0_i32_0 = arith.constant 0 : i32
    %c0_i32_1 = arith.constant 0 : i32
    return %c0_i32, %c0_i32_0 : i32, i32
  }
  func.func @transform_5(%arg0: i32) -> (i32, i32) {
    %c0_i32 = arith.constant 0 : i32
    %c0_i32_0 = arith.constant 0 : i32
    %c0_i32_1 = arith.constant 0 : i32
    return %c0_i32, %c0_i32_0 : i32, i32
  }
}

</mosaic_0001>

<bundles_post_ra>
// kernel: dqn_forward.4
= control target key start
LH: loop header
LB: loop body
LE: loop exit
PB: predicated region body
PF: predicated region fallthrough
CT: control target
= control target key end

     0   :  { %s1750_s12 = smov 0   ;;  %s1752_s13 = smov 0   ;;  %s2108_s0 = inlined_call_operand.vmem [shape: bf16[800,256], index: 0, kind: input, shape index: {}]   ;;  %s2109_s1 = inlined_call_operand.vmem [shape: bf16[256,32], index: 1, kind: input, shape index: {}]   ;;  %s2110_s2 = inlined_call_operand.vmem [shape: f32[1,32], index: 2, kind: input, shape index: {}]   ;;  %s2111_s3 = inlined_call_operand.vmem [shape: bf16[800,32], index: 3, kind: output, shape index: {}]  }
   0x1   :  { %s1754_s14 = smov 0  }
   0x2 LB: > { %s1763_s15 = sadd.s32 4294967295, %s1696_s14   ;;  %s1765_s16 = sadd.s32 1, %s1696_s14   ;;  %s1696_s14 = sphi %s1754_s14, %s2118_s14   ;;  %s1692_s13 = sphi %s1752_s13, %s2117_s13   ;;  %s1688_s12 = sphi %s1750_s12, %s2116_s12  }
   0x3   : > { %s85_s17 = ssub.s32 %s1696_s14, %s1765_s16  ;;  %s88_s18 = sadd.s32 1, %s1692_s13 }
   0x4   : > { %p86_p0 = scmp.eq.s32.totalorder %s85_s17, 0  ;;  %p98_p1 = scmp.ne.s32.totalorder %s1692_s13, %s1688_s12 }
   0x5   : > { %p99_p2 = scmp.eq.s32.totalorder %s1763_s15, 3  ;;  %p1223_p3 = scmp.ge.s32.totalorder %s1696_s14, 1 }
   0x6   : > { %s1773_s19 = scalar_select %p86_p0, %s1692_s13, %s88_s18  }
   0x7   : > { %p1775_p4 = por %p99_p2, %p98_p1  ;;  %p149_p5 = scmp.lt.s32.totalorder %s1696_s14, 5 }
   0x9   : > { %p150_p6 = pnand %p1223_p3, %p149_p5 }
   0xa   : > { %v1578_v0 = vld [vmem:[%s2109_s1 + $0x40] sm:$0xff] (!%p150_p6)   ;;  %s1783_s23 = sshll.u32 (!%p150_p6), %s1763_s15, 5  ;;  %v1580_v2 = vld [vmem:[%s2109_s1 + $0x48] sm:$0xff] (!%p150_p6)   ;;  %v1582_v4 = vld [vmem:[%s2109_s1 + $0x50] sm:$0xff] (!%p150_p6)   ;;  %vm849_vm0 = vcmask (!%p150_p6), 257024  }
   0xb   : > { %153 = sbr.rel (%p150_p6) target bundleno = 393 (0x189), region = 32  ;;  %v1579_v1 = vld [vmem:[%s2109_s1] sm:$0xff] (!%p150_p6)   ;;  %1362 = vmatprep.subr.bf16.mxu0 (!%p150_p6), %v1578_v0  ;;  %1474 = vmatprep.subr.bf16.mxu1 (!%p150_p6), %v1578_v0  ;;  %v1581_v3 = vld [vmem:[%s2109_s1 + $0x8] sm:$0xff] (!%p150_p6)   ;;  %p184_p7 = scmp.lt.s32.totalorder (!%p150_p6), %s1783_s23, 99  ;;  %v1583_v5 = vld [vmem:[%s2109_s1 + $0x10] sm:$0xff] (!%p150_p6)  }
   0xc   : > { %1363 = vmatpush3.bf16.msra.mxu0 (!%p150_p6), %v1579_v1  ;;  %1482 = vmatpush3.bf16.msra.mxu1 (!%p150_p6), %v1579_v1  ;;  %v1584_v6 = vld [vmem:[%s2109_s1 + $0x58] sm:$0xff] (!%p150_p6)   ;;  %v1586_v8 = vld [vmem:[%s2109_s1 + $0x60] sm:$0xff] (!%p150_p6)   ;;  %v1588_v10 = vld [vmem:[%s2109_s1 + $0x68] sm:$0xff] (!%p150_p6)  }
   0xd   : > { %1364 = vmatprep.subr.bf16.mxu0 (!%p150_p6), %v1580_v2  ;;  %1475 = vmatprep.subr.bf16.mxu1 (!%p150_p6), %v1580_v2  ;;  %v1585_v7 = vld [vmem:[%s2109_s1 + $0x18] sm:$0xff] (!%p150_p6)   ;;  %v1587_v9 = vld [vmem:[%s2109_s1 + $0x20] sm:$0xff] (!%p150_p6)   ;;  %v1589_v13 = vld [vmem:[%s2109_s1 + $0x28] sm:$0xff] (!%p150_p6)  }
   0xe   : > { %v1590_v14 = vld [vmem:[%s2109_s1 + $0x70] sm:$0xff] (!%p150_p6)   ;;  %v1592_v16 = vld [vmem:[%s2109_s1 + $0x78] sm:$0xff] (!%p150_p6)   ;;  %v1873_v50 = vld [vmem:[%s2110_s2] ss:$0 sm:$0xff] (!%p150_p6) }
   0xf   : > { %v1591_v15 = vld [vmem:[%s2109_s1 + $0x30] sm:$0xff] (!%p150_p6)   ;;  %v1593_v17 = vld [vmem:[%s2109_s1 + $0x38] sm:$0xff] (!%p150_p6)  }
  0x10   : > { %1365 = vmatpush3.bf16.msra.mxu0 (!%p150_p6), %v1581_v3  ;;  %1483 = vmatpush3.bf16.msra.mxu1 (!%p150_p6), %v1581_v3 }
  0x11   : > { %1366 = vmatprep.subr.bf16.mxu0 (!%p150_p6), %v1582_v4  ;;  %1476 = vmatprep.subr.bf16.mxu1 (!%p150_p6), %v1582_v4 }
  0x12   : > { %s185_s7 = scalar_select %p184_p7, %s1783_s23, 99 }
  0x13   : > { %s890_s22 = ssub.s32 (%p1775_p4), 100, %s1783_s23 }
  0x14   : > { %1367 = vmatpush3.bf16.msra.mxu0 %v1583_v5  ;;  %1484 = vmatpush3.bf16.msra.mxu1 %v1583_v5  ;;  %s1326_s14 = sshll.u32 %s185_s7, 3  ;;  %p891_p8 = scmp.lt.s32.totalorder (%p1775_p4), %s890_s22, 32 }
  0x15   : > { %1368 = vmatprep.subr.bf16.mxu0 %v1584_v6  ;;  %1477 = vmatprep.subr.bf16.mxu1 %v1584_v6  ;;  %s1814_s24 = scalar_lea.vmem %s2108_s0, %s1326_s14  ;;  %s175_s14 = sand.u32 1, %s1688_s12  }
  0x16   : > { %v1596_v11 = vld [vmem:[%s1814_s24 + $0x4] ss:$8 sps:$4 sm:$0xff]   ;;  %v1594_v18 = vld [vmem:[%s1814_s24] ss:$8 sps:$4 sm:$0xff]   ;;  %v1600_v20 = vld [vmem:[%s1814_s24 + $0x14] ss:$8 sps:$4 sm:$0xff]  }
  0x17   : > { %v1599_v12 = vld [vmem:[%s1814_s24 + $0x84] ss:$8 sps:$4 sm:$0xff]   ;;  %560 = vmatprep.mubr.bf16.mxu0 %v1596_v11  ;;  %v1597_v19 = vld [vmem:[%s1814_s24 + $0x80] ss:$8 sps:$4 sm:$0xff]   ;;  %v1602_v21 = vld [vmem:[%s1814_s24 + $0x94] ss:$8 sps:$4 sm:$0xff]  }
  0x18   : > { %1369 = vmatpush3.bf16.msra.mxu0 %v1585_v7  ;;  %1485 = vmatpush3.bf16.msra.mxu1 %v1585_v7  ;;  %v1604_v22 = vld [vmem:[%s1814_s24 + $0x10] ss:$8 sps:$4 sm:$0xff]   ;;  %v1606_v24 = vld [vmem:[%s1814_s24 + $0x24] ss:$8 sps:$4 sm:$0xff]   ;;  %v1610_v26 = vld [vmem:[%s1814_s24 + $0x20] ss:$8 sps:$4 sm:$0xff]  }
  0x19   : > { %1370 = vmatprep.subr.bf16.mxu0 %v1586_v8  ;;  %1478 = vmatprep.subr.bf16.mxu1 %v1586_v8  ;;  %v1605_v23 = vld [vmem:[%s1814_s24 + $0x90] ss:$8 sps:$4 sm:$0xff]   ;;  %v1608_v25 = vld [vmem:[%s1814_s24 + $0xa4] ss:$8 sps:$4 sm:$0xff]   ;;  %v1611_v27 = vld [vmem:[%s1814_s24 + $0xa0] ss:$8 sps:$4 sm:$0xff]  }
  0x1a   : > { %624 = vmatprep.mubr.bf16.mxu1 %v1599_v12  ;;  %v1612_v28 = vld [vmem:[%s1814_s24 + $0x34] ss:$8 sps:$4 sm:$0xff]   ;;  %v1616_v30 = vld [vmem:[%s1814_s24 + $0x30] ss:$8 sps:$4 sm:$0xff]   ;;  %v1618_v32 = vld [vmem:[%s1814_s24 + $0x44] ss:$8 sps:$4 sm:$0xff]  }
  0x1b   : > { %v1614_v29 = vld [vmem:[%s1814_s24 + $0xb4] ss:$8 sps:$4 sm:$0xff]   ;;  %v1617_v31 = vld [vmem:[%s1814_s24 + $0xb0] ss:$8 sps:$4 sm:$0xff]   ;;  %v1620_v33 = vld [vmem:[%s1814_s24 + $0xc4] ss:$8 sps:$4 sm:$0xff]  }
  0x1c   : > { %1371 = vmatpush3.bf16.msra.mxu0 %v1587_v9  ;;  %1486 = vmatpush3.bf16.msra.mxu1 %v1587_v9  ;;  %v1622_v34 = vld [vmem:[%s1814_s24 + $0x40] ss:$8 sps:$4 sm:$0xff]   ;;  %v1624_v36 = vld [vmem:[%s1814_s24 + $0x54] ss:$8 sps:$4 sm:$0xff]   ;;  %v1628_v38 = vld [vmem:[%s1814_s24 + $0x50] ss:$8 sps:$4 sm:$0xff]  }
  0x1d   : > { %1372 = vmatprep.subr.bf16.mxu0 %v1588_v10  ;;  %1479 = vmatprep.subr.bf16.mxu1 %v1588_v10  ;;  %v1623_v35 = vld [vmem:[%s1814_s24 + $0xc0] ss:$8 sps:$4 sm:$0xff]   ;;  %v1626_v37 = vld [vmem:[%s1814_s24 + $0xd4] ss:$8 sps:$4 sm:$0xff]   ;;  %v1629_v39 = vld [vmem:[%s1814_s24 + $0xd0] ss:$8 sps:$4 sm:$0xff]  }
  0x1e   : > { %v1630_v40 = vld [vmem:[%s1814_s24 + $0x64] ss:$8 sps:$4 sm:$0xff]   ;;  %v1634_v42 = vld [vmem:[%s1814_s24 + $0x60] ss:$8 sps:$4 sm:$0xff]   ;;  %v1636_v44 = vld [vmem:[%s1814_s24 + $0x74] ss:$8 sps:$4 sm:$0xff]  }
  0x1f   : > { %v1632_v41 = vld [vmem:[%s1814_s24 + $0xe4] ss:$8 sps:$4 sm:$0xff]   ;;  %v1635_v43 = vld [vmem:[%s1814_s24 + $0xe0] ss:$8 sps:$4 sm:$0xff]   ;;  %v1638_v45 = vld [vmem:[%s1814_s24 + $0xf4] ss:$8 sps:$4 sm:$0xff]  }
  0x20   : > { %1373 = vmatpush3.bf16.msra.mxu0 %v1589_v13  ;;  %1487 = vmatpush3.bf16.msra.mxu1 %v1589_v13  ;;  %v1640_v46 = vld [vmem:[%s1814_s24 + $0x70] ss:$8 sps:$4 sm:$0xff]   ;;  %s1224_s21 = sshll.u32 %s175_s14, 7 }
  0x21   : > { %1374 = vmatprep.subr.bf16.mxu0 %v1590_v14  ;;  %1480 = vmatprep.subr.bf16.mxu1 %v1590_v14  ;;  %v1641_v47 = vld [vmem:[%s1814_s24 + $0xf0] ss:$8 sps:$4 sm:$0xff]   ;;  %s1879_s12 = scalar_lea.vmem [#allocation2], %s1224_s21   ;;  %s1359_s24 = sshll.u32 (%p1775_p4), %s1763_s15, 7 }
  0x22   : > { %s1980_s27 = scalar_lea.vmem (%p1775_p4), %s2111_s3, %s1359_s24  }
  0x24   : > { %1375 = vmatpush3.bf16.msra.mxu0 %v1591_v15  ;;  %1488 = vmatpush3.bf16.msra.mxu1 %v1591_v15 }
  0x25   : > { %1376 = vmatprep.subr.bf16.mxu0 %v1592_v16  ;;  %1481 = vmatprep.subr.bf16.mxu1 %v1592_v16 }
  0x28   : > { %1377 = vmatpush3.bf16.msra.mxu0 %v1593_v17  ;;  %1489 = vmatpush3.bf16.msra.mxu1 %v1593_v17 }
  0x2b   : > { %561 = vmatmul.mubr.bf16.vlgmr.msra.gmra.mrb[0].mxu0 %v1594_v18  ;;  %625 = vmatmul.mubr.bf16.vlgmr.msra.gmra.mrb[0].mxu1 %v1597_v19 }
  0x2c   : > { %568 = vmatprep.mubr.bf16.mxu0 %v1600_v20  ;;  %632 = vmatprep.mubr.bf16.mxu1 %v1602_v21 }
  0x33   : > { %569 = vmatmul.mubr.bf16.gmra.mrb[4].mxu0 %v1604_v22  ;;  %633 = vmatmul.mubr.bf16.gmra.mrb[4].mxu1 %v1605_v23 }
  0x34   : > { %576 = vmatprep.mubr.bf16.mxu0 %v1606_v24  ;;  %640 = vmatprep.mubr.bf16.mxu1 %v1608_v25 }
  0x3b   : > { %577 = vmatmul.mubr.bf16.gmra.mrb[8].mxu0 %v1610_v26  ;;  %641 = vmatmul.mubr.bf16.gmra.mrb[8].mxu1 %v1611_v27 }
  0x3c   : > { %584 = vmatprep.mubr.bf16.mxu0 %v1612_v28  ;;  %648 = vmatprep.mubr.bf16.mxu1 %v1614_v29 }
  0x43   : > { %585 = vmatmul.mubr.bf16.gmra.mrb[12].mxu0 %v1616_v30  ;;  %649 = vmatmul.mubr.bf16.gmra.mrb[12].mxu1 %v1617_v31 }
  0x44   : > { %592 = vmatprep.mubr.bf16.mxu0 %v1618_v32  ;;  %656 = vmatprep.mubr.bf16.mxu1 %v1620_v33 }
  0x4b   : > { %593 = vmatmul.mubr.bf16.gmra.mrb[16].mxu0 %v1622_v34  ;;  %657 = vmatmul.mubr.bf16.gmra.mrb[16].mxu1 %v1623_v35 }
  0x4c   : > { %600 = vmatprep.mubr.bf16.mxu0 %v1624_v36  ;;  %664 = vmatprep.mubr.bf16.mxu1 %v1626_v37 }
  0x53   : > { %601 = vmatmul.mubr.bf16.gmra.mrb[20].mxu0 %v1628_v38  ;;  %665 = vmatmul.mubr.bf16.gmra.mrb[20].mxu1 %v1629_v39 }
  0x54   : > { %608 = vmatprep.mubr.bf16.mxu0 %v1630_v40  ;;  %672 = vmatprep.mubr.bf16.mxu1 %v1632_v41 }
  0x5b   : > { %609 = vmatmul.mubr.bf16.gmra.mrb[24].mxu0 %v1634_v42  ;;  %673 = vmatmul.mubr.bf16.gmra.mrb[24].mxu1 %v1635_v43 }
  0x5c   : > { %616 = vmatprep.mubr.bf16.mxu0 %v1636_v44  ;;  %680 = vmatprep.mubr.bf16.mxu1 %v1638_v45 }
  0x63   : > { %617 = vmatmul.mubr.bf16.gmra.mrb[28].mxu0 %v1640_v46  ;;  %681 = vmatmul.mubr.bf16.gmra.mrb[28].mxu1 %v1641_v47 }
  0xfe   : > { %v1378_v48 = vpop.f32.mrb[0].mxu0  ;;  %v1426_v49 = vpop.f32.mrb[0].mxu1 }
  0xff   : > { %v1379_v51 = vpop.f32.mrb[1].mxu0  ;;  %v1427_v52 = vpop.f32.mrb[1].mxu1 }
 0x100   : > { %v1380_v53 = vadd.f32 %v1379_v51, %v1378_v48  ;;  %v1428_v54 = vadd.f32 %v1427_v52, %v1426_v49  ;;  %v1381_v55 = vpop.f32.mrb[2].mxu0  ;;  %v1429_v56 = vpop.f32.mrb[2].mxu1 }
 0x101   : > { %v1382_v57 = vpop.f32.mrb[3].mxu0  ;;  %v1430_v58 = vpop.f32.mrb[3].mxu1 }
 0x102   : > { %v563_v59 = vadd.f32 %v1380_v53, %v1873_v50  ;;  %v627_v60 = vadd.f32 %v1428_v54, %v1873_v50  ;;  %v1383_v61 = vadd.f32 %v1382_v57, %v1381_v55  ;;  %v1431_v62 = vadd.f32 %v1430_v58, %v1429_v56 }
 0x104   : > { %v689_v63 = vmax.f32 %v563_v59, 0.0  ;;  %v705_v0 = vmax.f32 %v627_v60, 0.0  ;;  %v566_v1 = vadd.f32 %v1383_v61, %v1873_v50  ;;  %v630_v2 = vadd.f32 %v1431_v62, %v1873_v50 }
 0x106   : > { %v1327_v3 = vpack.c.bf16 %v689_v63, %v689_v63  ;;  %v1343_v4 = vpack.c.bf16 %v705_v0, %v705_v0  ;;  %v690_v5 = vmax.f32 %v566_v1, 0.0  ;;  %v706_v6 = vmax.f32 %v630_v2, 0.0  ;;  %v1384_v7 = vpop.f32.mrb[4].mxu0  ;;  %v1432_v8 = vpop.f32.mrb[4].mxu1 }
 0x107   : > { %v1385_v9 = vpop.f32.mrb[5].mxu0  ;;  %v1433_v10 = vpop.f32.mrb[5].mxu1 }
 0x108   : > { %850 = vst.msk [vmem:[%s1879_s12] sm:$0xf] %vm849_vm0, %v1327_v3  ;;  %866 = vst.msk [vmem:[%s1879_s12 + $0x40] sm:$0xf] %vm849_vm0, %v1343_v4  ;;  %v1328_v11 = vpack.c.bf16 %v690_v5, %v690_v5  ;;  %v1344_v12 = vpack.c.bf16 %v706_v6, %v706_v6  ;;  %v1386_v13 = vadd.f32 %v1385_v9, %v1384_v7  ;;  %v1387_v15 = vpop.f32.mrb[6].mxu0  ;;  %v1435_v16 = vpop.f32.mrb[6].mxu1 }
 0x109   : > { %v1434_v14 = vadd.f32 %v1433_v10, %v1432_v8  ;;  %v1388_v17 = vpop.f32.mrb[7].mxu0  ;;  %v1436_v18 = vpop.f32.mrb[7].mxu1 }
 0x10a   : > { %851 = vst.msk [vmem:[%s1879_s12 + $0x4] sm:$0xf] %vm849_vm0, %v1328_v11  ;;  %867 = vst.msk [vmem:[%s1879_s12 + $0x44] sm:$0xf] %vm849_vm0, %v1344_v12  ;;  %v571_v19 = vadd.f32 %v1386_v13, %v1873_v50  ;;  %v1389_v21 = vadd.f32 %v1388_v17, %v1387_v15  ;;  %v1437_v22 = vadd.f32 %v1436_v18, %v1435_v16 }
 0x10b   : > { %v635_v20 = vadd.f32 %v1434_v14, %v1873_v50 }
 0x10c   : > { %v691_v23 = vmax.f32 %v571_v19, 0.0  ;;  %v574_v25 = vadd.f32 %v1389_v21, %v1873_v50  ;;  %v638_v26 = vadd.f32 %v1437_v22, %v1873_v50 }
 0x10d   : > { %v707_v24 = vmax.f32 %v635_v20, 0.0 }
 0x10e   : > { %v1329_v27 = vpack.c.bf16 %v691_v23, %v691_v23  ;;  %v692_v29 = vmax.f32 %v574_v25, 0.0  ;;  %v708_v30 = vmax.f32 %v638_v26, 0.0  ;;  %v1390_v31 = vpop.f32.mrb[8].mxu0  ;;  %v1438_v32 = vpop.f32.mrb[8].mxu1 }
 0x10f   : > { %v1345_v28 = vpack.c.bf16 %v707_v24, %v707_v24  ;;  %v1391_v33 = vpop.f32.mrb[9].mxu0  ;;  %v1439_v34 = vpop.f32.mrb[9].mxu1 }
 0x110   : > { %852 = vst.msk [vmem:[%s1879_s12 + $0x8] sm:$0xf] %vm849_vm0, %v1329_v27  ;;  %v1330_v35 = vpack.c.bf16 %v692_v29, %v692_v29  ;;  %v1346_v36 = vpack.c.bf16 %v708_v30, %v708_v30  ;;  %v1392_v37 = vadd.f32 %v1391_v33, %v1390_v31  ;;  %v1440_v38 = vadd.f32 %v1439_v34, %v1438_v32  ;;  %v1393_v39 = vpop.f32.mrb[10].mxu0  ;;  %v1441_v40 = vpop.f32.mrb[10].mxu1 }
 0x111   : > { %868 = vst.msk [vmem:[%s1879_s12 + $0x48] sm:$0xf] %vm849_vm0, %v1345_v28  ;;  %v1394_v41 = vpop.f32.mrb[11].mxu0  ;;  %v1442_v42 = vpop.f32.mrb[11].mxu1 }
 0x112   : > { %853 = vst.msk [vmem:[%s1879_s12 + $0xc] sm:$0xf] %vm849_vm0, %v1330_v35  ;;  %869 = vst.msk [vmem:[%s1879_s12 + $0x4c] sm:$0xf] %vm849_vm0, %v1346_v36  ;;  %v579_v43 = vadd.f32 %v1392_v37, %v1873_v50  ;;  %v643_v44 = vadd.f32 %v1440_v38, %v1873_v50  ;;  %v1395_v45 = vadd.f32 %v1394_v41, %v1393_v39 }
 0x113   : > { %v1443_v46 = vadd.f32 %v1442_v42, %v1441_v40 }
 0x114   : > { %v693_v47 = vmax.f32 %v579_v43, 0.0  ;;  %v709_v48 = vmax.f32 %v643_v44, 0.0  ;;  %v582_v49 = vadd.f32 %v1395_v45, %v1873_v50 }
 0x115   : > { %v646_v51 = vadd.f32 %v1443_v46, %v1873_v50 }
 0x116   : > { %v1331_v52 = vpack.c.bf16 %v693_v47, %v693_v47  ;;  %v1347_v53 = vpack.c.bf16 %v709_v48, %v709_v48  ;;  %v694_v54 = vmax.f32 %v582_v49, 0.0  ;;  %v1396_v56 = vpop.f32.mrb[12].mxu0  ;;  %v1444_v57 = vpop.f32.mrb[12].mxu1 }
 0x117   : > { %v710_v55 = vmax.f32 %v646_v51, 0.0  ;;  %v1397_v58 = vpop.f32.mrb[13].mxu0  ;;  %v1445_v59 = vpop.f32.mrb[13].mxu1 }
 0x118   : > { %854 = vst.msk [vmem:[%s1879_s12 + $0x10] sm:$0xf] %vm849_vm0, %v1331_v52  ;;  %870 = vst.msk [vmem:[%s1879_s12 + $0x50] sm:$0xf] %vm849_vm0, %v1347_v53  ;;  %v1332_v60 = vpack.c.bf16 %v694_v54, %v694_v54  ;;  %v1398_v62 = vadd.f32 %v1397_v58, %v1396_v56  ;;  %v1446_v63 = vadd.f32 %v1445_v59, %v1444_v57  ;;  %v1399_v0 = vpop.f32.mrb[14].mxu0  ;;  %v1447_v1 = vpop.f32.mrb[14].mxu1 }
 0x119   : > { %v1348_v61 = vpack.c.bf16 %v710_v55, %v710_v55  ;;  %v1400_v2 = vpop.f32.mrb[15].mxu0  ;;  %v1448_v3 = vpop.f32.mrb[15].mxu1 }
 0x11a   : > { %855 = vst.msk [vmem:[%s1879_s12 + $0x14] sm:$0xf] %vm849_vm0, %v1332_v60  ;;  %v587_v4 = vadd.f32 %v1398_v62, %v1873_v50  ;;  %v651_v5 = vadd.f32 %v1446_v63, %v1873_v50  ;;  %v1401_v6 = vadd.f32 %v1400_v2, %v1399_v0  ;;  %v1449_v7 = vadd.f32 %v1448_v3, %v1447_v1 }
 0x11b   : > { %871 = vst.msk [vmem:[%s1879_s12 + $0x54] sm:$0xf] %vm849_vm0, %v1348_v61 }
 0x11c   : > { %v695_v8 = vmax.f32 %v587_v4, 0.0  ;;  %v711_v9 = vmax.f32 %v651_v5, 0.0  ;;  %v590_v10 = vadd.f32 %v1401_v6, %v1873_v50  ;;  %v654_v11 = vadd.f32 %v1449_v7, %v1873_v50 }
 0x11e   : > { %v1333_v12 = vpack.c.bf16 %v695_v8, %v695_v8  ;;  %v1349_v13 = vpack.c.bf16 %v711_v9, %v711_v9  ;;  %v696_v14 = vmax.f32 %v590_v10, 0.0  ;;  %v712_v15 = vmax.f32 %v654_v11, 0.0  ;;  %v1402_v16 = vpop.f32.mrb[16].mxu0  ;;  %v1450_v17 = vpop.f32.mrb[16].mxu1 }
 0x11f   : > { %v1403_v18 = vpop.f32.mrb[17].mxu0  ;;  %v1451_v19 = vpop.f32.mrb[17].mxu1 }
 0x120   : > { %856 = vst.msk [vmem:[%s1879_s12 + $0x18] sm:$0xf] %vm849_vm0, %v1333_v12  ;;  %872 = vst.msk [vmem:[%s1879_s12 + $0x58] sm:$0xf] %vm849_vm0, %v1349_v13  ;;  %v1334_v20 = vpack.c.bf16 %v696_v14, %v696_v14  ;;  %v1350_v21 = vpack.c.bf16 %v712_v15, %v712_v15  ;;  %v1404_v22 = vadd.f32 %v1403_v18, %v1402_v16  ;;  %v1405_v24 = vpop.f32.mrb[18].mxu0  ;;  %v1453_v25 = vpop.f32.mrb[18].mxu1 }
 0x121   : > { %v1452_v23 = vadd.f32 %v1451_v19, %v1450_v17  ;;  %v1406_v26 = vpop.f32.mrb[19].mxu0  ;;  %v1454_v27 = vpop.f32.mrb[19].mxu1 }
 0x122   : > { %857 = vst.msk [vmem:[%s1879_s12 + $0x1c] sm:$0xf] %vm849_vm0, %v1334_v20  ;;  %873 = vst.msk [vmem:[%s1879_s12 + $0x5c] sm:$0xf] %vm849_vm0, %v1350_v21  ;;  %v595_v28 = vadd.f32 %v1404_v22, %v1873_v50  ;;  %v1407_v30 = vadd.f32 %v1406_v26, %v1405_v24  ;;  %v1455_v31 = vadd.f32 %v1454_v27, %v1453_v25 }
 0x123   : > { %v659_v29 = vadd.f32 %v1452_v23, %v1873_v50 }
 0x124   : > { %v697_v32 = vmax.f32 %v595_v28, 0.0  ;;  %v598_v34 = vadd.f32 %v1407_v30, %v1873_v50  ;;  %v662_v35 = vadd.f32 %v1455_v31, %v1873_v50 }
 0x125   : > { %v713_v33 = vmax.f32 %v659_v29, 0.0 }
 0x126   : > { %v1335_v36 = vpack.c.bf16 %v697_v32, %v697_v32  ;;  %v698_v38 = vmax.f32 %v598_v34, 0.0  ;;  %v714_v39 = vmax.f32 %v662_v35, 0.0  ;;  %v1408_v40 = vpop.f32.mrb[20].mxu0  ;;  %v1456_v41 = vpop.f32.mrb[20].mxu1 }
 0x127   : > { %v1351_v37 = vpack.c.bf16 %v713_v33, %v713_v33  ;;  %v1409_v42 = vpop.f32.mrb[21].mxu0  ;;  %v1457_v43 = vpop.f32.mrb[21].mxu1 }
 0x128   : > { %858 = vst.msk [vmem:[%s1879_s12 + $0x20] sm:$0xf] %vm849_vm0, %v1335_v36  ;;  %v1336_v44 = vpack.c.bf16 %v698_v38, %v698_v38  ;;  %v1352_v45 = vpack.c.bf16 %v714_v39, %v714_v39  ;;  %v1410_v46 = vadd.f32 %v1409_v42, %v1408_v40  ;;  %v1458_v47 = vadd.f32 %v1457_v43, %v1456_v41  ;;  %v1411_v48 = vpop.f32.mrb[22].mxu0  ;;  %v1459_v49 = vpop.f32.mrb[22].mxu1 }
 0x129   : > { %874 = vst.msk [vmem:[%s1879_s12 + $0x60] sm:$0xf] %vm849_vm0, %v1351_v37  ;;  %v1412_v51 = vpop.f32.mrb[23].mxu0  ;;  %v1460_v52 = vpop.f32.mrb[23].mxu1 }
 0x12a   : > { %859 = vst.msk [vmem:[%s1879_s12 + $0x24] sm:$0xf] %vm849_vm0, %v1336_v44  ;;  %875 = vst.msk [vmem:[%s1879_s12 + $0x64] sm:$0xf] %vm849_vm0, %v1352_v45  ;;  %v603_v53 = vadd.f32 %v1410_v46, %v1873_v50  ;;  %v667_v54 = vadd.f32 %v1458_v47, %v1873_v50  ;;  %v1413_v55 = vadd.f32 %v1412_v51, %v1411_v48 }
 0x12b   : > { %v1461_v56 = vadd.f32 %v1460_v52, %v1459_v49 }
 0x12c   : > { %v699_v57 = vmax.f32 %v603_v53, 0.0  ;;  %v715_v58 = vmax.f32 %v667_v54, 0.0  ;;  %v606_v59 = vadd.f32 %v1413_v55, %v1873_v50 }
 0x12d   : > { %v670_v60 = vadd.f32 %v1461_v56, %v1873_v50 }
 0x12e   : > { %v1337_v61 = vpack.c.bf16 %v699_v57, %v699_v57  ;;  %v1353_v62 = vpack.c.bf16 %v715_v58, %v715_v58  ;;  %v700_v63 = vmax.f32 %v606_v59, 0.0  ;;  %v1414_v1 = vpop.f32.mrb[24].mxu0  ;;  %v1462_v2 = vpop.f32.mrb[24].mxu1 }
 0x12f   : > { %v716_v0 = vmax.f32 %v670_v60, 0.0  ;;  %v1415_v3 = vpop.f32.mrb[25].mxu0  ;;  %v1463_v4 = vpop.f32.mrb[25].mxu1 }
 0x130   : > { %860 = vst.msk [vmem:[%s1879_s12 + $0x28] sm:$0xf] %vm849_vm0, %v1337_v61  ;;  %876 = vst.msk [vmem:[%s1879_s12 + $0x68] sm:$0xf] %vm849_vm0, %v1353_v62  ;;  %v1338_v5 = vpack.c.bf16 %v700_v63, %v700_v63  ;;  %v1416_v7 = vadd.f32 %v1415_v3, %v1414_v1  ;;  %v1464_v8 = vadd.f32 %v1463_v4, %v1462_v2  ;;  %v1417_v9 = vpop.f32.mrb[26].mxu0  ;;  %v1465_v10 = vpop.f32.mrb[26].mxu1 }
 0x131   : > { %v1354_v6 = vpack.c.bf16 %v716_v0, %v716_v0  ;;  %v1418_v11 = vpop.f32.mrb[27].mxu0  ;;  %v1466_v12 = vpop.f32.mrb[27].mxu1 }
 0x132   : > { %861 = vst.msk [vmem:[%s1879_s12 + $0x2c] sm:$0xf] %vm849_vm0, %v1338_v5  ;;  %v611_v13 = vadd.f32 %v1416_v7, %v1873_v50  ;;  %v675_v14 = vadd.f32 %v1464_v8, %v1873_v50  ;;  %v1419_v15 = vadd.f32 %v1418_v11, %v1417_v9  ;;  %v1467_v16 = vadd.f32 %v1466_v12, %v1465_v10 }
 0x133   : > { %877 = vst.msk [vmem:[%s1879_s12 + $0x6c] sm:$0xf] %vm849_vm0, %v1354_v6 }
 0x134   : > { %v701_v17 = vmax.f32 %v611_v13, 0.0  ;;  %v717_v18 = vmax.f32 %v675_v14, 0.0  ;;  %v614_v19 = vadd.f32 %v1419_v15, %v1873_v50  ;;  %v678_v20 = vadd.f32 %v1467_v16, %v1873_v50 }
 0x136   : > { %v1339_v21 = vpack.c.bf16 %v701_v17, %v701_v17  ;;  %v1355_v22 = vpack.c.bf16 %v717_v18, %v717_v18  ;;  %v702_v23 = vmax.f32 %v614_v19, 0.0  ;;  %v718_v24 = vmax.f32 %v678_v20, 0.0  ;;  %v1420_v25 = vpop.f32.mrb[28].mxu0  ;;  %v1468_v26 = vpop.f32.mrb[28].mxu1 }
 0x137   : > { %v1421_v27 = vpop.f32.mrb[29].mxu0  ;;  %v1469_v28 = vpop.f32.mrb[29].mxu1 }
 0x138   : > { %862 = vst.msk [vmem:[%s1879_s12 + $0x30] sm:$0xf] %vm849_vm0, %v1339_v21  ;;  %878 = vst.msk [vmem:[%s1879_s12 + $0x70] sm:$0xf] %vm849_vm0, %v1355_v22  ;;  %v1340_v29 = vpack.c.bf16 %v702_v23, %v702_v23  ;;  %v1356_v30 = vpack.c.bf16 %v718_v24, %v718_v24  ;;  %v1422_v31 = vadd.f32 %v1421_v27, %v1420_v25  ;;  %v1423_v33 = vpop.f32.mrb[30].mxu0  ;;  %v1471_v34 = vpop.f32.mrb[30].mxu1 }
 0x139   : > { %v1470_v32 = vadd.f32 %v1469_v28, %v1468_v26  ;;  %v1424_v35 = vpop.f32.mrb[31].mxu0  ;;  %v1472_v36 = vpop.f32.mrb[31].mxu1 }
 0x13a   : > { %863 = vst.msk [vmem:[%s1879_s12 + $0x34] sm:$0xf] %vm849_vm0, %v1340_v29  ;;  %879 = vst.msk [vmem:[%s1879_s12 + $0x74] sm:$0xf] %vm849_vm0, %v1356_v30  ;;  %v619_v37 = vadd.f32 %v1422_v31, %v1873_v50  ;;  %v1425_v39 = vadd.f32 %v1424_v35, %v1423_v33  ;;  %v1473_v40 = vadd.f32 %v1472_v36, %v1471_v34 }
 0x13b   : > { %v683_v38 = vadd.f32 %v1470_v32, %v1873_v50 }
 0x13c   : > { %v703_v41 = vmax.f32 %v619_v37, 0.0  ;;  %v622_v43 = vadd.f32 %v1425_v39, %v1873_v50  ;;  %v686_v44 = vadd.f32 %v1473_v40, %v1873_v50  ;;  %888 = sbr.rel (!%p1775_p4) target bundleno = 393 (0x189), region = 36 }
 0x13d   : > { %v719_v42 = vmax.f32 %v683_v38, 0.0 }
 0x13e   : > { %v1341_v45 = vpack.c.bf16 %v703_v41, %v703_v41  ;;  %v704_v47 = vmax.f32 %v622_v43, 0.0  ;;  %v720_v48 = vmax.f32 %v686_v44, 0.0 }
 0x13f   : > { %v1357_v46 = vpack.c.bf16 %v719_v42, %v719_v42 }
 0x140   : > { %864 = vst.msk [vmem:[%s1879_s12 + $0x38] sm:$0xf] %vm849_vm0, %v1341_v45  ;;  %v1342_v49 = vpack.c.bf16 %v704_v47, %v704_v47  ;;  %v1358_v51 = vpack.c.bf16 %v720_v48, %v720_v48 }
 0x141   : > { %880 = vst.msk [vmem:[%s1879_s12 + $0x78] sm:$0xf] %vm849_vm0, %v1357_v46 }
 0x142   : > { %865 = vst.msk [vmem:[%s1879_s12 + $0x3c] sm:$0xf] %vm849_vm0, %v1342_v49  ;;  %881 = vst.msk [vmem:[%s1879_s12 + $0x7c] sm:$0xf] %vm849_vm0, %v1358_v51 }
 0x143   : > { %s2120_s22 = smov (!%p891_p8, %s890_s22), 32 }
 0x144   : > { %s1311_s28 = sshll.u32 %s2120_s22, 6 }
 0x145   : > { %p1314_p9 = scmp.eq.s32.totalorder %s1311_s28, 0 }
 0x146   : > { %s1986_s29 = sshrl.u32 (!%p1314_p9), %s2120_s22, 5 }
 0x147   : > { %899 = sbr.rel (%p1314_p9) target bundleno = 393 (0x189), region = 40  ;;  %p1315_p10 = scmp.le.s32.totalorder (!%p1314_p9), %s1986_s29, 0 }
 0x14e   : > { %1176 = sbr.rel (%p1315_p10) target bundleno = 372 (0x174), region = 112  ;;  %s2113_s15 = smov (!%p1315_p10), %s1980_s27 }
 0x14f   : > { %s2114_s20 = smov (!%p1315_p10), %s1879_s12  ;;  %s1995_s23 = smov (!%p1315_p10), 0  }
 0x150   : > { %s1997_s30 = smov (!%p1315_p10), 0  }
 0x155 LB: >> { %v915_v50 = vld [vmem:[%s1704_s20] sm:$0xf]  ;;  %v917_v52 = vld [vmem:[%s1704_s20 + $0x4] sm:$0xf]  ;;  %v919_v53 = vld [vmem:[%s1704_s20 + $0x8] sm:$0xf]  ;;  %s1712_s30 = sphi %s1997_s30, %s909_s30   ;;  %s1708_s23 = sphi %s1995_s23, %s2115_s23   ;;  %s1704_s20 = sphi %s2114_s20, %s984_s20   ;;  %s1700_s15 = sphi %s2113_s15, %s985_s15  }
 0x156   : >> { %916 = vst [vmem:[%s1700_s15] sm:$0xf] %v915_v50  ;;  %918 = vst [vmem:[%s1700_s15 + $0x4] sm:$0xf] %v917_v52  ;;  %v921_v54 = vld [vmem:[%s1704_s20 + $0xc] sm:$0xf]  ;;  %s979_s4 = sadd.s32 1, %s1708_s23 }
 0x157   : >> { %920 = vst [vmem:[%s1700_s15 + $0x8] sm:$0xf] %v919_v53  ;;  %v923_v55 = vld [vmem:[%s1704_s20 + $0x10] sm:$0xf]  ;;  %v925_v56 = vld [vmem:[%s1704_s20 + $0x14] sm:$0xf]  ;;  %p980_p11 = scmp.ge.s32.totalorder %s979_s4, %s1986_s29 }
 0x158   : >> { %922 = vst [vmem:[%s1700_s15 + $0xc] sm:$0xf] %v921_v54  ;;  %924 = vst [vmem:[%s1700_s15 + $0x10] sm:$0xf] %v923_v55  ;;  %v927_v57 = vld [vmem:[%s1704_s20 + $0x18] sm:$0xf] }
 0x159   : >> { %926 = vst [vmem:[%s1700_s15 + $0x14] sm:$0xf] %v925_v56  ;;  %v929_v58 = vld [vmem:[%s1704_s20 + $0x1c] sm:$0xf]  ;;  %v931_v59 = vld [vmem:[%s1704_s20 + $0x20] sm:$0xf] }
 0x15a   : >> { %928 = vst [vmem:[%s1700_s15 + $0x18] sm:$0xf] %v927_v57  ;;  %930 = vst [vmem:[%s1700_s15 + $0x1c] sm:$0xf] %v929_v58  ;;  %v933_v60 = vld [vmem:[%s1704_s20 + $0x24] sm:$0xf] }
 0x15b   : >> { %932 = vst [vmem:[%s1700_s15 + $0x20] sm:$0xf] %v931_v59  ;;  %v935_v61 = vld [vmem:[%s1704_s20 + $0x28] sm:$0xf]  ;;  %v937_v62 = vld [vmem:[%s1704_s20 + $0x2c] sm:$0xf] }
 0x15c   : >> { %934 = vst [vmem:[%s1700_s15 + $0x24] sm:$0xf] %v933_v60  ;;  %936 = vst [vmem:[%s1700_s15 + $0x28] sm:$0xf] %v935_v61  ;;  %v939_v63 = vld [vmem:[%s1704_s20 + $0x30] sm:$0xf] }
 0x15d   : >> { %938 = vst [vmem:[%s1700_s15 + $0x2c] sm:$0xf] %v937_v62  ;;  %v941_v0 = vld [vmem:[%s1704_s20 + $0x34] sm:$0xf]  ;;  %v943_v1 = vld [vmem:[%s1704_s20 + $0x38] sm:$0xf] }
 0x15e   : >> { %940 = vst [vmem:[%s1700_s15 + $0x30] sm:$0xf] %v939_v63  ;;  %942 = vst [vmem:[%s1700_s15 + $0x34] sm:$0xf] %v941_v0  ;;  %v945_v2 = vld [vmem:[%s1704_s20 + $0x3c] sm:$0xf] }
 0x15f   : >> { %944 = vst [vmem:[%s1700_s15 + $0x38] sm:$0xf] %v943_v1  ;;  %v947_v3 = vld [vmem:[%s1704_s20 + $0x40] sm:$0xf]  ;;  %v949_v4 = vld [vmem:[%s1704_s20 + $0x44] sm:$0xf] }
 0x160   : >> { %946 = vst [vmem:[%s1700_s15 + $0x3c] sm:$0xf] %v945_v2  ;;  %948 = vst [vmem:[%s1700_s15 + $0x40] sm:$0xf] %v947_v3  ;;  %v951_v5 = vld [vmem:[%s1704_s20 + $0x48] sm:$0xf] }
 0x161   : >> { %950 = vst [vmem:[%s1700_s15 + $0x44] sm:$0xf] %v949_v4  ;;  %v953_v6 = vld [vmem:[%s1704_s20 + $0x4c] sm:$0xf]  ;;  %v955_v7 = vld [vmem:[%s1704_s20 + $0x50] sm:$0xf] }
 0x162   : >> { %952 = vst [vmem:[%s1700_s15 + $0x48] sm:$0xf] %v951_v5  ;;  %954 = vst [vmem:[%s1700_s15 + $0x4c] sm:$0xf] %v953_v6  ;;  %v957_v8 = vld [vmem:[%s1704_s20 + $0x54] sm:$0xf] }
 0x163   : >> { %956 = vst [vmem:[%s1700_s15 + $0x50] sm:$0xf] %v955_v7  ;;  %v959_v9 = vld [vmem:[%s1704_s20 + $0x58] sm:$0xf]  ;;  %v961_v10 = vld [vmem:[%s1704_s20 + $0x5c] sm:$0xf] }
 0x164   : >> { %958 = vst [vmem:[%s1700_s15 + $0x54] sm:$0xf] %v957_v8  ;;  %960 = vst [vmem:[%s1700_s15 + $0x58] sm:$0xf] %v959_v9  ;;  %v963_v11 = vld [vmem:[%s1704_s20 + $0x60] sm:$0xf] }
 0x165   : >> { %962 = vst [vmem:[%s1700_s15 + $0x5c] sm:$0xf] %v961_v10  ;;  %v965_v12 = vld [vmem:[%s1704_s20 + $0x64] sm:$0xf]  ;;  %v967_v13 = vld [vmem:[%s1704_s20 + $0x68] sm:$0xf] }
 0x166   : >> { %964 = vst [vmem:[%s1700_s15 + $0x60] sm:$0xf] %v963_v11  ;;  %966 = vst [vmem:[%s1700_s15 + $0x64] sm:$0xf] %v965_v12  ;;  %v969_v14 = vld [vmem:[%s1704_s20 + $0x6c] sm:$0xf] }
 0x167   : >> { %968 = vst [vmem:[%s1700_s15 + $0x68] sm:$0xf] %v967_v13  ;;  %v971_v15 = vld [vmem:[%s1704_s20 + $0x70] sm:$0xf]  ;;  %v973_v16 = vld [vmem:[%s1704_s20 + $0x74] sm:$0xf] }
 0x168   : >> { %970 = vst [vmem:[%s1700_s15 + $0x6c] sm:$0xf] %v969_v14  ;;  %972 = vst [vmem:[%s1700_s15 + $0x70] sm:$0xf] %v971_v15  ;;  %v975_v17 = vld [vmem:[%s1704_s20 + $0x78] sm:$0xf] }
 0x169   : >> { %974 = vst [vmem:[%s1700_s15 + $0x74] sm:$0xf] %v973_v16  ;;  %v977_v18 = vld [vmem:[%s1704_s20 + $0x7c] sm:$0xf]  ;;  %976 = vst [vmem:[%s1700_s15 + $0x78] sm:$0xf] %v975_v17 }
 0x16a   : >> { %978 = vst [vmem:[%s1700_s15 + $0x7c] sm:$0xf] %v977_v18  ;;  %s2122_s4 = smov (%p980_p11, %s979_s4), 0  ;;  %s909_s30 = sadd.s32 1, %s1712_s30  }
 0x16b   : >> { %s1316_s5 = sshll.u32 %s2122_s4, 7  ;;  %p908_p12 = scmp.ge.s32.totalorder %s909_s30, %s1986_s29 }
 0x16c   : >> { %s984_s20 = scalar_lea.vmem %s1879_s12, %s1316_s5 [#allocation2]   ;;  %s985_s15 = scalar_lea.vmem %s1980_s27, %s1316_s5  }
 0x16d   : >> { %s2115_s23 = smov %s2122_s4  ;;  %911 = sbr.rel (!%p908_p12) target bundleno = 341 (0x155), region = 118 }
 0x174 PF: > { %s2090_s6 = sand.u32 31, %s2120_s22   ;;  %s1360_s7 = sshll.u32 %s1986_s29, 7 }
 0x175   : > { %s990_s8 = scalar_lea.vmem %s1879_s12, %s1360_s7 [#allocation2]   ;;  %s992_s9 = scalar_lea.vmem %s1980_s27, %s1360_s7  }
 0x176   : > { %p1321_p13 = scmp.le.s32.totalorder %s2090_s6, 0 }
 0x177   : > { %s1714_s10 = smov (!%p1321_p13), %s992_s9   ;;  %s1718_s11 = smov (!%p1321_p13), %s990_s8  }
 0x178   : > { %1190 = sbr.rel (%p1321_p13) target bundleno = 393 (0x189), region = 123  ;;  %s1722_s14 = smov (!%p1321_p13), 0  }
 0x179   : > { %s1726_s17 = smov (!%p1321_p13), 0  }
 0x17f LB: >> { %v1002_v19 = vld [vmem:[%s1720_s11] sm:$0xf]  ;;  %s1004_s18 = sadd.s32 1, %s1724_s14  ;;  %s996_s17 = sadd.s32 1, %s1728_s17   ;;  %s1728_s17 = sphi %s1726_s17, %s996_s17   ;;  %s1724_s14 = sphi %s1722_s14, %s1723_s14   ;;  %s1720_s11 = sphi %s1718_s11, %s1009_s11   ;;  %s1716_s10 = sphi %s1714_s10, %s1010_s10  }
 0x180   : >> { %1003 = vst [vmem:[%s1716_s10] sm:$0xf] %v1002_v19  ;;  %p1005_p0 = scmp.ge.s32.totalorder %s1004_s18, %s2090_s6  ;;  %p995_p1 = scmp.ge.s32.totalorder %s996_s17, %s2090_s6 }
 0x182   : >> { %s2124_s18 = smov (%p1005_p0, %s1004_s18), 0  ;;  %998 = sbr.rel (!%p995_p1) target bundleno = 383 (0x17f), region = 129 }
 0x183   : >> { %s1322_s21 = sshll.u32 %s2124_s18, 2  ;;  %s1723_s14 = smov %s2124_s18  }
 0x184   : >> { %s1009_s11 = scalar_lea.vmem %s990_s8, %s1322_s21 [#allocation2]   ;;  %s1010_s10 = scalar_lea.vmem %s992_s9, %s1322_s21  }
 0x189 PF: > { %p10_p2 = scmp.ge.s32.totalorder %s1765_s16, 6   ;;  %s2116_s12 = smov %s1692_s13 }
 0x18a   : > { %s2117_s13 = smov %s1773_s19  ;;  %s2118_s14 = smov %s1765_s16 }
 0x18b   :  { %12 = sbr.rel (!%p10_p2) target bundleno = 2 (0x2), region = 140 }

// kernel: dqn_forward.5
= control target key start
LH: loop header
LB: loop body
LE: loop exit
PB: predicated region body
PF: predicated region fallthrough
CT: control target
= control target key end

     0   :  { %vm894_vm0 = vcmask 519168   ;;  %s1785_s0 = inlined_call_operand.vmem [shape: bf16[162,512], index: 0, kind: input, shape index: {}]   ;;  %s1786_s1 = inlined_call_operand.vmem [shape: bf16[512,64], index: 1, kind: input, shape index: {}]   ;;  %s1787_s2 = inlined_call_operand.vmem [shape: f32[1,64], index: 2, kind: input, shape index: {}]   ;;  %s1788_s3 = inlined_call_operand.vmem [shape: bf16[162,64], index: 3, kind: output, shape index: {}]  }
   0x1   :  { %v1329_v0 = vld [vmem:[%s1786_s1 + $0x40] sm:$0xff]   ;;  %v1333_v4 = vld [vmem:[%s1786_s1 + $0x48] sm:$0xff]   ;;  %v1337_v8 = vld [vmem:[%s1786_s1 + $0x50] sm:$0xff]  }
   0x2   :  { %v1330_v1 = vld [vmem:[%s1786_s1 + $0xc0] sm:$0xff]   ;;  %1165 = vmatprep.subr.bf16.mxu0 %v1329_v0  ;;  %v1334_v5 = vld [vmem:[%s1786_s1 + $0xc8] sm:$0xff]   ;;  %v1338_v9 = vld [vmem:[%s1786_s1 + $0xd0] sm:$0xff]  }
   0x3   :  { %v1331_v2 = vld [vmem:[%s1786_s1] sm:$0xff]   ;;  %1247 = vmatprep.subr.bf16.mxu1 %v1330_v1  ;;  %v1335_v6 = vld [vmem:[%s1786_s1 + $0x8] sm:$0xff]   ;;  %v1339_v10 = vld [vmem:[%s1786_s1 + $0x10] sm:$0xff]  }
   0x4   :  { %v1332_v3 = vld [vmem:[%s1786_s1 + $0x80] sm:$0xff]   ;;  %1166 = vmatpush3.bf16.msra.mxu0 %v1331_v2  ;;  %v1336_v7 = vld [vmem:[%s1786_s1 + $0x88] sm:$0xff]   ;;  %v1340_v11 = vld [vmem:[%s1786_s1 + $0x90] sm:$0xff]  }
   0x5   :  { %1248 = vmatpush3.bf16.msra.mxu1 %v1332_v3  ;;  %1167 = vmatprep.subr.bf16.mxu0 %v1333_v4  ;;  %v1341_v12 = vld [vmem:[%s1786_s1 + $0x58] sm:$0xff]   ;;  %v1345_v16 = vld [vmem:[%s1786_s1 + $0x60] sm:$0xff]   ;;  %v1349_v20 = vld [vmem:[%s1786_s1 + $0x68] sm:$0xff]  }
   0x6   :  { %1249 = vmatprep.subr.bf16.mxu1 %v1334_v5  ;;  %v1342_v13 = vld [vmem:[%s1786_s1 + $0xd8] sm:$0xff]   ;;  %v1346_v17 = vld [vmem:[%s1786_s1 + $0xe0] sm:$0xff]   ;;  %v1350_v21 = vld [vmem:[%s1786_s1 + $0xe8] sm:$0xff]  }
   0x7   :  { %v1343_v14 = vld [vmem:[%s1786_s1 + $0x18] sm:$0xff]   ;;  %v1347_v18 = vld [vmem:[%s1786_s1 + $0x20] sm:$0xff]   ;;  %v1351_v22 = vld [vmem:[%s1786_s1 + $0x28] sm:$0xff]  }
   0x8   :  { %1168 = vmatpush3.bf16.msra.mxu0 %v1335_v6  ;;  %v1344_v15 = vld [vmem:[%s1786_s1 + $0x98] sm:$0xff]   ;;  %v1348_v19 = vld [vmem:[%s1786_s1 + $0xa0] sm:$0xff]   ;;  %v1352_v23 = vld [vmem:[%s1786_s1 + $0xa8] sm:$0xff]  }
   0x9   :  { %1250 = vmatpush3.bf16.msra.mxu1 %v1336_v7  ;;  %1169 = vmatprep.subr.bf16.mxu0 %v1337_v8  ;;  %v1353_v24 = vld [vmem:[%s1786_s1 + $0x70] sm:$0xff]   ;;  %v1357_v28 = vld [vmem:[%s1786_s1 + $0x78] sm:$0xff]  }
   0xa   :  { %1251 = vmatprep.subr.bf16.mxu1 %v1338_v9  ;;  %v1354_v25 = vld [vmem:[%s1786_s1 + $0xf0] sm:$0xff]   ;;  %v1358_v29 = vld [vmem:[%s1786_s1 + $0xf8] sm:$0xff]  }
   0xb   :  { %v1355_v26 = vld [vmem:[%s1786_s1 + $0x30] sm:$0xff]   ;;  %v1359_v30 = vld [vmem:[%s1786_s1 + $0x38] sm:$0xff]  }
   0xc   :  { %1170 = vmatpush3.bf16.msra.mxu0 %v1339_v10  ;;  %v1356_v27 = vld [vmem:[%s1786_s1 + $0xb0] sm:$0xff]   ;;  %v1360_v31 = vld [vmem:[%s1786_s1 + $0xb8] sm:$0xff]  }
   0xd   :  { %1252 = vmatpush3.bf16.msra.mxu1 %v1340_v11  ;;  %1171 = vmatprep.subr.bf16.mxu0 %v1341_v12  ;;  %v1361_v32 = vld [vmem:[%s1785_s0] ss:$16 sps:$4 sm:$0xff]   ;;  %v1363_v33 = vld [vmem:[%s1785_s0 + $0x4] ss:$16 sps:$4 sm:$0xff]   ;;  %v1364_v34 = vld [vmem:[%s1785_s0 + $0x8] ss:$16 sps:$4 sm:$0xff]  }
   0xe   :  { %1253 = vmatprep.subr.bf16.mxu1 %v1342_v13  ;;  %v1366_v35 = vld [vmem:[%s1785_s0 + $0xc] ss:$16 sps:$4 sm:$0xff]   ;;  %574 = vmatprep.mubr.bf16.mxu0 %v1363_v33  ;;  %v1367_v36 = vld [vmem:[%s1785_s0 + $0x24] ss:$16 sps:$4 sm:$0xff]   ;;  %v1371_v38 = vld [vmem:[%s1785_s0 + $0x20] ss:$16 sps:$4 sm:$0xff]  }
   0xf   :  { %695 = vmatprep.mubr.bf16.mxu1 %v1366_v35  ;;  %v1369_v37 = vld [vmem:[%s1785_s0 + $0x2c] ss:$16 sps:$4 sm:$0xff]   ;;  %v1372_v39 = vld [vmem:[%s1785_s0 + $0x28] ss:$16 sps:$4 sm:$0xff]   ;;  %v1373_v40 = vld [vmem:[%s1785_s0 + $0x44] ss:$16 sps:$4 sm:$0xff]  }
  0x10   :  { %1172 = vmatpush3.bf16.msra.mxu0 %v1343_v14  ;;  %v1375_v41 = vld [vmem:[%s1785_s0 + $0x4c] ss:$16 sps:$4 sm:$0xff]   ;;  %v1377_v42 = vld [vmem:[%s1785_s0 + $0x40] ss:$16 sps:$4 sm:$0xff]   ;;  %v1378_v43 = vld [vmem:[%s1785_s0 + $0x48] ss:$16 sps:$4 sm:$0xff]  }
  0x11   :  { %1254 = vmatpush3.bf16.msra.mxu1 %v1344_v15  ;;  %1173 = vmatprep.subr.bf16.mxu0 %v1345_v16  ;;  %v1379_v44 = vld [vmem:[%s1785_s0 + $0x64] ss:$16 sps:$4 sm:$0xff]   ;;  %v1381_v45 = vld [vmem:[%s1785_s0 + $0x6c] ss:$16 sps:$4 sm:$0xff]   ;;  %v1383_v46 = vld [vmem:[%s1785_s0 + $0x60] ss:$16 sps:$4 sm:$0xff]  }
  0x12   :  { %1255 = vmatprep.subr.bf16.mxu1 %v1346_v17  ;;  %v1384_v47 = vld [vmem:[%s1785_s0 + $0x68] ss:$16 sps:$4 sm:$0xff]   ;;  %v1385_v48 = vld [vmem:[%s1785_s0 + $0x84] ss:$16 sps:$4 sm:$0xff]   ;;  %v1387_v49 = vld [vmem:[%s1785_s0 + $0x8c] ss:$16 sps:$4 sm:$0xff]  }
  0x13   :  { %v1389_v50 = vld [vmem:[%s1785_s0 + $0x80] ss:$16 sps:$4 sm:$0xff]   ;;  %v1390_v51 = vld [vmem:[%s1785_s0 + $0x88] ss:$16 sps:$4 sm:$0xff]   ;;  %v1391_v52 = vld [vmem:[%s1785_s0 + $0xa4] ss:$16 sps:$4 sm:$0xff]  }
  0x14   :  { %1174 = vmatpush3.bf16.msra.mxu0 %v1347_v18  ;;  %v1393_v53 = vld [vmem:[%s1785_s0 + $0xac] ss:$16 sps:$4 sm:$0xff]   ;;  %v1395_v54 = vld [vmem:[%s1785_s0 + $0xa0] ss:$16 sps:$4 sm:$0xff]   ;;  %v1396_v55 = vld [vmem:[%s1785_s0 + $0xa8] ss:$16 sps:$4 sm:$0xff]  }
  0x15   :  { %1256 = vmatpush3.bf16.msra.mxu1 %v1348_v19  ;;  %1175 = vmatprep.subr.bf16.mxu0 %v1349_v20  ;;  %v1397_v56 = vld [vmem:[%s1785_s0 + $0xc4] ss:$16 sps:$4 sm:$0xff]   ;;  %v1399_v57 = vld [vmem:[%s1785_s0 + $0xcc] ss:$16 sps:$4 sm:$0xff]   ;;  %v1401_v58 = vld [vmem:[%s1785_s0 + $0xc0] ss:$16 sps:$4 sm:$0xff]  }
  0x16   :  { %1257 = vmatprep.subr.bf16.mxu1 %v1350_v21  ;;  %v1402_v59 = vld [vmem:[%s1785_s0 + $0xc8] ss:$16 sps:$4 sm:$0xff]   ;;  %v1403_v60 = vld [vmem:[%s1785_s0 + $0xe4] ss:$16 sps:$4 sm:$0xff]   ;;  %v1405_v61 = vld [vmem:[%s1785_s0 + $0xec] ss:$16 sps:$4 sm:$0xff]  }
  0x17   :  { %v1407_v62 = vld [vmem:[%s1785_s0 + $0xe0] ss:$16 sps:$4 sm:$0xff]   ;;  %v1408_v63 = vld [vmem:[%s1785_s0 + $0xe8] ss:$16 sps:$4 sm:$0xff]   ;;  %v1409_v0 = vld [vmem:[%s1785_s0 + $0x104] ss:$16 sps:$4 sm:$0xff]  }
  0x18   :  { %1176 = vmatpush3.bf16.msra.mxu0 %v1351_v22  ;;  %v1411_v1 = vld [vmem:[%s1785_s0 + $0x10c] ss:$16 sps:$4 sm:$0xff]   ;;  %v1413_v2 = vld [vmem:[%s1785_s0 + $0x100] ss:$16 sps:$4 sm:$0xff]   ;;  %v1414_v3 = vld [vmem:[%s1785_s0 + $0x108] ss:$16 sps:$4 sm:$0xff]  }
  0x19   :  { %1258 = vmatpush3.bf16.msra.mxu1 %v1352_v23  ;;  %1177 = vmatprep.subr.bf16.mxu0 %v1353_v24  ;;  %v1415_v4 = vld [vmem:[%s1785_s0 + $0x124] ss:$16 sps:$4 sm:$0xff]   ;;  %v1417_v5 = vld [vmem:[%s1785_s0 + $0x12c] ss:$16 sps:$4 sm:$0xff]   ;;  %v1419_v6 = vld [vmem:[%s1785_s0 + $0x120] ss:$16 sps:$4 sm:$0xff]  }
  0x1a   :  { %1259 = vmatprep.subr.bf16.mxu1 %v1354_v25  ;;  %v1420_v7 = vld [vmem:[%s1785_s0 + $0x128] ss:$16 sps:$4 sm:$0xff]   ;;  %v1421_v8 = vld [vmem:[%s1785_s0 + $0x144] ss:$16 sps:$4 sm:$0xff]   ;;  %v1423_v9 = vld [vmem:[%s1785_s0 + $0x14c] ss:$16 sps:$4 sm:$0xff]  }
  0x1b   :  { %v1425_v10 = vld [vmem:[%s1785_s0 + $0x140] ss:$16 sps:$4 sm:$0xff]   ;;  %v1426_v11 = vld [vmem:[%s1785_s0 + $0x148] ss:$16 sps:$4 sm:$0xff]  }
  0x1c   :  { %1178 = vmatpush3.bf16.msra.mxu0 %v1355_v26  ;;  %v1678_v14 = vld [vmem:[%s1787_s2] ss:$0 sm:$0xff] }
  0x1d   :  { %1260 = vmatpush3.bf16.msra.mxu1 %v1356_v27  ;;  %1179 = vmatprep.subr.bf16.mxu0 %v1357_v28 }
  0x1e   :  { %1261 = vmatprep.subr.bf16.mxu1 %v1358_v29 }
  0x20   :  { %1180 = vmatpush3.bf16.msra.mxu0 %v1359_v30 }
  0x21   :  { %1262 = vmatpush3.bf16.msra.mxu1 %v1360_v31 }
  0x23   :  { %575 = vmatmul.mubr.bf16.vlgmr.msra.gmra.mrb[0].mxu0 %v1361_v32 }
  0x24   :  { %696 = vmatmul.mubr.bf16.vlgmr.msra.gmra.mrb[0].mxu1 %v1364_v34  ;;  %582 = vmatprep.mubr.bf16.mxu0 %v1367_v36 }
  0x25   :  { %703 = vmatprep.mubr.bf16.mxu1 %v1369_v37 }
  0x2b   :  { %583 = vmatmul.mubr.bf16.gmra.mrb[4].mxu0 %v1371_v38 }
  0x2c   :  { %704 = vmatmul.mubr.bf16.gmra.mrb[4].mxu1 %v1372_v39  ;;  %590 = vmatprep.mubr.bf16.mxu0 %v1373_v40 }
  0x2d   :  { %711 = vmatprep.mubr.bf16.mxu1 %v1375_v41 }
  0x33   :  { %591 = vmatmul.mubr.bf16.gmra.mrb[8].mxu0 %v1377_v42 }
  0x34   :  { %712 = vmatmul.mubr.bf16.gmra.mrb[8].mxu1 %v1378_v43  ;;  %598 = vmatprep.mubr.bf16.mxu0 %v1379_v44 }
  0x35   :  { %719 = vmatprep.mubr.bf16.mxu1 %v1381_v45 }
  0x3b   :  { %599 = vmatmul.mubr.bf16.gmra.mrb[12].mxu0 %v1383_v46 }
  0x3c   :  { %720 = vmatmul.mubr.bf16.gmra.mrb[12].mxu1 %v1384_v47  ;;  %606 = vmatprep.mubr.bf16.mxu0 %v1385_v48 }
  0x3d   :  { %727 = vmatprep.mubr.bf16.mxu1 %v1387_v49 }
  0x43   :  { %607 = vmatmul.mubr.bf16.gmra.mrb[16].mxu0 %v1389_v50 }
  0x44   :  { %728 = vmatmul.mubr.bf16.gmra.mrb[16].mxu1 %v1390_v51  ;;  %614 = vmatprep.mubr.bf16.mxu0 %v1391_v52 }
  0x45   :  { %735 = vmatprep.mubr.bf16.mxu1 %v1393_v53 }
  0x4b   :  { %615 = vmatmul.mubr.bf16.gmra.mrb[20].mxu0 %v1395_v54 }
  0x4c   :  { %736 = vmatmul.mubr.bf16.gmra.mrb[20].mxu1 %v1396_v55  ;;  %622 = vmatprep.mubr.bf16.mxu0 %v1397_v56 }
  0x4d   :  { %743 = vmatprep.mubr.bf16.mxu1 %v1399_v57 }
  0x53   :  { %623 = vmatmul.mubr.bf16.gmra.mrb[24].mxu0 %v1401_v58 }
  0x54   :  { %744 = vmatmul.mubr.bf16.gmra.mrb[24].mxu1 %v1402_v59  ;;  %630 = vmatprep.mubr.bf16.mxu0 %v1403_v60 }
  0x55   :  { %751 = vmatprep.mubr.bf16.mxu1 %v1405_v61 }
  0x5b   :  { %631 = vmatmul.mubr.bf16.gmra.mrb[28].mxu0 %v1407_v62 }
  0x5c   :  { %752 = vmatmul.mubr.bf16.gmra.mrb[28].mxu1 %v1408_v63  ;;  %638 = vmatprep.mubr.bf16.mxu0 %v1409_v0 }
  0x5d   :  { %759 = vmatprep.mubr.bf16.mxu1 %v1411_v1 }
  0x63   :  { %639 = vmatmul.mubr.bf16.gmra.mrb[32].mxu0 %v1413_v2 }
  0x64   :  { %760 = vmatmul.mubr.bf16.gmra.mrb[32].mxu1 %v1414_v3  ;;  %646 = vmatprep.mubr.bf16.mxu0 %v1415_v4 }
  0x65   :  { %767 = vmatprep.mubr.bf16.mxu1 %v1417_v5 }
  0x6b   :  { %647 = vmatmul.mubr.bf16.gmra.mrb[36].mxu0 %v1419_v6 }
  0x6c   :  { %768 = vmatmul.mubr.bf16.gmra.mrb[36].mxu1 %v1420_v7  ;;  %654 = vmatprep.mubr.bf16.mxu0 %v1421_v8 }
  0x6d   :  { %775 = vmatprep.mubr.bf16.mxu1 %v1423_v9 }
  0x73   :  { %655 = vmatmul.mubr.bf16.gmra.mrb[40].mxu0 %v1425_v10 }
  0x74   :  { %776 = vmatmul.mubr.bf16.gmra.mrb[40].mxu1 %v1426_v11 }
  0xf6   :  { %v1181_v12 = vpop.f32.mrb[0].mxu0 }
  0xf7   :  { %v1263_v13 = vpop.f32.mrb[0].mxu1  ;;  %v1182_v15 = vpop.f32.mrb[1].mxu0 }
  0xf8   :  { %v1183_v16 = vadd.f32 %v1182_v15, %v1181_v12  ;;  %v1264_v17 = vpop.f32.mrb[1].mxu1  ;;  %v1184_v18 = vpop.f32.mrb[2].mxu0 }
  0xf9   :  { %v1265_v19 = vadd.f32 %v1264_v17, %v1263_v13  ;;  %v1266_v20 = vpop.f32.mrb[2].mxu1  ;;  %v1185_v21 = vpop.f32.mrb[3].mxu0 }
  0xfa   :  { %v577_v22 = vadd.f32 %v1183_v16, %v1678_v14  ;;  %v1186_v23 = vadd.f32 %v1185_v21, %v1184_v18  ;;  %v1267_v24 = vpop.f32.mrb[3].mxu1 }
  0xfb   :  { %v1268_v25 = vadd.f32 %v1267_v24, %v1266_v20 }
  0xfc   :  { %v698_v26 = vadd.f32 %v1265_v19, %v577_v22  ;;  %v580_v27 = vadd.f32 %v1186_v23, %v1678_v14 }
  0xfe   :  { %v784_v28 = vmax.f32 %v698_v26, 0.0  ;;  %v701_v29 = vadd.f32 %v1268_v25, %v580_v27  ;;  %v1187_v30 = vpop.f32.mrb[4].mxu0 }
  0xff   :  { %v1269_v31 = vpop.f32.mrb[4].mxu1  ;;  %v1188_v32 = vpop.f32.mrb[5].mxu0 }
 0x100   :  { %v1143_v33 = vpack.c.bf16 %v784_v28, %v784_v28  ;;  %v785_v34 = vmax.f32 %v701_v29, 0.0  ;;  %v1189_v35 = vadd.f32 %v1188_v32, %v1187_v30  ;;  %v1270_v36 = vpop.f32.mrb[5].mxu1  ;;  %v1190_v37 = vpop.f32.mrb[6].mxu0 }
 0x101   :  { %v1271_v38 = vadd.f32 %v1270_v36, %v1269_v31  ;;  %v1272_v39 = vpop.f32.mrb[6].mxu1  ;;  %v1191_v40 = vpop.f32.mrb[7].mxu0 }
 0x102   :  { %895 = vst.msk [vmem:[#allocation2] sm:$0xf] %vm894_vm0, %v1143_v33  ;;  %v1144_v41 = vpack.c.bf16 %v785_v34, %v785_v34  ;;  %v585_v42 = vadd.f32 %v1189_v35, %v1678_v14  ;;  %v1192_v43 = vadd.f32 %v1191_v40, %v1190_v37  ;;  %v1273_v44 = vpop.f32.mrb[7].mxu1 }
 0x103   :  { %v1274_v45 = vadd.f32 %v1273_v44, %v1272_v39 }
 0x104   :  { %896 = vst.msk [vmem:[#allocation2 + $0x4] sm:$0xf] %vm894_vm0, %v1144_v41  ;;  %v706_v46 = vadd.f32 %v1271_v38, %v585_v42  ;;  %v588_v47 = vadd.f32 %v1192_v43, %v1678_v14 }
 0x106   :  { %v786_v48 = vmax.f32 %v706_v46, 0.0  ;;  %v709_v49 = vadd.f32 %v1274_v45, %v588_v47  ;;  %v1193_v50 = vpop.f32.mrb[8].mxu0 }
 0x107   :  { %v1275_v51 = vpop.f32.mrb[8].mxu1  ;;  %v1194_v52 = vpop.f32.mrb[9].mxu0 }
 0x108   :  { %v1145_v53 = vpack.c.bf16 %v786_v48, %v786_v48  ;;  %v787_v54 = vmax.f32 %v709_v49, 0.0  ;;  %v1195_v55 = vadd.f32 %v1194_v52, %v1193_v50  ;;  %v1276_v56 = vpop.f32.mrb[9].mxu1  ;;  %v1196_v57 = vpop.f32.mrb[10].mxu0 }
 0x109   :  { %v934_v58 = vld [vmem:[#allocation2] sm:$0xf]  ;;  %v1277_v59 = vadd.f32 %v1276_v56, %v1275_v51  ;;  %v1278_v60 = vpop.f32.mrb[10].mxu1  ;;  %v1197_v61 = vpop.f32.mrb[11].mxu0 }
 0x10a   :  { %935 = vst [vmem:[%s1788_s3] sm:$0xf] %v934_v58  ;;  %897 = vst.msk [vmem:[#allocation2 + $0x8] sm:$0xf] %vm894_vm0, %v1145_v53  ;;  %v1146_v62 = vpack.c.bf16 %v787_v54, %v787_v54  ;;  %v593_v63 = vadd.f32 %v1195_v55, %v1678_v14  ;;  %v1198_v0 = vadd.f32 %v1197_v61, %v1196_v57  ;;  %v1279_v1 = vpop.f32.mrb[11].mxu1 }
 0x10b   :  { %v936_v2 = vld [vmem:[#allocation2 + $0x4] sm:$0xf]  ;;  %v1280_v3 = vadd.f32 %v1279_v1, %v1278_v60 }
 0x10c   :  { %937 = vst [vmem:[%s1788_s3 + $0x4] sm:$0xf] %v936_v2  ;;  %898 = vst.msk [vmem:[#allocation2 + $0xc] sm:$0xf] %vm894_vm0, %v1146_v62  ;;  %v714_v4 = vadd.f32 %v1277_v59, %v593_v63  ;;  %v596_v5 = vadd.f32 %v1198_v0, %v1678_v14 }
 0x10e   :  { %v788_v6 = vmax.f32 %v714_v4, 0.0  ;;  %v717_v7 = vadd.f32 %v1280_v3, %v596_v5  ;;  %v1199_v8 = vpop.f32.mrb[12].mxu0 }
 0x10f   :  { %v1281_v9 = vpop.f32.mrb[12].mxu1  ;;  %v1200_v10 = vpop.f32.mrb[13].mxu0 }
 0x110   :  { %v1147_v11 = vpack.c.bf16 %v788_v6, %v788_v6  ;;  %v789_v12 = vmax.f32 %v717_v7, 0.0  ;;  %v1201_v13 = vadd.f32 %v1200_v10, %v1199_v8  ;;  %v1282_v15 = vpop.f32.mrb[13].mxu1  ;;  %v1202_v16 = vpop.f32.mrb[14].mxu0 }
 0x111   :  { %v938_v17 = vld [vmem:[#allocation2 + $0x8] sm:$0xf]  ;;  %v1283_v18 = vadd.f32 %v1282_v15, %v1281_v9  ;;  %v1284_v19 = vpop.f32.mrb[14].mxu1  ;;  %v1203_v20 = vpop.f32.mrb[15].mxu0 }
 0x112   :  { %939 = vst [vmem:[%s1788_s3 + $0x8] sm:$0xf] %v938_v17  ;;  %899 = vst.msk [vmem:[#allocation2 + $0x10] sm:$0xf] %vm894_vm0, %v1147_v11  ;;  %v1148_v21 = vpack.c.bf16 %v789_v12, %v789_v12  ;;  %v601_v22 = vadd.f32 %v1201_v13, %v1678_v14  ;;  %v1204_v23 = vadd.f32 %v1203_v20, %v1202_v16  ;;  %v1285_v24 = vpop.f32.mrb[15].mxu1 }
 0x113   :  { %v940_v25 = vld [vmem:[#allocation2 + $0xc] sm:$0xf]  ;;  %v1286_v26 = vadd.f32 %v1285_v24, %v1284_v19 }
 0x114   :  { %941 = vst [vmem:[%s1788_s3 + $0xc] sm:$0xf] %v940_v25  ;;  %900 = vst.msk [vmem:[#allocation2 + $0x14] sm:$0xf] %vm894_vm0, %v1148_v21  ;;  %v722_v27 = vadd.f32 %v1283_v18, %v601_v22  ;;  %v604_v28 = vadd.f32 %v1204_v23, %v1678_v14 }
 0x116   :  { %v790_v29 = vmax.f32 %v722_v27, 0.0  ;;  %v725_v30 = vadd.f32 %v1286_v26, %v604_v28  ;;  %v1205_v31 = vpop.f32.mrb[16].mxu0 }
 0x117   :  { %v1287_v32 = vpop.f32.mrb[16].mxu1  ;;  %v1206_v33 = vpop.f32.mrb[17].mxu0 }
 0x118   :  { %v1149_v34 = vpack.c.bf16 %v790_v29, %v790_v29  ;;  %v791_v35 = vmax.f32 %v725_v30, 0.0  ;;  %v1207_v36 = vadd.f32 %v1206_v33, %v1205_v31  ;;  %v1288_v37 = vpop.f32.mrb[17].mxu1  ;;  %v1208_v38 = vpop.f32.mrb[18].mxu0 }
 0x119   :  { %v942_v39 = vld [vmem:[#allocation2 + $0x10] sm:$0xf]  ;;  %v1289_v40 = vadd.f32 %v1288_v37, %v1287_v32  ;;  %v1290_v41 = vpop.f32.mrb[18].mxu1  ;;  %v1209_v42 = vpop.f32.mrb[19].mxu0 }
 0x11a   :  { %943 = vst [vmem:[%s1788_s3 + $0x10] sm:$0xf] %v942_v39  ;;  %901 = vst.msk [vmem:[#allocation2 + $0x18] sm:$0xf] %vm894_vm0, %v1149_v34  ;;  %v1150_v43 = vpack.c.bf16 %v791_v35, %v791_v35  ;;  %v609_v44 = vadd.f32 %v1207_v36, %v1678_v14  ;;  %v1210_v45 = vadd.f32 %v1209_v42, %v1208_v38  ;;  %v1291_v46 = vpop.f32.mrb[19].mxu1 }
 0x11b   :  { %v944_v47 = vld [vmem:[#allocation2 + $0x14] sm:$0xf]  ;;  %v1292_v48 = vadd.f32 %v1291_v46, %v1290_v41 }
 0x11c   :  { %945 = vst [vmem:[%s1788_s3 + $0x14] sm:$0xf] %v944_v47  ;;  %902 = vst.msk [vmem:[#allocation2 + $0x1c] sm:$0xf] %vm894_vm0, %v1150_v43  ;;  %v730_v49 = vadd.f32 %v1289_v40, %v609_v44  ;;  %v612_v50 = vadd.f32 %v1210_v45, %v1678_v14 }
 0x11e   :  { %v792_v51 = vmax.f32 %v730_v49, 0.0  ;;  %v733_v52 = vadd.f32 %v1292_v48, %v612_v50  ;;  %v1211_v53 = vpop.f32.mrb[20].mxu0 }
 0x11f   :  { %v1293_v54 = vpop.f32.mrb[20].mxu1  ;;  %v1212_v55 = vpop.f32.mrb[21].mxu0 }
 0x120   :  { %v1151_v56 = vpack.c.bf16 %v792_v51, %v792_v51  ;;  %v793_v57 = vmax.f32 %v733_v52, 0.0  ;;  %v1213_v58 = vadd.f32 %v1212_v55, %v1211_v53  ;;  %v1294_v59 = vpop.f32.mrb[21].mxu1  ;;  %v1214_v60 = vpop.f32.mrb[22].mxu0 }
 0x121   :  { %v946_v61 = vld [vmem:[#allocation2 + $0x18] sm:$0xf]  ;;  %v1295_v62 = vadd.f32 %v1294_v59, %v1293_v54  ;;  %v1296_v63 = vpop.f32.mrb[22].mxu1  ;;  %v1215_v0 = vpop.f32.mrb[23].mxu0 }
 0x122   :  { %947 = vst [vmem:[%s1788_s3 + $0x18] sm:$0xf] %v946_v61  ;;  %903 = vst.msk [vmem:[#allocation2 + $0x20] sm:$0xf] %vm894_vm0, %v1151_v56  ;;  %v1152_v1 = vpack.c.bf16 %v793_v57, %v793_v57  ;;  %v617_v2 = vadd.f32 %v1213_v58, %v1678_v14  ;;  %v1216_v3 = vadd.f32 %v1215_v0, %v1214_v60  ;;  %v1297_v4 = vpop.f32.mrb[23].mxu1 }
 0x123   :  { %v948_v5 = vld [vmem:[#allocation2 + $0x1c] sm:$0xf]  ;;  %v1298_v6 = vadd.f32 %v1297_v4, %v1296_v63 }
 0x124   :  { %949 = vst [vmem:[%s1788_s3 + $0x1c] sm:$0xf] %v948_v5  ;;  %904 = vst.msk [vmem:[#allocation2 + $0x24] sm:$0xf] %vm894_vm0, %v1152_v1  ;;  %v738_v7 = vadd.f32 %v1295_v62, %v617_v2  ;;  %v620_v8 = vadd.f32 %v1216_v3, %v1678_v14 }
 0x126   :  { %v794_v9 = vmax.f32 %v738_v7, 0.0  ;;  %v741_v10 = vadd.f32 %v1298_v6, %v620_v8  ;;  %v1217_v11 = vpop.f32.mrb[24].mxu0 }
 0x127   :  { %v1299_v12 = vpop.f32.mrb[24].mxu1  ;;  %v1218_v13 = vpop.f32.mrb[25].mxu0 }
 0x128   :  { %v1153_v15 = vpack.c.bf16 %v794_v9, %v794_v9  ;;  %v795_v16 = vmax.f32 %v741_v10, 0.0  ;;  %v1219_v17 = vadd.f32 %v1218_v13, %v1217_v11  ;;  %v1300_v18 = vpop.f32.mrb[25].mxu1  ;;  %v1220_v19 = vpop.f32.mrb[26].mxu0 }
 0x129   :  { %v950_v20 = vld [vmem:[#allocation2 + $0x20] sm:$0xf]  ;;  %v1301_v21 = vadd.f32 %v1300_v18, %v1299_v12  ;;  %v1302_v22 = vpop.f32.mrb[26].mxu1  ;;  %v1221_v23 = vpop.f32.mrb[27].mxu0 }
 0x12a   :  { %951 = vst [vmem:[%s1788_s3 + $0x20] sm:$0xf] %v950_v20  ;;  %905 = vst.msk [vmem:[#allocation2 + $0x28] sm:$0xf] %vm894_vm0, %v1153_v15  ;;  %v1154_v24 = vpack.c.bf16 %v795_v16, %v795_v16  ;;  %v625_v25 = vadd.f32 %v1219_v17, %v1678_v14  ;;  %v1222_v26 = vadd.f32 %v1221_v23, %v1220_v19  ;;  %v1303_v27 = vpop.f32.mrb[27].mxu1 }
 0x12b   :  { %v952_v28 = vld [vmem:[#allocation2 + $0x24] sm:$0xf]  ;;  %v1304_v29 = vadd.f32 %v1303_v27, %v1302_v22 }
 0x12c   :  { %953 = vst [vmem:[%s1788_s3 + $0x24] sm:$0xf] %v952_v28  ;;  %906 = vst.msk [vmem:[#allocation2 + $0x2c] sm:$0xf] %vm894_vm0, %v1154_v24  ;;  %v746_v30 = vadd.f32 %v1301_v21, %v625_v25  ;;  %v628_v31 = vadd.f32 %v1222_v26, %v1678_v14 }
 0x12e   :  { %v796_v32 = vmax.f32 %v746_v30, 0.0  ;;  %v749_v33 = vadd.f32 %v1304_v29, %v628_v31  ;;  %v1223_v34 = vpop.f32.mrb[28].mxu0 }
 0x12f   :  { %v1305_v35 = vpop.f32.mrb[28].mxu1  ;;  %v1224_v36 = vpop.f32.mrb[29].mxu0 }
 0x130   :  { %v1155_v37 = vpack.c.bf16 %v796_v32, %v796_v32  ;;  %v797_v38 = vmax.f32 %v749_v33, 0.0  ;;  %v1225_v39 = vadd.f32 %v1224_v36, %v1223_v34  ;;  %v1306_v40 = vpop.f32.mrb[29].mxu1  ;;  %v1226_v41 = vpop.f32.mrb[30].mxu0 }
 0x131   :  { %v954_v42 = vld [vmem:[#allocation2 + $0x28] sm:$0xf]  ;;  %v1307_v43 = vadd.f32 %v1306_v40, %v1305_v35  ;;  %v1308_v44 = vpop.f32.mrb[30].mxu1  ;;  %v1227_v45 = vpop.f32.mrb[31].mxu0 }
 0x132   :  { %955 = vst [vmem:[%s1788_s3 + $0x28] sm:$0xf] %v954_v42  ;;  %907 = vst.msk [vmem:[#allocation2 + $0x30] sm:$0xf] %vm894_vm0, %v1155_v37  ;;  %v1156_v46 = vpack.c.bf16 %v797_v38, %v797_v38  ;;  %v633_v47 = vadd.f32 %v1225_v39, %v1678_v14  ;;  %v1228_v48 = vadd.f32 %v1227_v45, %v1226_v41  ;;  %v1309_v49 = vpop.f32.mrb[31].mxu1 }
 0x133   :  { %v956_v50 = vld [vmem:[#allocation2 + $0x2c] sm:$0xf]  ;;  %v1310_v51 = vadd.f32 %v1309_v49, %v1308_v44 }
 0x134   :  { %957 = vst [vmem:[%s1788_s3 + $0x2c] sm:$0xf] %v956_v50  ;;  %908 = vst.msk [vmem:[#allocation2 + $0x34] sm:$0xf] %vm894_vm0, %v1156_v46  ;;  %v754_v52 = vadd.f32 %v1307_v43, %v633_v47  ;;  %v636_v53 = vadd.f32 %v1228_v48, %v1678_v14 }
 0x136   :  { %v798_v54 = vmax.f32 %v754_v52, 0.0  ;;  %v757_v55 = vadd.f32 %v1310_v51, %v636_v53  ;;  %v1229_v56 = vpop.f32.mrb[32].mxu0 }
 0x137   :  { %v1311_v57 = vpop.f32.mrb[32].mxu1  ;;  %v1230_v58 = vpop.f32.mrb[33].mxu0 }
 0x138   :  { %v1157_v59 = vpack.c.bf16 %v798_v54, %v798_v54  ;;  %v799_v60 = vmax.f32 %v757_v55, 0.0  ;;  %v1231_v61 = vadd.f32 %v1230_v58, %v1229_v56  ;;  %v1312_v62 = vpop.f32.mrb[33].mxu1  ;;  %v1232_v63 = vpop.f32.mrb[34].mxu0 }
 0x139   :  { %v958_v0 = vld [vmem:[#allocation2 + $0x30] sm:$0xf]  ;;  %v1313_v1 = vadd.f32 %v1312_v62, %v1311_v57  ;;  %v1314_v2 = vpop.f32.mrb[34].mxu1  ;;  %v1233_v3 = vpop.f32.mrb[35].mxu0 }
 0x13a   :  { %959 = vst [vmem:[%s1788_s3 + $0x30] sm:$0xf] %v958_v0  ;;  %909 = vst.msk [vmem:[#allocation2 + $0x38] sm:$0xf] %vm894_vm0, %v1157_v59  ;;  %v1158_v4 = vpack.c.bf16 %v799_v60, %v799_v60  ;;  %v641_v5 = vadd.f32 %v1231_v61, %v1678_v14  ;;  %v1234_v6 = vadd.f32 %v1233_v3, %v1232_v63  ;;  %v1315_v7 = vpop.f32.mrb[35].mxu1 }
 0x13b   :  { %v960_v8 = vld [vmem:[#allocation2 + $0x34] sm:$0xf]  ;;  %v1316_v9 = vadd.f32 %v1315_v7, %v1314_v2 }
 0x13c   :  { %961 = vst [vmem:[%s1788_s3 + $0x34] sm:$0xf] %v960_v8  ;;  %910 = vst.msk [vmem:[#allocation2 + $0x3c] sm:$0xf] %vm894_vm0, %v1158_v4  ;;  %v762_v10 = vadd.f32 %v1313_v1, %v641_v5  ;;  %v644_v11 = vadd.f32 %v1234_v6, %v1678_v14 }
 0x13e   :  { %v800_v12 = vmax.f32 %v762_v10, 0.0  ;;  %v765_v13 = vadd.f32 %v1316_v9, %v644_v11  ;;  %v1235_v15 = vpop.f32.mrb[36].mxu0 }
 0x13f   :  { %v1317_v16 = vpop.f32.mrb[36].mxu1  ;;  %v1236_v17 = vpop.f32.mrb[37].mxu0 }
 0x140   :  { %v1159_v18 = vpack.c.bf16 %v800_v12, %v800_v12  ;;  %v801_v19 = vmax.f32 %v765_v13, 0.0  ;;  %v1237_v20 = vadd.f32 %v1236_v17, %v1235_v15  ;;  %v1318_v21 = vpop.f32.mrb[37].mxu1  ;;  %v1238_v22 = vpop.f32.mrb[38].mxu0 }
 0x141   :  { %v962_v23 = vld [vmem:[#allocation2 + $0x38] sm:$0xf]  ;;  %v1319_v24 = vadd.f32 %v1318_v21, %v1317_v16  ;;  %v1320_v25 = vpop.f32.mrb[38].mxu1  ;;  %v1239_v26 = vpop.f32.mrb[39].mxu0 }
 0x142   :  { %963 = vst [vmem:[%s1788_s3 + $0x38] sm:$0xf] %v962_v23  ;;  %911 = vst.msk [vmem:[#allocation2 + $0x40] sm:$0xf] %vm894_vm0, %v1159_v18  ;;  %v1160_v27 = vpack.c.bf16 %v801_v19, %v801_v19  ;;  %v649_v28 = vadd.f32 %v1237_v20, %v1678_v14  ;;  %v1240_v29 = vadd.f32 %v1239_v26, %v1238_v22  ;;  %v1321_v30 = vpop.f32.mrb[39].mxu1 }
 0x143   :  { %v964_v31 = vld [vmem:[#allocation2 + $0x3c] sm:$0xf]  ;;  %v1322_v32 = vadd.f32 %v1321_v30, %v1320_v25 }
 0x144   :  { %965 = vst [vmem:[%s1788_s3 + $0x3c] sm:$0xf] %v964_v31  ;;  %912 = vst.msk [vmem:[#allocation2 + $0x44] sm:$0xf] %vm894_vm0, %v1160_v27  ;;  %v770_v33 = vadd.f32 %v1319_v24, %v649_v28  ;;  %v652_v34 = vadd.f32 %v1240_v29, %v1678_v14 }
 0x146   :  { %v802_v35 = vmax.f32 %v770_v33, 0.0  ;;  %v773_v36 = vadd.f32 %v1322_v32, %v652_v34  ;;  %v1241_v37 = vpop.f32.mrb[40].mxu0 }
 0x147   :  { %v1323_v38 = vpop.f32.mrb[40].mxu1  ;;  %v1242_v39 = vpop.f32.mrb[41].mxu0 }
 0x148   :  { %v1161_v40 = vpack.c.bf16 %v802_v35, %v802_v35  ;;  %v803_v41 = vmax.f32 %v773_v36, 0.0  ;;  %v1243_v42 = vadd.f32 %v1242_v39, %v1241_v37  ;;  %v1324_v43 = vpop.f32.mrb[41].mxu1  ;;  %v1244_v44 = vpop.f32.mrb[42].mxu0 }
 0x149   :  { %v966_v45 = vld [vmem:[#allocation2 + $0x40] sm:$0xf]  ;;  %v1325_v46 = vadd.f32 %v1324_v43, %v1323_v38  ;;  %v1326_v47 = vpop.f32.mrb[42].mxu1  ;;  %v1245_v48 = vpop.f32.mrb[43].mxu0 }
 0x14a   :  { %967 = vst [vmem:[%s1788_s3 + $0x40] sm:$0xf] %v966_v45  ;;  %913 = vst.msk [vmem:[#allocation2 + $0x48] sm:$0xf] %vm894_vm0, %v1161_v40  ;;  %v1162_v49 = vpack.c.bf16 %v803_v41, %v803_v41  ;;  %v657_v50 = vadd.f32 %v1243_v42, %v1678_v14  ;;  %v1327_v51 = vpop.f32.mrb[43].mxu1 }
 0x14b   :  { %v968_v52 = vld [vmem:[#allocation2 + $0x44] sm:$0xf] }
 0x14c   :  { %969 = vst [vmem:[%s1788_s3 + $0x44] sm:$0xf] %v968_v52  ;;  %914 = vst.msk [vmem:[#allocation2 + $0x4c] sm:$0xf] %vm894_vm0, %v1162_v49  ;;  %v778_v53 = vadd.f32 %v1325_v46, %v657_v50 }
 0x14e   :  { %v804_v54 = vmax.f32 %v778_v53, 0.0 }
 0x150   :  { %v1163_v55 = vpack.c.bf16 %v804_v54, %v804_v54 }
 0x151   :  { %v970_v56 = vld [vmem:[#allocation2 + $0x48] sm:$0xf] }
 0x152   :  { %971 = vst [vmem:[%s1788_s3 + $0x48] sm:$0xf] %v970_v56  ;;  %915 = vst.msk [vmem:[#allocation2 + $0x50] sm:$0xf] %vm894_vm0, %v1163_v55 }
 0x153   :  { %v972_v57 = vld [vmem:[#allocation2 + $0x4c] sm:$0xf] }
 0x154   :  { %973 = vst [vmem:[%s1788_s3 + $0x4c] sm:$0xf] %v972_v57 }
 0x159   :  { %v974_v14 = vld [vmem:[#allocation2 + $0x50] sm:$0xf] }
 0x15a   :  { %975 = vst [vmem:[%s1788_s3 + $0x50] sm:$0xf] %v974_v14 }

// kernel: dqn_forward.6
= control target key start
LH: loop header
LB: loop body
LE: loop exit
PB: predicated region body
PF: predicated region fallthrough
CT: control target
= control target key end

     0   :  { %v1361_v34 = vmov 0.0   ;;  %vm1362_vm0 = vmmov 0   ;;  %vm527_vm1 = vcmask 523264   ;;  %vm886_vm2 = vcmask 519168   ;;  %s1719_s0 = inlined_call_operand.vmem [shape: bf16[98,576], index: 0, kind: input, shape index: {}]   ;;  %s1720_s1 = inlined_call_operand.vmem [shape: bf16[576,64], index: 1, kind: input, shape index: {}]   ;;  %s1721_s2 = inlined_call_operand.vmem [shape: f32[1,64], index: 2, kind: input, shape index: {}]   ;;  %s1722_s3 = inlined_call_operand.vmem [shape: bf16[98,64], index: 3, kind: output, shape index: {}]  }
   0x1   :  { %v1276_v0 = vld [vmem:[%s1720_s1 + $0x40] sm:$0xff]   ;;  %v1280_v4 = vld [vmem:[%s1720_s1 + $0x48] sm:$0xff]   ;;  %v1284_v8 = vld [vmem:[%s1720_s1 + $0x50] sm:$0xff]  }
   0x2   :  { %v1277_v1 = vld [vmem:[%s1720_s1 + $0xc0] sm:$0xff]   ;;  %1103 = vmatprep.subr.bf16.mxu0 %v1276_v0  ;;  %v1281_v5 = vld [vmem:[%s1720_s1 + $0xc8] sm:$0xff]   ;;  %v1285_v9 = vld [vmem:[%s1720_s1 + $0xd0] sm:$0xff]  }
   0x3   :  { %v1278_v2 = vld [vmem:[%s1720_s1] sm:$0xff]   ;;  %1161 = vmatprep.subr.bf16.mxu1 %v1277_v1  ;;  %v1282_v6 = vld [vmem:[%s1720_s1 + $0x8] sm:$0xff]   ;;  %v1286_v10 = vld [vmem:[%s1720_s1 + $0x10] sm:$0xff]  }
   0x4   :  { %v1279_v3 = vld [vmem:[%s1720_s1 + $0x80] sm:$0xff]   ;;  %1104 = vmatpush3.bf16.msra.mxu0 %v1278_v2  ;;  %v1283_v7 = vld [vmem:[%s1720_s1 + $0x88] sm:$0xff]   ;;  %v1287_v11 = vld [vmem:[%s1720_s1 + $0x90] sm:$0xff]  }
   0x5   :  { %1162 = vmatpush3.bf16.msra.mxu1 %v1279_v3  ;;  %1105 = vmatprep.subr.bf16.mxu0 %v1280_v4  ;;  %v1288_v12 = vld [vmem:[%s1720_s1 + $0x58] sm:$0xff]   ;;  %v1292_v16 = vld [vmem:[%s1720_s1 + $0x60] sm:$0xff]   ;;  %v1296_v20 = vld [vmem:[%s1720_s1 + $0x68] sm:$0xff]  }
   0x6   :  { %1163 = vmatprep.subr.bf16.mxu1 %v1281_v5  ;;  %v1289_v13 = vld [vmem:[%s1720_s1 + $0xd8] sm:$0xff]   ;;  %v1293_v17 = vld [vmem:[%s1720_s1 + $0xe0] sm:$0xff]   ;;  %v1297_v21 = vld [vmem:[%s1720_s1 + $0xe8] sm:$0xff]  }
   0x7   :  { %v1290_v14 = vld [vmem:[%s1720_s1 + $0x18] sm:$0xff]   ;;  %v1294_v18 = vld [vmem:[%s1720_s1 + $0x20] sm:$0xff]   ;;  %v1298_v22 = vld [vmem:[%s1720_s1 + $0x28] sm:$0xff]  }
   0x8   :  { %1106 = vmatpush3.bf16.msra.mxu0 %v1282_v6  ;;  %v1291_v15 = vld [vmem:[%s1720_s1 + $0x98] sm:$0xff]   ;;  %v1295_v19 = vld [vmem:[%s1720_s1 + $0xa0] sm:$0xff]   ;;  %v1299_v23 = vld [vmem:[%s1720_s1 + $0xa8] sm:$0xff]  }
   0x9   :  { %1164 = vmatpush3.bf16.msra.mxu1 %v1283_v7  ;;  %1107 = vmatprep.subr.bf16.mxu0 %v1284_v8  ;;  %v1300_v24 = vld [vmem:[%s1720_s1 + $0x70] sm:$0xff]   ;;  %v1304_v28 = vld [vmem:[%s1720_s1 + $0x78] sm:$0xff]   ;;  %v1313_v36 = vld [vmem:[%s1719_s0 + $0xc] ss:$20 sps:$4 sm:$0xff]  }
   0xa   :  { %1165 = vmatprep.subr.bf16.mxu1 %v1285_v9  ;;  %v1301_v25 = vld [vmem:[%s1720_s1 + $0xf0] sm:$0xff]   ;;  %v1305_v29 = vld [vmem:[%s1720_s1 + $0xf8] sm:$0xff]   ;;  %v1314_v37 = vld [vmem:[%s1720_s1 + $0x100] sm:$0xff]   ;;  %670 = vmatprep.mubr.bf16.mxu1 %v1313_v36 }
   0xb   :  { %v1302_v26 = vld [vmem:[%s1720_s1 + $0x30] sm:$0xff]   ;;  %v1306_v30 = vld [vmem:[%s1720_s1 + $0x38] sm:$0xff]   ;;  %v1315_v38 = vld [vmem:[%s1719_s0 + $0x2c] ss:$20 sps:$4 sm:$0xff]  }
   0xc   :  { %1108 = vmatpush3.bf16.msra.mxu0 %v1286_v10  ;;  %v1303_v27 = vld [vmem:[%s1720_s1 + $0xb0] sm:$0xff]   ;;  %v1307_v31 = vld [vmem:[%s1720_s1 + $0xb8] sm:$0xff]   ;;  %v1325_v43 = vld [vmem:[%s1720_s1 + $0x108] sm:$0xff]  }
   0xd   :  { %1166 = vmatpush3.bf16.msra.mxu1 %v1287_v11  ;;  %1109 = vmatprep.subr.bf16.mxu0 %v1288_v12  ;;  %v1308_v32 = vld [vmem:[%s1719_s0] ss:$20 sps:$4 sm:$0xff]   ;;  %v1310_v33 = vld [vmem:[%s1719_s0 + $0x4] ss:$20 sps:$4 sm:$0xff]   ;;  %v1311_v35 = vld [vmem:[%s1719_s0 + $0x8] ss:$20 sps:$4 sm:$0xff]  }
   0xe   :  { %1167 = vmatprep.subr.bf16.mxu1 %v1289_v13  ;;  %581 = vmatprep.mubr.bf16.mxu0 %v1310_v33  ;;  %v1317_v39 = vld [vmem:[%s1719_s0 + $0x34] ss:$20 sps:$4 sm:$0xff]   ;;  %v1320_v41 = vld [vmem:[%s1719_s0 + $0x30] ss:$20 sps:$4 sm:$0xff]   ;;  %v1327_v47 = vld [vmem:[%s1719_s0 + $0x58] ss:$20 sps:$4 sm:$0xff]  }
   0xf   :  { %v1319_v40 = vld [vmem:[%s1719_s0 + $0x28] ss:$20 sps:$4 sm:$0xff]   ;;  %v1334_v45 = vld [vmem:[%s1720_s1 + $0x110] sm:$0xff]   ;;  %v1330_v49 = vld [vmem:[%s1719_s0 + $0x84] ss:$20 sps:$4 sm:$0xff]  }
  0x10   :  { %1110 = vmatpush3.bf16.msra.mxu0 %v1290_v14  ;;  %v1321_v42 = vld [vmem:[%s1719_s0 + $0x54] ss:$20 sps:$4 sm:$0xff]   ;;  %v1323_v44 = vld [vmem:[%s1719_s0 + $0x5c] ss:$20 sps:$4 sm:$0xff]   ;;  %v1332_v51 = vld [vmem:[%s1719_s0 + $0x78] ss:$20 sps:$4 sm:$0xff]  }
  0x11   :  { %1168 = vmatpush3.bf16.msra.mxu1 %v1291_v15  ;;  %1111 = vmatprep.subr.bf16.mxu0 %v1292_v16  ;;  %v1326_v46 = vld [vmem:[%s1719_s0 + $0x50] ss:$20 sps:$4 sm:$0xff]   ;;  %v1347_v50 = vld [vmem:[%s1720_s1 + $0x118] sm:$0xff]   ;;  %v1333_v52 = vld [vmem:[%s1719_s0 + $0x80] ss:$20 sps:$4 sm:$0xff]  }
  0x12   :  { %1169 = vmatprep.subr.bf16.mxu1 %v1293_v17  ;;  %v1328_v48 = vld [vmem:[%s1719_s0 + $0x7c] ss:$20 sps:$4 sm:$0xff]   ;;  %v1335_v53 = vld [vmem:[%s1719_s0 + $0xa4] ss:$20 sps:$4 sm:$0xff]   ;;  %v1337_v54 = vld [vmem:[%s1719_s0 + $0xac] ss:$20 sps:$4 sm:$0xff]  }
  0x13   :  { %v1339_v55 = vld [vmem:[%s1719_s0 + $0xa0] ss:$20 sps:$4 sm:$0xff]   ;;  %v1340_v56 = vld [vmem:[%s1719_s0 + $0xa8] ss:$20 sps:$4 sm:$0xff]   ;;  %v1346_v60 = vld [vmem:[%s1719_s0 + $0xd0] ss:$20 sps:$4 sm:$0xff]  }
  0x14   :  { %1112 = vmatpush3.bf16.msra.mxu0 %v1294_v18  ;;  %v1341_v57 = vld [vmem:[%s1719_s0 + $0xcc] ss:$20 sps:$4 sm:$0xff]   ;;  %v1343_v58 = vld [vmem:[%s1719_s0 + $0xd4] ss:$20 sps:$4 sm:$0xff]   ;;  %v1350_v62 = vld [vmem:[%s1719_s0 + $0xfc] ss:$20 sps:$4 sm:$0xff]  }
  0x15   :  { %1170 = vmatpush3.bf16.msra.mxu1 %v1295_v19  ;;  %1113 = vmatprep.subr.bf16.mxu0 %v1296_v20  ;;  %v1345_v59 = vld [vmem:[%s1719_s0 + $0xc8] ss:$20 sps:$4 sm:$0xff]   ;;  %v1352_v63 = vld [vmem:[%s1719_s0 + $0xf0] ss:$20 sps:$4 sm:$0xff]   ;;  %v1353_v0 = vld [vmem:[%s1719_s0 + $0xf8] ss:$20 sps:$4 sm:$0xff]  }
  0x16   :  { %1171 = vmatprep.subr.bf16.mxu1 %v1297_v21  ;;  %v1348_v61 = vld [vmem:[%s1719_s0 + $0xf4] ss:$20 sps:$4 sm:$0xff]   ;;  %v1354_v1 = vld [vmem:[%s1719_s0 + $0x10] ss:$20 sps:$4 sm:$0xff]   ;;  %v1356_v3 = vld [vmem:[%s1719_s0 + $0x38] ss:$20 sps:$4 sm:$0xff]  }
  0x17   :  { %v1355_v2 = vld [vmem:[%s1719_s0 + $0xb0] ss:$20 sps:$4 sm:$0xff]   ;;  %v1357_v4 = vld [vmem:[%s1719_s0 + $0xd8] ss:$20 sps:$4 sm:$0xff]   ;;  %v1358_v5 = vld [vmem:[%s1719_s0 + $0x60] ss:$20 sps:$4 sm:$0xff]  }
  0x18   :  { %1114 = vmatpush3.bf16.msra.mxu0 %v1298_v22  ;;  %v1359_v6 = vld [vmem:[%s1719_s0 + $0x100] ss:$20 sps:$4 sm:$0xff]   ;;  %v1360_v7 = vld [vmem:[%s1719_s0 + $0x88] ss:$20 sps:$4 sm:$0xff]  }
  0x19   :  { %1172 = vmatpush3.bf16.msra.mxu1 %v1299_v23  ;;  %1115 = vmatprep.subr.bf16.mxu0 %v1300_v24  ;;  %v1628_v9 = vld [vmem:[%s1721_s2] ss:$0 sm:$0xff] }
  0x1a   :  { %1173 = vmatprep.subr.bf16.mxu1 %v1301_v25 }
  0x1c   :  { %1116 = vmatpush3.bf16.msra.mxu0 %v1302_v26 }
  0x1d   :  { %1174 = vmatpush3.bf16.msra.mxu1 %v1303_v27  ;;  %1117 = vmatprep.subr.bf16.mxu0 %v1304_v28 }
  0x1e   :  { %1175 = vmatprep.subr.bf16.mxu1 %v1305_v29 }
  0x20   :  { %1118 = vmatpush3.bf16.msra.mxu0 %v1306_v30 }
  0x21   :  { %1176 = vmatpush3.bf16.msra.mxu1 %v1307_v31  ;;  %1230 = vmatprep.subr.bf16.mxu0 %v1361_v34 }
  0x22   :  { %1266 = vmatprep.subr.bf16.mxu1 %v1361_v34 }
  0x23   :  { %582 = vmatmul.mubr.bf16.vlgmr.msra.gmra.mrb[0].mxu0 %v1308_v32 }
  0x24   :  { %671 = vmatmul.mubr.bf16.vlgmr.msra.gmra.mrb[0].mxu1 %v1311_v35  ;;  %1231 = vmatpush3.bf16.msra.mxu0 %v1314_v37 }
  0x25   :  { %589 = vmatprep.mubr.bf16.mxu0 %v1315_v38  ;;  %1270 = vmatpush3.bf16.msra.mxu1 %v1314_v37 }
  0x26   :  { %678 = vmatprep.mubr.bf16.mxu1 %v1317_v39  ;;  %1232 = vmatprep.subr.bf16.mxu0 %v1361_v34 }
  0x27   :  { %1267 = vmatprep.subr.bf16.mxu1 %v1361_v34 }
  0x28   :  { %1233 = vmatpush3.bf16.msra.mxu0 %v1325_v43 }
  0x29   :  { %1271 = vmatpush3.bf16.msra.mxu1 %v1325_v43  ;;  %1234 = vmatprep.subr.bf16.mxu0 %v1361_v34 }
  0x2a   :  { %1268 = vmatprep.subr.bf16.mxu1 %v1361_v34 }
  0x2b   :  { %590 = vmatmul.mubr.bf16.gmra.mrb[4].mxu0 %v1319_v40 }
  0x2c   :  { %679 = vmatmul.mubr.bf16.gmra.mrb[4].mxu1 %v1320_v41  ;;  %597 = vmatprep.mubr.bf16.mxu0 %v1321_v42 }
  0x2d   :  { %686 = vmatprep.mubr.bf16.mxu1 %v1323_v44  ;;  %1235 = vmatpush3.bf16.msra.mxu0 %v1334_v45 }
  0x2e   :  { %1272 = vmatpush3.bf16.msra.mxu1 %v1334_v45  ;;  %1236 = vmatprep.subr.bf16.mxu0 %v1361_v34 }
  0x2f   :  { %1269 = vmatprep.subr.bf16.mxu1 %v1361_v34 }
  0x31   :  { %1237 = vmatpush3.bf16.msra.mxu0 %v1347_v50 }
  0x32   :  { %1273 = vmatpush3.bf16.msra.mxu1 %v1347_v50 }
  0x33   :  { %598 = vmatmul.mubr.bf16.gmra.mrb[8].mxu0 %v1326_v46 }
  0x34   :  { %687 = vmatmul.mubr.bf16.gmra.mrb[8].mxu1 %v1327_v47  ;;  %605 = vmatprep.mubr.bf16.mxu0 %v1328_v48 }
  0x35   :  { %694 = vmatprep.mubr.bf16.mxu1 %v1330_v49 }
  0x3b   :  { %606 = vmatmul.mubr.bf16.gmra.mrb[12].mxu0 %v1332_v51 }
  0x3c   :  { %695 = vmatmul.mubr.bf16.gmra.mrb[12].mxu1 %v1333_v52  ;;  %613 = vmatprep.mubr.bf16.mxu0 %v1335_v53 }
  0x3d   :  { %702 = vmatprep.mubr.bf16.mxu1 %v1337_v54 }
  0x43   :  { %614 = vmatmul.mubr.bf16.gmra.mrb[16].mxu0 %v1339_v55 }
  0x44   :  { %703 = vmatmul.mubr.bf16.gmra.mrb[16].mxu1 %v1340_v56  ;;  %621 = vmatprep.mubr.bf16.mxu0 %v1341_v57 }
  0x45   :  { %710 = vmatprep.mubr.bf16.mxu1 %v1343_v58 }
  0x4b   :  { %622 = vmatmul.mubr.bf16.gmra.mrb[20].mxu0 %v1345_v59 }
  0x4c   :  { %711 = vmatmul.mubr.bf16.gmra.mrb[20].mxu1 %v1346_v60  ;;  %629 = vmatprep.mubr.bf16.mxu0 %v1348_v61 }
  0x4d   :  { %718 = vmatprep.mubr.bf16.mxu1 %v1350_v62 }
  0x53   :  { %630 = vmatmul.mubr.bf16.gmra.mrb[24].mxu0 %v1352_v63 }
  0x54   :  { %719 = vmatmul.mubr.bf16.gmra.mrb[24].mxu1 %v1353_v0  ;;  %1238 = vmatprep.mubr.msk.bf16.mxu0 %vm1362_vm0, %v1361_v34 }
  0x55   :  { %1254 = vmatprep.mubr.msk.bf16.mxu1 %vm1362_vm0, %v1361_v34 }
  0x5b   :  { %1239 = vmatmul.mubr.msk.bf16.vlgmr.msra.gmra.mrb[28].mxu0 %vm527_vm1, %v1354_v1 }
  0x5c   :  { %1255 = vmatmul.mubr.msk.bf16.vlgmr.msra.gmra.mrb[28].mxu1 %vm527_vm1, %v1355_v2  ;;  %1242 = vmatprep.mubr.msk.bf16.mxu0 %vm1362_vm0, %v1361_v34 }
  0x5d   :  { %1258 = vmatprep.mubr.msk.bf16.mxu1 %vm1362_vm0, %v1361_v34 }
  0x63   :  { %1243 = vmatmul.mubr.msk.bf16.gmra.mrb[32].mxu0 %vm527_vm1, %v1356_v3 }
  0x64   :  { %1259 = vmatmul.mubr.msk.bf16.gmra.mrb[32].mxu1 %vm527_vm1, %v1357_v4  ;;  %1246 = vmatprep.mubr.msk.bf16.mxu0 %vm1362_vm0, %v1361_v34 }
  0x65   :  { %1262 = vmatprep.mubr.msk.bf16.mxu1 %vm1362_vm0, %v1361_v34 }
  0x6b   :  { %1247 = vmatmul.mubr.msk.bf16.gmra.mrb[36].mxu0 %vm527_vm1, %v1358_v5 }
  0x6c   :  { %1263 = vmatmul.mubr.msk.bf16.gmra.mrb[36].mxu1 %vm527_vm1, %v1359_v6  ;;  %1250 = vmatprep.mubr.msk.bf16.mxu0 %vm1362_vm0, %v1361_v34 }
  0x73   :  { %1251 = vmatmul.mubr.msk.bf16.gmra.mrb[40].mxu0 %vm527_vm1, %v1360_v7 }
  0xf6   :  { %v1119_v8 = vpop.f32.mrb[0].mxu0 }
  0xf7   :  { %v1120_v10 = vpop.f32.mrb[1].mxu0  ;;  %v1177_v11 = vpop.f32.mrb[0].mxu1 }
  0xf8   :  { %v1121_v12 = vadd.f32 %v1120_v10, %v1119_v8  ;;  %v1122_v13 = vpop.f32.mrb[2].mxu0  ;;  %v1178_v14 = vpop.f32.mrb[1].mxu1 }
  0xf9   :  { %v1123_v15 = vpop.f32.mrb[3].mxu0  ;;  %v1179_v16 = vadd.f32 %v1178_v14, %v1177_v11  ;;  %v1180_v17 = vpop.f32.mrb[2].mxu1 }
  0xfa   :  { %v584_v18 = vadd.f32 %v1121_v12, %v1628_v9  ;;  %v1124_v19 = vadd.f32 %v1123_v15, %v1122_v13  ;;  %v1181_v20 = vpop.f32.mrb[3].mxu1 }
  0xfb   :  { %v1182_v21 = vadd.f32 %v1181_v20, %v1180_v17 }
  0xfc   :  { %v587_v22 = vadd.f32 %v1124_v19, %v1628_v9  ;;  %v1632_v23 = vadd.f32 %v1179_v16, %v584_v18 }
  0xfe   :  { %v1125_v24 = vpop.f32.mrb[4].mxu0  ;;  %v1634_v25 = vadd.f32 %v1182_v21, %v587_v22 }
  0xff   :  { %v1126_v26 = vpop.f32.mrb[5].mxu0  ;;  %v1183_v27 = vpop.f32.mrb[4].mxu1 }
 0x100   :  { %v1127_v28 = vadd.f32 %v1126_v26, %v1125_v24  ;;  %v1128_v29 = vpop.f32.mrb[6].mxu0  ;;  %v1184_v30 = vpop.f32.mrb[5].mxu1 }
 0x101   :  { %v1129_v31 = vpop.f32.mrb[7].mxu0  ;;  %v1185_v32 = vadd.f32 %v1184_v30, %v1183_v27  ;;  %v1186_v33 = vpop.f32.mrb[6].mxu1 }
 0x102   :  { %v592_v34 = vadd.f32 %v1127_v28, %v1628_v9  ;;  %v1130_v35 = vadd.f32 %v1129_v31, %v1128_v29  ;;  %v1187_v36 = vpop.f32.mrb[7].mxu1 }
 0x103   :  { %v1188_v37 = vadd.f32 %v1187_v36, %v1186_v33 }
 0x104   :  { %v595_v38 = vadd.f32 %v1130_v35, %v1628_v9  ;;  %v1638_v39 = vadd.f32 %v1185_v32, %v592_v34 }
 0x106   :  { %v1131_v40 = vpop.f32.mrb[8].mxu0  ;;  %v1640_v41 = vadd.f32 %v1188_v37, %v595_v38 }
 0x107   :  { %v1132_v42 = vpop.f32.mrb[9].mxu0  ;;  %v1189_v43 = vpop.f32.mrb[8].mxu1 }
 0x108   :  { %v1133_v44 = vadd.f32 %v1132_v42, %v1131_v40  ;;  %v1134_v45 = vpop.f32.mrb[10].mxu0  ;;  %v1190_v46 = vpop.f32.mrb[9].mxu1 }
 0x109   :  { %v1135_v47 = vpop.f32.mrb[11].mxu0  ;;  %v1191_v48 = vadd.f32 %v1190_v46, %v1189_v43  ;;  %v1192_v49 = vpop.f32.mrb[10].mxu1 }
 0x10a   :  { %v600_v50 = vadd.f32 %v1133_v44, %v1628_v9  ;;  %v1136_v51 = vadd.f32 %v1135_v47, %v1134_v45  ;;  %v1193_v52 = vpop.f32.mrb[11].mxu1 }
 0x10b   :  { %v1194_v53 = vadd.f32 %v1193_v52, %v1192_v49 }
 0x10c   :  { %v603_v54 = vadd.f32 %v1136_v51, %v1628_v9  ;;  %v1644_v55 = vadd.f32 %v1191_v48, %v600_v50 }
 0x10e   :  { %v1137_v56 = vpop.f32.mrb[12].mxu0  ;;  %v1646_v57 = vadd.f32 %v1194_v53, %v603_v54 }
 0x10f   :  { %v1138_v58 = vpop.f32.mrb[13].mxu0  ;;  %v1195_v59 = vpop.f32.mrb[12].mxu1 }
 0x110   :  { %v1139_v60 = vadd.f32 %v1138_v58, %v1137_v56  ;;  %v1140_v61 = vpop.f32.mrb[14].mxu0  ;;  %v1196_v62 = vpop.f32.mrb[13].mxu1 }
 0x111   :  { %v1141_v63 = vpop.f32.mrb[15].mxu0  ;;  %v1197_v0 = vadd.f32 %v1196_v62, %v1195_v59  ;;  %v1198_v1 = vpop.f32.mrb[14].mxu1 }
 0x112   :  { %v608_v2 = vadd.f32 %v1139_v60, %v1628_v9  ;;  %v1142_v3 = vadd.f32 %v1141_v63, %v1140_v61  ;;  %v1199_v4 = vpop.f32.mrb[15].mxu1 }
 0x113   :  { %v1200_v5 = vadd.f32 %v1199_v4, %v1198_v1 }
 0x114   :  { %v611_v6 = vadd.f32 %v1142_v3, %v1628_v9  ;;  %v1650_v7 = vadd.f32 %v1197_v0, %v608_v2 }
 0x116   :  { %v1143_v8 = vpop.f32.mrb[16].mxu0  ;;  %v1652_v10 = vadd.f32 %v1200_v5, %v611_v6 }
 0x117   :  { %v1144_v11 = vpop.f32.mrb[17].mxu0  ;;  %v1201_v12 = vpop.f32.mrb[16].mxu1 }
 0x118   :  { %v1145_v13 = vadd.f32 %v1144_v11, %v1143_v8  ;;  %v1146_v14 = vpop.f32.mrb[18].mxu0  ;;  %v1202_v15 = vpop.f32.mrb[17].mxu1 }
 0x119   :  { %v1147_v16 = vpop.f32.mrb[19].mxu0  ;;  %v1203_v17 = vadd.f32 %v1202_v15, %v1201_v12  ;;  %v1204_v18 = vpop.f32.mrb[18].mxu1 }
 0x11a   :  { %v616_v19 = vadd.f32 %v1145_v13, %v1628_v9  ;;  %v1148_v20 = vadd.f32 %v1147_v16, %v1146_v14  ;;  %v1205_v21 = vpop.f32.mrb[19].mxu1 }
 0x11b   :  { %v1206_v22 = vadd.f32 %v1205_v21, %v1204_v18 }
 0x11c   :  { %v619_v24 = vadd.f32 %v1148_v20, %v1628_v9  ;;  %v705_v26 = vadd.f32 %v1203_v17, %v616_v19 }
 0x11e   :  { %v1149_v27 = vpop.f32.mrb[20].mxu0  ;;  %v708_v28 = vadd.f32 %v1206_v22, %v619_v24 }
 0x11f   :  { %v1150_v29 = vpop.f32.mrb[21].mxu0  ;;  %v1207_v30 = vpop.f32.mrb[20].mxu1 }
 0x120   :  { %v1151_v31 = vadd.f32 %v1150_v29, %v1149_v27  ;;  %v1152_v32 = vpop.f32.mrb[22].mxu0  ;;  %v1208_v33 = vpop.f32.mrb[21].mxu1 }
 0x121   :  { %v1153_v34 = vpop.f32.mrb[23].mxu0  ;;  %v1209_v35 = vadd.f32 %v1208_v33, %v1207_v30  ;;  %v1210_v36 = vpop.f32.mrb[22].mxu1 }
 0x122   :  { %v624_v37 = vadd.f32 %v1151_v31, %v1628_v9  ;;  %v1154_v38 = vadd.f32 %v1153_v34, %v1152_v32  ;;  %v1211_v40 = vpop.f32.mrb[23].mxu1 }
 0x123   :  { %v1212_v42 = vadd.f32 %v1211_v40, %v1210_v36 }
 0x124   :  { %v627_v43 = vadd.f32 %v1154_v38, %v1628_v9  ;;  %v713_v44 = vadd.f32 %v1209_v35, %v624_v37 }
 0x126   :  { %v1155_v45 = vpop.f32.mrb[24].mxu0  ;;  %v716_v46 = vadd.f32 %v1212_v42, %v627_v43 }
 0x127   :  { %v1156_v47 = vpop.f32.mrb[25].mxu0  ;;  %v1213_v48 = vpop.f32.mrb[24].mxu1 }
 0x128   :  { %v1157_v49 = vadd.f32 %v1156_v47, %v1155_v45  ;;  %v1158_v50 = vpop.f32.mrb[26].mxu0  ;;  %v1214_v51 = vpop.f32.mrb[25].mxu1 }
 0x129   :  { %v1159_v52 = vpop.f32.mrb[27].mxu0  ;;  %v1215_v53 = vadd.f32 %v1214_v51, %v1213_v48  ;;  %v1216_v54 = vpop.f32.mrb[26].mxu1 }
 0x12a   :  { %v632_v56 = vadd.f32 %v1157_v49, %v1628_v9  ;;  %v1217_v58 = vpop.f32.mrb[27].mxu1 }
 0x12c   :  { %v721_v59 = vadd.f32 %v1215_v53, %v632_v56 }
 0x12e   :  { %v761_v60 = vpop.f32.mrb[28].mxu0 }
 0x12f   :  { %v762_v61 = vadd.f32 %v761_v60, %v1632_v23  ;;  %v793_v62 = vpop.f32.mrb[28].mxu1  ;;  %v1240_v63 = vpop.f32.mrb[29].mxu0 }
 0x130   :  { %v794_v0 = vadd.f32 %v793_v62, %v705_v26  ;;  %v1256_v1 = vpop.f32.mrb[29].mxu1  ;;  %v764_v2 = vpop.f32.mrb[30].mxu0 }
 0x131   :  { %v816_v3 = vmax.f32 %v762_v61, 0.0  ;;  %v765_v4 = vadd.f32 %v764_v2, %v1634_v25  ;;  %v796_v5 = vpop.f32.mrb[30].mxu1  ;;  %v1241_v6 = vpop.f32.mrb[31].mxu0 }
 0x132   :  { %v824_v8 = vmax.f32 %v794_v0, 0.0  ;;  %v797_v11 = vadd.f32 %v796_v5, %v708_v28  ;;  %v1257_v12 = vpop.f32.mrb[31].mxu1 }
 0x133   :  { %v1089_v9 = vpack.c.bf16 %v816_v3, %v816_v3  ;;  %v817_v13 = vmax.f32 %v765_v4, 0.0 }
 0x134   :  { %v1097_v14 = vpack.c.bf16 %v824_v8, %v824_v8  ;;  %v825_v15 = vmax.f32 %v797_v11, 0.0 }
 0x135   :  { %887 = vst.msk [vmem:[#allocation2] sm:$0xf] %vm886_vm2, %v1089_v9  ;;  %v1090_v23 = vpack.c.bf16 %v817_v13, %v817_v13 }
 0x136   :  { %895 = vst.msk [vmem:[#allocation2 + $0x20] sm:$0xf] %vm886_vm2, %v1097_v14  ;;  %v1098_v16 = vpack.c.bf16 %v825_v15, %v825_v15  ;;  %v769_v17 = vpop.f32.mrb[32].mxu0 }
 0x137   :  { %888 = vst.msk [vmem:[#allocation2 + $0x4] sm:$0xf] %vm886_vm2, %v1090_v23  ;;  %v770_v25 = vadd.f32 %v769_v17, %v1638_v39  ;;  %v801_v18 = vpop.f32.mrb[32].mxu1  ;;  %v1244_v19 = vpop.f32.mrb[33].mxu0 }
 0x138   :  { %896 = vst.msk [vmem:[#allocation2 + $0x24] sm:$0xf] %vm886_vm2, %v1098_v16  ;;  %v802_v20 = vadd.f32 %v801_v18, %v713_v44  ;;  %v1260_v21 = vpop.f32.mrb[33].mxu1  ;;  %v772_v22 = vpop.f32.mrb[34].mxu0 }
 0x139   :  { %v818_v24 = vmax.f32 %v770_v25, 0.0  ;;  %v773_v26 = vadd.f32 %v772_v22, %v1640_v41  ;;  %v804_v27 = vpop.f32.mrb[34].mxu1  ;;  %v1245_v28 = vpop.f32.mrb[35].mxu0 }
 0x13a   :  { %v826_v29 = vmax.f32 %v802_v20, 0.0  ;;  %v805_v30 = vadd.f32 %v804_v27, %v716_v46  ;;  %v1261_v31 = vpop.f32.mrb[35].mxu1 }
 0x13b   :  { %v1091_v32 = vpack.c.bf16 %v818_v24, %v818_v24  ;;  %v819_v33 = vmax.f32 %v773_v26, 0.0 }
 0x13c   :  { %v918_v34 = vld [vmem:[#allocation2] sm:$0xf]  ;;  %v1099_v35 = vpack.c.bf16 %v826_v29, %v826_v29  ;;  %v827_v39 = vmax.f32 %v805_v30, 0.0 }
 0x13d   :  { %919 = vst [vmem:[%s1722_s3] sm:$0xf] %v918_v34  ;;  %v934_v36 = vld [vmem:[#allocation2 + $0x20] sm:$0xf]  ;;  %889 = vst.msk [vmem:[#allocation2 + $0x8] sm:$0xf] %vm886_vm2, %v1091_v32  ;;  %v1092_v37 = vpack.c.bf16 %v819_v33, %v819_v33 }
 0x13e   :  { %935 = vst [vmem:[%s1722_s3 + $0x20] sm:$0xf] %v934_v36  ;;  %v920_v41 = vld [vmem:[#allocation2 + $0x4] sm:$0xf]  ;;  %897 = vst.msk [vmem:[#allocation2 + $0x28] sm:$0xf] %vm886_vm2, %v1099_v35  ;;  %v1100_v38 = vpack.c.bf16 %v827_v39, %v827_v39 }
 0x13f   :  { %v777_v40 = vpop.f32.mrb[36].mxu0  ;;  %921 = vst [vmem:[%s1722_s3 + $0x4] sm:$0xf] %v920_v41  ;;  %v936_v42 = vld [vmem:[#allocation2 + $0x24] sm:$0xf]  ;;  %v809_v44 = vpop.f32.mrb[36].mxu1 }
 0x140   :  { %890 = vst.msk [vmem:[#allocation2 + $0xc] sm:$0xf] %vm886_vm2, %v1092_v37  ;;  %v778_v43 = vadd.f32 %v777_v40, %v1644_v55  ;;  %v1248_v45 = vpop.f32.mrb[37].mxu0  ;;  %937 = vst [vmem:[%s1722_s3 + $0x24] sm:$0xf] %v936_v42  ;;  %v810_v46 = vadd.f32 %v809_v44, %v721_v59  ;;  %v1264_v47 = vpop.f32.mrb[37].mxu1 }
 0x141   :  { %898 = vst.msk [vmem:[#allocation2 + $0x2c] sm:$0xf] %vm886_vm2, %v1100_v38  ;;  %v780_v48 = vpop.f32.mrb[38].mxu0  ;;  %v812_v51 = vpop.f32.mrb[38].mxu1 }
 0x142   :  { %v820_v49 = vmax.f32 %v778_v43, 0.0  ;;  %v781_v50 = vadd.f32 %v780_v48, %v1646_v57  ;;  %v1249_v52 = vpop.f32.mrb[39].mxu0  ;;  %v828_v53 = vmax.f32 %v810_v46, 0.0  ;;  %v1265_v54 = vpop.f32.mrb[39].mxu1 }
 0x144   :  { %v1093_v56 = vpack.c.bf16 %v820_v49, %v820_v49  ;;  %v821_v55 = vmax.f32 %v781_v50, 0.0  ;;  %v922_v58 = vld [vmem:[#allocation2 + $0x8] sm:$0xf]  ;;  %v1101_v60 = vpack.c.bf16 %v828_v53, %v828_v53 }
 0x145   :  { %923 = vst [vmem:[%s1722_s3 + $0x8] sm:$0xf] %v922_v58  ;;  %v938_v61 = vld [vmem:[#allocation2 + $0x28] sm:$0xf] }
 0x146   :  { %891 = vst.msk [vmem:[#allocation2 + $0x10] sm:$0xf] %vm886_vm2, %v1093_v56  ;;  %v1094_v59 = vpack.c.bf16 %v821_v55, %v821_v55  ;;  %939 = vst [vmem:[%s1722_s3 + $0x28] sm:$0xf] %v938_v61  ;;  %v785_v62 = vpop.f32.mrb[40].mxu0 }
 0x147   :  { %v924_v57 = vld [vmem:[#allocation2 + $0xc] sm:$0xf]  ;;  %899 = vst.msk [vmem:[#allocation2 + $0x30] sm:$0xf] %vm886_vm2, %v1101_v60  ;;  %v786_v0 = vadd.f32 %v785_v62, %v1650_v7  ;;  %v1252_v1 = vpop.f32.mrb[41].mxu0 }
 0x148   :  { %925 = vst [vmem:[%s1722_s3 + $0xc] sm:$0xf] %v924_v57  ;;  %v940_v63 = vld [vmem:[#allocation2 + $0x2c] sm:$0xf]  ;;  %892 = vst.msk [vmem:[#allocation2 + $0x14] sm:$0xf] %vm886_vm2, %v1094_v59 }
 0x149   :  { %941 = vst [vmem:[%s1722_s3 + $0x2c] sm:$0xf] %v940_v63  ;;  %v788_v2 = vpop.f32.mrb[42].mxu0  ;;  %v822_v3 = vmax.f32 %v786_v0, 0.0 }
 0x14a   :  { %v789_v4 = vadd.f32 %v788_v2, %v1652_v10  ;;  %v1253_v5 = vpop.f32.mrb[43].mxu0 }
 0x14b   :  { %v1095_v6 = vpack.c.bf16 %v822_v3, %v822_v3 }
 0x14c   :  { %v823_v8 = vmax.f32 %v789_v4, 0.0 }
 0x14d   :  { %v926_v11 = vld [vmem:[#allocation2 + $0x10] sm:$0xf]  ;;  %893 = vst.msk [vmem:[#allocation2 + $0x18] sm:$0xf] %vm886_vm2, %v1095_v6 }
 0x14e   :  { %927 = vst [vmem:[%s1722_s3 + $0x10] sm:$0xf] %v926_v11  ;;  %v942_v12 = vld [vmem:[#allocation2 + $0x30] sm:$0xf]  ;;  %v1096_v7 = vpack.c.bf16 %v823_v8, %v823_v8 }
 0x14f   :  { %943 = vst [vmem:[%s1722_s3 + $0x30] sm:$0xf] %v942_v12  ;;  %v928_v9 = vld [vmem:[#allocation2 + $0x14] sm:$0xf] }
 0x150   :  { %929 = vst [vmem:[%s1722_s3 + $0x14] sm:$0xf] %v928_v9  ;;  %894 = vst.msk [vmem:[#allocation2 + $0x1c] sm:$0xf] %vm886_vm2, %v1096_v7 }
 0x154   :  { %v930_v10 = vld [vmem:[#allocation2 + $0x18] sm:$0xf] }
 0x155   :  { %931 = vst [vmem:[%s1722_s3 + $0x18] sm:$0xf] %v930_v10 }
 0x157   :  { %v932_v13 = vld [vmem:[#allocation2 + $0x1c] sm:$0xf] }
 0x158   :  { %933 = vst [vmem:[%s1722_s3 + $0x1c] sm:$0xf] %v932_v13 }

// kernel: dqn_forward.7
= control target key start
LH: loop header
LB: loop body
LE: loop exit
PB: predicated region body
PF: predicated region fallthrough
CT: control target
= control target key end

     0   :  { %10 = vsyncpa [#allocation3], 0  ;;  %v840_v38 = vlaneseq  ;;  %v9034_v39 = vmov 1966171168   ;;  %vm5293_vm0 = vcmask 523264   ;;  %s11766_s0 = inlined_call_operand.vmem [shape: bf16[2,3136], index: 0, kind: input, shape index: {}]   ;;  %s11767_s1 = inlined_call_operand.vmem [shape: bf16[3136,512], index: 1, kind: input, shape index: {}]   ;;  %s11768_s2 = inlined_call_operand.vmem [shape: f32[1,512], index: 2, kind: input, shape index: {}]   ;;  %s11769_s3 = inlined_call_operand.vmem [shape: bf16[512,128], index: 3, kind: input, shape index: {}]   ;;  %s11770_s4 = inlined_call_operand.vmem [shape: f32[1,128], index: 4, kind: input, shape index: {}]   ;;  %s11771_s5 = inlined_call_operand.hbm [shape: f32[2,128], index: 5, kind: output, shape index: {}]  }
   0x1   :  { %v7762_v0 = vld [vmem:[%s11767_s1 + $0x4] ss:$16 sps:$4 sm:$0xff]   ;;  %v7764_v1 = vld [vmem:[%s11767_s1 + $0xc] ss:$16 sps:$4 sm:$0xff]   ;;  %v7766_v2 = vld [vmem:[%s11767_s1] ss:$16 sps:$4 sm:$0xff]   ;;  %v901_v40 = vunpack.c.l.s4 %v9034_v39 }
   0x2   :  { %v7767_v3 = vld [vmem:[%s11767_s1 + $0x8] ss:$16 sps:$4 sm:$0xff]   ;;  %5297 = vmatprep.subr.bf16.mxu0 %v7762_v0  ;;  %v7768_v4 = vld [vmem:[%s11767_s1 + $0x24] ss:$16 sps:$4 sm:$0xff]   ;;  %5856 = vmatprep.subr.bf16.mxu1 %v7764_v1  ;;  %v7770_v5 = vld [vmem:[%s11767_s1 + $0x2c] ss:$16 sps:$4 sm:$0xff]  }
   0x3   :  { %5298 = vmatpush1.bf16.msra.mxu0 %v7766_v2  ;;  %5857 = vmatpush1.bf16.msra.mxu1 %v7767_v3  ;;  %v7772_v6 = vld [vmem:[%s11767_s1 + $0x20] ss:$16 sps:$4 sm:$0xff]   ;;  %v7773_v7 = vld [vmem:[%s11767_s1 + $0x28] ss:$16 sps:$4 sm:$0xff]   ;;  %v7774_v8 = vld [vmem:[%s11767_s1 + $0x44] ss:$16 sps:$4 sm:$0xff]   ;;  %v902_v47 = vunpack.c.0.s8 %v901_v40 }
   0x4   :  { %5299 = vmatprep.subr.bf16.mxu0 %v7768_v4  ;;  %5858 = vmatprep.subr.bf16.mxu1 %v7770_v5  ;;  %v7776_v9 = vld [vmem:[%s11767_s1 + $0x4c] ss:$16 sps:$4 sm:$0xff]   ;;  %v7778_v10 = vld [vmem:[%s11767_s1 + $0x40] ss:$16 sps:$4 sm:$0xff]   ;;  %v7779_v11 = vld [vmem:[%s11767_s1 + $0x48] ss:$16 sps:$4 sm:$0xff]  }
   0x5   :  { %v7780_v12 = vld [vmem:[%s11767_s1 + $0x64] ss:$16 sps:$4 sm:$0xff]   ;;  %v7782_v13 = vld [vmem:[%s11767_s1 + $0x6c] ss:$16 sps:$4 sm:$0xff]   ;;  %v7784_v14 = vld [vmem:[%s11767_s1 + $0x60] ss:$16 sps:$4 sm:$0xff]  }
   0x6   :  { %v7785_v15 = vld [vmem:[%s11767_s1 + $0x68] ss:$16 sps:$4 sm:$0xff]   ;;  %v7786_v16 = vld [vmem:[%s11767_s1 + $0x84] ss:$16 sps:$4 sm:$0xff]   ;;  %v7788_v17 = vld [vmem:[%s11767_s1 + $0x8c] ss:$16 sps:$4 sm:$0xff]  }
   0x7   :  { %5300 = vmatpush1.bf16.msra.mxu0 %v7772_v6  ;;  %5859 = vmatpush1.bf16.msra.mxu1 %v7773_v7  ;;  %v7790_v18 = vld [vmem:[%s11767_s1 + $0x80] ss:$16 sps:$4 sm:$0xff]   ;;  %v7791_v19 = vld [vmem:[%s11767_s1 + $0x88] ss:$16 sps:$4 sm:$0xff]   ;;  %v7792_v20 = vld [vmem:[%s11767_s1 + $0xa4] ss:$16 sps:$4 sm:$0xff]  }
   0x8   :  { %5301 = vmatprep.subr.bf16.mxu0 %v7774_v8  ;;  %5860 = vmatprep.subr.bf16.mxu1 %v7776_v9  ;;  %v7794_v21 = vld [vmem:[%s11767_s1 + $0xac] ss:$16 sps:$4 sm:$0xff]   ;;  %v7796_v22 = vld [vmem:[%s11767_s1 + $0xa0] ss:$16 sps:$4 sm:$0xff]   ;;  %v7797_v23 = vld [vmem:[%s11767_s1 + $0xa8] ss:$16 sps:$4 sm:$0xff]  }
   0x9   :  { %v7798_v24 = vld [vmem:[%s11767_s1 + $0xc4] ss:$16 sps:$4 sm:$0xff]   ;;  %v7800_v25 = vld [vmem:[%s11767_s1 + $0xcc] ss:$16 sps:$4 sm:$0xff]   ;;  %v7802_v26 = vld [vmem:[%s11767_s1 + $0xc0] ss:$16 sps:$4 sm:$0xff]  }
   0xa   :  { %v7803_v27 = vld [vmem:[%s11767_s1 + $0xc8] ss:$16 sps:$4 sm:$0xff]   ;;  %v7804_v28 = vld [vmem:[%s11767_s1 + $0xe4] ss:$16 sps:$4 sm:$0xff]   ;;  %v7806_v29 = vld [vmem:[%s11767_s1 + $0xec] ss:$16 sps:$4 sm:$0xff]  }
   0xb   :  { %5302 = vmatpush1.bf16.msra.mxu0 %v7778_v10  ;;  %5861 = vmatpush1.bf16.msra.mxu1 %v7779_v11  ;;  %v7808_v30 = vld [vmem:[%s11767_s1 + $0xe0] ss:$16 sps:$4 sm:$0xff]   ;;  %v7809_v31 = vld [vmem:[%s11767_s1 + $0xe8] ss:$16 sps:$4 sm:$0xff]   ;;  %v7810_v32 = vld [vmem:[%s11767_s1 + $0x104] ss:$16 sps:$4 sm:$0xff]  }
   0xc   :  { %5303 = vmatprep.subr.bf16.mxu0 %v7780_v12  ;;  %5862 = vmatprep.subr.bf16.mxu1 %v7782_v13  ;;  %v7812_v33 = vld [vmem:[%s11767_s1 + $0x10c] ss:$16 sps:$4 sm:$0xff]   ;;  %v7814_v34 = vld [vmem:[%s11767_s1 + $0x100] ss:$16 sps:$4 sm:$0xff]   ;;  %v7815_v35 = vld [vmem:[%s11767_s1 + $0x108] ss:$16 sps:$4 sm:$0xff]  }
   0xd   :  { %v7816_v36 = vld [vmem:[%s11767_s1 + $0x124] ss:$16 sps:$4 sm:$0xff]   ;;  %v7818_v37 = vld [vmem:[%s11767_s1 + $0x12c] ss:$16 sps:$4 sm:$0xff]   ;;  %v7820_v41 = vld [vmem:[%s11767_s1 + $0x120] ss:$16 sps:$4 sm:$0xff]  }
   0xe   :  { %v7821_v42 = vld [vmem:[%s11767_s1 + $0x128] ss:$16 sps:$4 sm:$0xff]   ;;  %v7822_v43 = vld [vmem:[%s11767_s1 + $0x144] ss:$16 sps:$4 sm:$0xff]   ;;  %v7824_v44 = vld [vmem:[%s11767_s1 + $0x14c] ss:$16 sps:$4 sm:$0xff]  }
   0xf   :  { %5304 = vmatpush1.bf16.msra.mxu0 %v7784_v14  ;;  %5863 = vmatpush1.bf16.msra.mxu1 %v7785_v15  ;;  %v7826_v45 = vld [vmem:[%s11767_s1 + $0x140] ss:$16 sps:$4 sm:$0xff]   ;;  %v9198_v46 = vshrl.u32 %v840_v38, 7  ;;  %v7827_v48 = vld [vmem:[%s11767_s1 + $0x148] ss:$16 sps:$4 sm:$0xff]  }
  0x10   :  { %5305 = vmatprep.subr.bf16.mxu0 %v7786_v16  ;;  %5864 = vmatprep.subr.bf16.mxu1 %v7788_v17  ;;  %v7828_v49 = vld [vmem:[%s11767_s1 + $0x164] ss:$16 sps:$4 sm:$0xff]   ;;  %v7830_v50 = vld [vmem:[%s11767_s1 + $0x16c] ss:$16 sps:$4 sm:$0xff]   ;;  %v7832_v51 = vld [vmem:[%s11767_s1 + $0x160] ss:$16 sps:$4 sm:$0xff]  }
  0x11   :  { %v7833_v52 = vld [vmem:[%s11767_s1 + $0x168] ss:$16 sps:$4 sm:$0xff]   ;;  %v7834_v53 = vld [vmem:[%s11767_s1 + $0x184] ss:$16 sps:$4 sm:$0xff]   ;;  %v9219_v54 = vsub.s32 %v902_v47, %v9198_v46  ;;  %v7836_v56 = vld [vmem:[%s11767_s1 + $0x18c] ss:$16 sps:$4 sm:$0xff]  }
  0x12   :  { %v7858_v55 = vld [vmem:[%s11766_s0] ss:$25 sps:$4 sm:$0xff]   ;;  %v7861_v57 = vld [vmem:[%s11766_s0 + $0x32] ss:$25 sps:$4 sm:$0xff]  }
  0x13   :  { %5306 = vmatpush1.bf16.msra.mxu0 %v7790_v18  ;;  %5865 = vmatpush1.bf16.msra.mxu1 %v7791_v19  ;;  %v7864_v58 = vld [vmem:[%s11766_s0 + $0x64] ss:$25 sps:$4 sm:$0xff]   ;;  %v7867_v59 = vld [vmem:[%s11766_s0 + $0x96] ss:$25 sps:$4 sm:$0xff]   ;;  %v906_v60 = vrot.slane %v7858_v55, %v9219_v54  ;;  %v920_v62 = vrot.slane %v7861_v57, %v9219_v54 }
  0x14   :  { %5307 = vmatprep.subr.bf16.mxu0 %v7792_v20  ;;  %5866 = vmatprep.subr.bf16.mxu1 %v7794_v21  ;;  %v7838_v61 = vld [vmem:[%s11767_s1 + $0x180] ss:$16 sps:$4 sm:$0xff]   ;;  %v7839_v63 = vld [vmem:[%s11767_s1 + $0x188] ss:$16 sps:$4 sm:$0xff]   ;;  %v7840_v0 = vld [vmem:[%s11767_s1 + $0x1a4] ss:$16 sps:$4 sm:$0xff]   ;;  %v934_v1 = vrot.slane %v7864_v58, %v9219_v54  ;;  %v948_v2 = vrot.slane %v7867_v59, %v9219_v54 }
  0x15   :  { %v7842_v3 = vld [vmem:[%s11767_s1 + $0x1ac] ss:$16 sps:$4 sm:$0xff]   ;;  %v957_v4 = vcombine.high %v906_v60, %v920_v62  ;;  %v956_v5 = vcombine.low %v906_v60, %v920_v62  ;;  %v7844_v8 = vld [vmem:[%s11767_s1 + $0x1a0] ss:$16 sps:$4 sm:$0xff]   ;;  %v7845_v10 = vld [vmem:[%s11767_s1 + $0x1a8] ss:$16 sps:$4 sm:$0xff]  }
  0x16   :  { %v961_v6 = vcombine.high %v934_v1, %v948_v2  ;;  %v960_v7 = vcombine.low %v934_v1, %v948_v2  ;;  %v7846_v11 = vld [vmem:[%s11767_s1 + $0x1c4] ss:$16 sps:$4 sm:$0xff]   ;;  %v7848_v15 = vld [vmem:[%s11767_s1 + $0x1cc] ss:$16 sps:$4 sm:$0xff]   ;;  %v7850_v18 = vld [vmem:[%s11767_s1 + $0x1c0] ss:$16 sps:$4 sm:$0xff]  }
  0x17   :  { %5308 = vmatpush1.bf16.msra.mxu0 %v7796_v22  ;;  %5867 = vmatpush1.bf16.msra.mxu1 %v7797_v23  ;;  %v984_v9 = vrot.slane %v957_v4, %v9219_v54  ;;  %v970_v13 = vrot.slane %v956_v5, %v9219_v54  ;;  %v7851_v19 = vld [vmem:[%s11767_s1 + $0x1c8] ss:$16 sps:$4 sm:$0xff]   ;;  %v7852_v20 = vld [vmem:[%s11767_s1 + $0x1e4] ss:$16 sps:$4 sm:$0xff]   ;;  %v7854_v21 = vld [vmem:[%s11767_s1 + $0x1ec] ss:$16 sps:$4 sm:$0xff]  }
  0x18   :  { %5309 = vmatprep.subr.bf16.mxu0 %v7798_v24  ;;  %5868 = vmatprep.subr.bf16.mxu1 %v7800_v25  ;;  %v1012_v12 = vrot.slane %v961_v6, %v9219_v54  ;;  %v998_v14 = vrot.slane %v960_v7, %v9219_v54  ;;  %v7856_v22 = vld [vmem:[%s11767_s1 + $0x1e0] ss:$16 sps:$4 sm:$0xff]   ;;  %v7857_v23 = vld [vmem:[%s11767_s1 + $0x1e8] ss:$16 sps:$4 sm:$0xff]   ;;  %v7872_v24 = vld [vmem:[%s11767_s1 + $0x204] ss:$16 sps:$4 sm:$0xff]  }
  0x19   :  { %v7875_v25 = vld [vmem:[%s11767_s1 + $0x20c] ss:$16 sps:$4 sm:$0xff]   ;;  %v7890_v38 = vld [vmem:[%s11767_s1 + $0x264] ss:$16 sps:$4 sm:$0xff]   ;;  %v7888_v40 = vld [vmem:[%s11767_s1 + $0x260] ss:$16 sps:$4 sm:$0xff]  }
  0x1a   :  { %v1024_v16 = vcombine.low %v984_v9, %v1012_v12  ;;  %v9268_v17 = vcombine.high %v970_v13, %v998_v14  ;;  %v7893_v39 = vld [vmem:[%s11767_s1 + $0x26c] ss:$16 sps:$4 sm:$0xff]   ;;  %v7902_v47 = vld [vmem:[%s11767_s1 + $0x2a4] ss:$16 sps:$4 sm:$0xff]   ;;  %v7909_v55 = vld [vmem:[%s11767_s1 + $0x2c8] ss:$16 sps:$4 sm:$0xff]  }
  0x1b   :  { %5310 = vmatpush1.bf16.msra.mxu0 %v7802_v26  ;;  %5869 = vmatpush1.bf16.msra.mxu1 %v7803_v27  ;;  %v1020_v26 = vcombine.low %v970_v13, %v998_v14  ;;  %v7870_v27 = vld [vmem:[%s11767_s1 + $0x200] ss:$16 sps:$4 sm:$0xff]   ;;  %v7917_v57 = vld [vmem:[%s11767_s1 + $0x2ec] ss:$16 sps:$4 sm:$0xff]   ;;  %v7915_v59 = vld [vmem:[%s11767_s1 + $0x2e8] ss:$16 sps:$4 sm:$0xff]  }
  0x1c   :  { %5311 = vmatprep.subr.bf16.mxu0 %v7804_v28  ;;  %5870 = vmatprep.subr.bf16.mxu1 %v7806_v29  ;;  %v7873_v28 = vld [vmem:[%s11767_s1 + $0x208] ss:$16 sps:$4 sm:$0xff]   ;;  %v7878_v29 = vld [vmem:[%s11767_s1 + $0x224] ss:$16 sps:$4 sm:$0xff]   ;;  %v7912_v58 = vld [vmem:[%s11767_s1 + $0x2e0] ss:$16 sps:$4 sm:$0xff]  }
  0x1d   :  { %5329 = vmatprep.mubr.bf16.mxu0 %v1024_v16  ;;  %5888 = vmatprep.mubr.bf16.mxu1 %v1024_v16  ;;  %v7920_v60 = vld [vmem:[%s11767_s1 + $0x304] ss:$16 sps:$4 sm:$0xff]   ;;  %v7918_v62 = vld [vmem:[%s11767_s1 + $0x300] ss:$16 sps:$4 sm:$0xff]   ;;  %v7929_v1 = vld [vmem:[%s11767_s1 + $0x32c] ss:$16 sps:$4 sm:$0xff]  }
  0x1e   :  { %v7924_v2 = vld [vmem:[%s11767_s1 + $0x320] ss:$16 sps:$4 sm:$0xff]   ;;  %v7932_v4 = vld [vmem:[%s11767_s1 + $0x344] ss:$16 sps:$4 sm:$0xff]   ;;  %v7935_v5 = vld [vmem:[%s11767_s1 + $0x34c] ss:$16 sps:$4 sm:$0xff]  }
  0x1f   :  { %5312 = vmatpush1.bf16.msra.mxu0 %v7808_v30  ;;  %5871 = vmatpush1.bf16.msra.mxu1 %v7809_v31  ;;  %v7881_v30 = vld [vmem:[%s11767_s1 + $0x22c] ss:$16 sps:$4 sm:$0xff]   ;;  %v1025_v31 = vcombine.high %v984_v9, %v1012_v12  ;;  %v7930_v6 = vld [vmem:[%s11767_s1 + $0x340] ss:$16 sps:$4 sm:$0xff]   ;;  %v7933_v7 = vld [vmem:[%s11767_s1 + $0x348] ss:$16 sps:$4 sm:$0xff]  }
  0x20   :  { %5313 = vmatprep.subr.bf16.mxu0 %v7810_v32  ;;  %5872 = vmatprep.subr.bf16.mxu1 %v7812_v33  ;;  %v7876_v32 = vld [vmem:[%s11767_s1 + $0x220] ss:$16 sps:$4 sm:$0xff]   ;;  %v7879_v33 = vld [vmem:[%s11767_s1 + $0x228] ss:$16 sps:$4 sm:$0xff]   ;;  %v7941_v9 = vld [vmem:[%s11767_s1 + $0x36c] ss:$16 sps:$4 sm:$0xff]  }
  0x21   :  { %v7944_v12 = vld [vmem:[%s11767_s1 + $0x384] ss:$16 sps:$4 sm:$0xff]   ;;  %v7947_v13 = vld [vmem:[%s11767_s1 + $0x38c] ss:$16 sps:$4 sm:$0xff]  }
  0x22   :  { %v7860_v14 = vld [vmem:[%s11766_s0 + $0x4] ss:$25 sps:$4 sm:$0xff]  }
  0x23   :  { %5314 = vmatpush1.bf16.msra.mxu0 %v7814_v34  ;;  %5873 = vmatpush1.bf16.msra.mxu1 %v7815_v35  ;;  %v7884_v34 = vld [vmem:[%s11767_s1 + $0x244] ss:$16 sps:$4 sm:$0xff]   ;;  %v7887_v35 = vld [vmem:[%s11767_s1 + $0x24c] ss:$16 sps:$4 sm:$0xff]  }
  0x24   :  { %5315 = vmatprep.subr.bf16.mxu0 %v7816_v36  ;;  %5874 = vmatprep.subr.bf16.mxu1 %v7818_v37  ;;  %v7882_v36 = vld [vmem:[%s11767_s1 + $0x240] ss:$16 sps:$4 sm:$0xff]   ;;  %v7885_v37 = vld [vmem:[%s11767_s1 + $0x248] ss:$16 sps:$4 sm:$0xff]  }
  0x25   :  { %v7866_v16 = vld [vmem:[%s11766_s0 + $0x68] ss:$25 sps:$4 sm:$0xff]  }
  0x27   :  { %5316 = vmatpush1.bf16.msra.mxu0 %v7820_v41  ;;  %5875 = vmatpush1.bf16.msra.mxu1 %v7821_v42  ;;  %v7891_v41 = vld [vmem:[%s11767_s1 + $0x268] ss:$16 sps:$4 sm:$0xff]   ;;  %v7896_v42 = vld [vmem:[%s11767_s1 + $0x284] ss:$16 sps:$4 sm:$0xff]  }
  0x28   :  { %5317 = vmatprep.subr.bf16.mxu0 %v7822_v43  ;;  %5876 = vmatprep.subr.bf16.mxu1 %v7824_v44  ;;  %v7899_v43 = vld [vmem:[%s11767_s1 + $0x28c] ss:$16 sps:$4 sm:$0xff]   ;;  %v7894_v44 = vld [vmem:[%s11767_s1 + $0x280] ss:$16 sps:$4 sm:$0xff]  }
  0x2b   :  { %5318 = vmatpush1.bf16.msra.mxu0 %v7826_v45  ;;  %5877 = vmatpush1.bf16.msra.mxu1 %v7827_v48  ;;  %v7897_v45 = vld [vmem:[%s11767_s1 + $0x288] ss:$16 sps:$4 sm:$0xff]   ;;  %v7905_v48 = vld [vmem:[%s11767_s1 + $0x2ac] ss:$16 sps:$4 sm:$0xff]  }
  0x2c   :  { %5319 = vmatprep.subr.bf16.mxu0 %v7828_v49  ;;  %5878 = vmatprep.subr.bf16.mxu1 %v7830_v50  ;;  %v7900_v49 = vld [vmem:[%s11767_s1 + $0x2a0] ss:$16 sps:$4 sm:$0xff]   ;;  %v7903_v50 = vld [vmem:[%s11767_s1 + $0x2a8] ss:$16 sps:$4 sm:$0xff]  }
  0x2f   :  { %5320 = vmatpush1.bf16.msra.mxu0 %v7832_v51  ;;  %5879 = vmatpush1.bf16.msra.mxu1 %v7833_v52  ;;  %v7908_v51 = vld [vmem:[%s11767_s1 + $0x2c4] ss:$16 sps:$4 sm:$0xff]   ;;  %v7911_v52 = vld [vmem:[%s11767_s1 + $0x2cc] ss:$16 sps:$4 sm:$0xff]  }
  0x30   :  { %5321 = vmatprep.subr.bf16.mxu0 %v7834_v53  ;;  %5880 = vmatprep.subr.bf16.mxu1 %v7836_v56  ;;  %v7906_v53 = vld [vmem:[%s11767_s1 + $0x2c0] ss:$16 sps:$4 sm:$0xff]   ;;  %v7914_v56 = vld [vmem:[%s11767_s1 + $0x2e4] ss:$16 sps:$4 sm:$0xff]  }
  0x33   :  { %5322 = vmatpush1.bf16.msra.mxu0 %v7838_v61  ;;  %5881 = vmatpush1.bf16.msra.mxu1 %v7839_v63  ;;  %v7923_v61 = vld [vmem:[%s11767_s1 + $0x30c] ss:$16 sps:$4 sm:$0xff]   ;;  %v7921_v63 = vld [vmem:[%s11767_s1 + $0x308] ss:$16 sps:$4 sm:$0xff]  }
  0x34   :  { %5323 = vmatprep.subr.bf16.mxu0 %v7840_v0  ;;  %5882 = vmatprep.subr.bf16.mxu1 %v7842_v3  ;;  %v7926_v0 = vld [vmem:[%s11767_s1 + $0x324] ss:$16 sps:$4 sm:$0xff]   ;;  %v7927_v3 = vld [vmem:[%s11767_s1 + $0x328] ss:$16 sps:$4 sm:$0xff]  }
  0x37   :  { %5324 = vmatpush1.bf16.msra.mxu0 %v7844_v8  ;;  %5883 = vmatpush1.bf16.msra.mxu1 %v7845_v10  ;;  %v7938_v8 = vld [vmem:[%s11767_s1 + $0x364] ss:$16 sps:$4 sm:$0xff]   ;;  %v7936_v10 = vld [vmem:[%s11767_s1 + $0x360] ss:$16 sps:$4 sm:$0xff]  }
  0x38   :  { %5325 = vmatprep.subr.bf16.mxu0 %v7846_v11  ;;  %5884 = vmatprep.subr.bf16.mxu1 %v7848_v15  ;;  %v7939_v11 = vld [vmem:[%s11767_s1 + $0x368] ss:$16 sps:$4 sm:$0xff]  }
  0x39   :  { %v7863_v15 = vld [vmem:[%s11766_s0 + $0x36] ss:$25 sps:$4 sm:$0xff]  }
  0x3b   :  { %5326 = vmatpush1.bf16.msra.mxu0 %v7850_v18  ;;  %5885 = vmatpush1.bf16.msra.mxu1 %v7851_v19  ;;  %v7942_v18 = vld [vmem:[%s11767_s1 + $0x380] ss:$16 sps:$4 sm:$0xff]   ;;  %v7945_v19 = vld [vmem:[%s11767_s1 + $0x388] ss:$16 sps:$4 sm:$0xff]  }
  0x3c   :  { %5327 = vmatprep.subr.bf16.mxu0 %v7852_v20  ;;  %5886 = vmatprep.subr.bf16.mxu1 %v7854_v21  ;;  %v7950_v20 = vld [vmem:[%s11767_s1 + $0x3a4] ss:$16 sps:$4 sm:$0xff]  }
  0x3d   :  { %v7869_v21 = vld [vmem:[%s11766_s0 + $0x9a] ss:$25 sps:$4 sm:$0xff]  }
  0x3f   :  { %5328 = vmatpush1.bf16.msra.mxu0 %v7856_v22  ;;  %5887 = vmatpush1.bf16.msra.mxu1 %v7857_v23  ;;  %v7953_v22 = vld [vmem:[%s11767_s1 + $0x3ac] ss:$16 sps:$4 sm:$0xff]   ;;  %v7948_v23 = vld [vmem:[%s11767_s1 + $0x3a0] ss:$16 sps:$4 sm:$0xff]  }
  0x40   :  { %5340 = vmatprep.subr.bf16.mxu0 %v7872_v24  ;;  %5899 = vmatprep.subr.bf16.mxu1 %v7875_v25  ;;  %v7951_v24 = vld [vmem:[%s11767_s1 + $0x3a8] ss:$16 sps:$4 sm:$0xff]   ;;  %v7956_v25 = vld [vmem:[%s11767_s1 + $0x3c4] ss:$16 sps:$4 sm:$0xff]  }
  0x42   :  { %5330 = vmatmul.mubr.bf16.vlgmr.msra.gmra.mrb[0].mxu0 %v1020_v26  ;;  %5889 = vmatmul.mubr.bf16.vlgmr.msra.gmra.mrb[0].mxu1 %v1020_v26  ;;  %v7959_v26 = vld [vmem:[%s11767_s1 + $0x3cc] ss:$16 sps:$4 sm:$0xff]  }
  0x43   :  { %5341 = vmatpush1.bf16.msra.mxu0 %v7870_v27  ;;  %5900 = vmatpush1.bf16.msra.mxu1 %v7873_v28  ;;  %v913_v27 = vrot.slane %v7860_v14, %v9219_v54  ;;  %v927_v28 = vrot.slane %v7863_v15, %v9219_v54  ;;  %v8013_v14 = vld [vmem:[%s11767_s1 + $0x4ec] ss:$16 sps:$4 sm:$0xff]   ;;  %v8008_v15 = vld [vmem:[%s11767_s1 + $0x4e0] ss:$16 sps:$4 sm:$0xff]  }
  0x44   :  { %5342 = vmatprep.subr.bf16.mxu0 %v7878_v29  ;;  %5901 = vmatprep.subr.bf16.mxu1 %v7881_v30  ;;  %v941_v29 = vrot.slane %v7866_v16, %v9219_v54  ;;  %v955_v30 = vrot.slane %v7869_v21, %v9219_v54  ;;  %v8011_v16 = vld [vmem:[%s11767_s1 + $0x4e8] ss:$16 sps:$4 sm:$0xff]  }
  0x45   :  { %5372 = vmatprep.mubr.bf16.mxu0 %v1025_v31  ;;  %5931 = vmatprep.mubr.bf16.mxu1 %v1025_v31  ;;  %v7954_v31 = vld [vmem:[%s11767_s1 + $0x3c0] ss:$16 sps:$4 sm:$0xff]   ;;  %v8017_v21 = vld [vmem:[%s11767_s1 + $0x508] ss:$16 sps:$4 sm:$0xff]  }
  0x47   :  { %5343 = vmatpush1.bf16.msra.mxu0 %v7876_v32  ;;  %5902 = vmatpush1.bf16.msra.mxu1 %v7879_v33  ;;  %v7957_v32 = vld [vmem:[%s11767_s1 + $0x3c8] ss:$16 sps:$4 sm:$0xff]   ;;  %v7962_v33 = vld [vmem:[%s11767_s1 + $0x3e4] ss:$16 sps:$4 sm:$0xff]  }
  0x48   :  { %5344 = vmatprep.subr.bf16.mxu0 %v7884_v34  ;;  %5903 = vmatprep.subr.bf16.mxu1 %v7887_v35  ;;  %v7965_v34 = vld [vmem:[%s11767_s1 + $0x3ec] ss:$16 sps:$4 sm:$0xff]   ;;  %v959_v35 = vcombine.high %v913_v27, %v927_v28 }
  0x4b   :  { %5345 = vmatpush1.bf16.msra.mxu0 %v7882_v36  ;;  %5904 = vmatpush1.bf16.msra.mxu1 %v7885_v37  ;;  %v963_v36 = vcombine.high %v941_v29, %v955_v30  ;;  %v7960_v37 = vld [vmem:[%s11767_s1 + $0x3e0] ss:$16 sps:$4 sm:$0xff]  }
  0x4c   :  { %5346 = vmatprep.subr.bf16.mxu0 %v7890_v38  ;;  %5905 = vmatprep.subr.bf16.mxu1 %v7893_v39  ;;  %v958_v38 = vcombine.low %v913_v27, %v927_v28  ;;  %v962_v39 = vcombine.low %v941_v29, %v955_v30  ;;  %v8031_v27 = vld [vmem:[%s11767_s1 + $0x54c] ss:$16 sps:$4 sm:$0xff]   ;;  %v8026_v28 = vld [vmem:[%s11767_s1 + $0x540] ss:$16 sps:$4 sm:$0xff]   ;;  %v8029_v29 = vld [vmem:[%s11767_s1 + $0x548] ss:$16 sps:$4 sm:$0xff]  }
  0x4d   :  { %v8034_v30 = vld [vmem:[%s11767_s1 + $0x564] ss:$16 sps:$4 sm:$0xff]  }
  0x4f   :  { %5347 = vmatpush1.bf16.msra.mxu0 %v7888_v40  ;;  %5906 = vmatpush1.bf16.msra.mxu1 %v7891_v41  ;;  %v7963_v40 = vld [vmem:[%s11767_s1 + $0x3e8] ss:$16 sps:$4 sm:$0xff]   ;;  %v7968_v41 = vld [vmem:[%s11767_s1 + $0x404] ss:$16 sps:$4 sm:$0xff]  }
  0x50   :  { %5348 = vmatprep.subr.bf16.mxu0 %v7896_v42  ;;  %5907 = vmatprep.subr.bf16.mxu1 %v7899_v43  ;;  %v7971_v42 = vld [vmem:[%s11767_s1 + $0x40c] ss:$16 sps:$4 sm:$0xff]   ;;  %v991_v43 = vrot.slane %v959_v35, %v9219_v54 }
  0x51   :  { %v8043_v35 = vld [vmem:[%s11767_s1 + $0x58c] ss:$16 sps:$4 sm:$0xff]  }
  0x53   :  { %5349 = vmatpush1.bf16.msra.mxu0 %v7894_v44  ;;  %5908 = vmatpush1.bf16.msra.mxu1 %v7897_v45  ;;  %v1019_v44 = vrot.slane %v963_v36, %v9219_v54  ;;  %v7966_v45 = vld [vmem:[%s11767_s1 + $0x400] ss:$16 sps:$4 sm:$0xff]  }
  0x54   :  { %5350 = vmatprep.subr.bf16.mxu0 %v7902_v47  ;;  %5909 = vmatprep.subr.bf16.mxu1 %v7905_v48  ;;  %v9508_v47 = vrot.slane %v958_v38, %v9219_v54  ;;  %v9511_v48 = vrot.slane %v962_v39, %v9219_v54  ;;  %v8038_v36 = vld [vmem:[%s11767_s1 + $0x580] ss:$16 sps:$4 sm:$0xff]   ;;  %v8046_v38 = vld [vmem:[%s11767_s1 + $0x5a4] ss:$16 sps:$4 sm:$0xff]   ;;  %v8049_v39 = vld [vmem:[%s11767_s1 + $0x5ac] ss:$16 sps:$4 sm:$0xff]  }
  0x57   :  { %5351 = vmatpush1.bf16.msra.mxu0 %v7900_v49  ;;  %5910 = vmatpush1.bf16.msra.mxu1 %v7903_v50  ;;  %v7969_v49 = vld [vmem:[%s11767_s1 + $0x408] ss:$16 sps:$4 sm:$0xff]   ;;  %v7974_v50 = vld [vmem:[%s11767_s1 + $0x424] ss:$16 sps:$4 sm:$0xff]  }
  0x58   :  { %5352 = vmatprep.subr.bf16.mxu0 %v7908_v51  ;;  %5911 = vmatprep.subr.bf16.mxu1 %v7911_v52  ;;  %v9519_v51 = vcombine.high %v991_v43, %v1019_v44  ;;  %v7977_v52 = vld [vmem:[%s11767_s1 + $0x42c] ss:$16 sps:$4 sm:$0xff]  }
  0x5b   :  { %5353 = vmatpush1.bf16.msra.mxu0 %v7906_v53  ;;  %5912 = vmatpush1.bf16.msra.mxu1 %v7909_v55  ;;  %v1026_v53 = vcombine.low %v991_v43, %v1019_v44  ;;  %v9526_v55 = vcombine.high %v9508_v47, %v9511_v48  ;;  %v8055_v43 = vld [vmem:[%s11767_s1 + $0x5cc] ss:$16 sps:$4 sm:$0xff]   ;;  %v8050_v44 = vld [vmem:[%s11767_s1 + $0x5c0] ss:$16 sps:$4 sm:$0xff]  }
  0x5c   :  { %5354 = vmatprep.subr.bf16.mxu0 %v7914_v56  ;;  %5913 = vmatprep.subr.bf16.mxu1 %v7917_v57  ;;  %v7972_v56 = vld [vmem:[%s11767_s1 + $0x420] ss:$16 sps:$4 sm:$0xff]   ;;  %v7975_v57 = vld [vmem:[%s11767_s1 + $0x428] ss:$16 sps:$4 sm:$0xff]  }
  0x5f   :  { %5355 = vmatpush1.bf16.msra.mxu0 %v7912_v58  ;;  %5914 = vmatpush1.bf16.msra.mxu1 %v7915_v59  ;;  %v7980_v58 = vld [vmem:[%s11767_s1 + $0x444] ss:$16 sps:$4 sm:$0xff]   ;;  %v7983_v59 = vld [vmem:[%s11767_s1 + $0x44c] ss:$16 sps:$4 sm:$0xff]  }
  0x60   :  { %5356 = vmatprep.subr.bf16.mxu0 %v7920_v60  ;;  %5915 = vmatprep.subr.bf16.mxu1 %v7923_v61  ;;  %v7981_v60 = vld [vmem:[%s11767_s1 + $0x448] ss:$16 sps:$4 sm:$0xff]   ;;  %v7986_v61 = vld [vmem:[%s11767_s1 + $0x464] ss:$16 sps:$4 sm:$0xff]  }
  0x63   :  { %5357 = vmatpush1.bf16.msra.mxu0 %v7918_v62  ;;  %5916 = vmatpush1.bf16.msra.mxu1 %v7921_v63  ;;  %v7989_v62 = vld [vmem:[%s11767_s1 + $0x46c] ss:$16 sps:$4 sm:$0xff]   ;;  %v7984_v63 = vld [vmem:[%s11767_s1 + $0x460] ss:$16 sps:$4 sm:$0xff]  }
  0x64   :  { %5358 = vmatprep.subr.bf16.mxu0 %v7926_v0  ;;  %5917 = vmatprep.subr.bf16.mxu1 %v7929_v1  ;;  %v7987_v0 = vld [vmem:[%s11767_s1 + $0x468] ss:$16 sps:$4 sm:$0xff]   ;;  %v7992_v1 = vld [vmem:[%s11767_s1 + $0x484] ss:$16 sps:$4 sm:$0xff]  }
  0x67   :  { %5359 = vmatpush1.bf16.msra.mxu0 %v7924_v2  ;;  %5918 = vmatpush1.bf16.msra.mxu1 %v7927_v3  ;;  %v7995_v2 = vld [vmem:[%s11767_s1 + $0x48c] ss:$16 sps:$4 sm:$0xff]   ;;  %v7990_v3 = vld [vmem:[%s11767_s1 + $0x480] ss:$16 sps:$4 sm:$0xff]  }
  0x68   :  { %5360 = vmatprep.subr.bf16.mxu0 %v7932_v4  ;;  %5919 = vmatprep.subr.bf16.mxu1 %v7935_v5  ;;  %v7993_v4 = vld [vmem:[%s11767_s1 + $0x488] ss:$16 sps:$4 sm:$0xff]   ;;  %v7998_v5 = vld [vmem:[%s11767_s1 + $0x4a4] ss:$16 sps:$4 sm:$0xff]  }
  0x6b   :  { %5361 = vmatpush1.bf16.msra.mxu0 %v7930_v6  ;;  %5920 = vmatpush1.bf16.msra.mxu1 %v7933_v7  ;;  %v8001_v6 = vld [vmem:[%s11767_s1 + $0x4ac] ss:$16 sps:$4 sm:$0xff]   ;;  %v7996_v7 = vld [vmem:[%s11767_s1 + $0x4a0] ss:$16 sps:$4 sm:$0xff]  }
  0x6c   :  { %5362 = vmatprep.subr.bf16.mxu0 %v7938_v8  ;;  %5921 = vmatprep.subr.bf16.mxu1 %v7941_v9  ;;  %v7999_v8 = vld [vmem:[%s11767_s1 + $0x4a8] ss:$16 sps:$4 sm:$0xff]   ;;  %v8004_v9 = vld [vmem:[%s11767_s1 + $0x4c4] ss:$16 sps:$4 sm:$0xff]  }
  0x6f   :  { %5363 = vmatpush1.bf16.msra.mxu0 %v7936_v10  ;;  %5922 = vmatpush1.bf16.msra.mxu1 %v7939_v11  ;;  %v8007_v10 = vld [vmem:[%s11767_s1 + $0x4cc] ss:$16 sps:$4 sm:$0xff]   ;;  %v8002_v11 = vld [vmem:[%s11767_s1 + $0x4c0] ss:$16 sps:$4 sm:$0xff]  }
  0x70   :  { %5364 = vmatprep.subr.bf16.mxu0 %v7944_v12  ;;  %5923 = vmatprep.subr.bf16.mxu1 %v7947_v13  ;;  %v8005_v12 = vld [vmem:[%s11767_s1 + $0x4c8] ss:$16 sps:$4 sm:$0xff]   ;;  %v8010_v13 = vld [vmem:[%s11767_s1 + $0x4e4] ss:$16 sps:$4 sm:$0xff]  }
  0x73   :  { %5365 = vmatpush1.bf16.msra.mxu0 %v7942_v18  ;;  %5924 = vmatpush1.bf16.msra.mxu1 %v7945_v19  ;;  %v8016_v18 = vld [vmem:[%s11767_s1 + $0x504] ss:$16 sps:$4 sm:$0xff]   ;;  %v8019_v19 = vld [vmem:[%s11767_s1 + $0x50c] ss:$16 sps:$4 sm:$0xff]  }
  0x74   :  { %5366 = vmatprep.subr.bf16.mxu0 %v7950_v20  ;;  %5925 = vmatprep.subr.bf16.mxu1 %v7953_v22  ;;  %v8014_v20 = vld [vmem:[%s11767_s1 + $0x500] ss:$16 sps:$4 sm:$0xff]   ;;  %v8022_v22 = vld [vmem:[%s11767_s1 + $0x524] ss:$16 sps:$4 sm:$0xff]  }
  0x77   :  { %5367 = vmatpush1.bf16.msra.mxu0 %v7948_v23  ;;  %5926 = vmatpush1.bf16.msra.mxu1 %v7951_v24  ;;  %v8025_v23 = vld [vmem:[%s11767_s1 + $0x52c] ss:$16 sps:$4 sm:$0xff]   ;;  %v8020_v24 = vld [vmem:[%s11767_s1 + $0x520] ss:$16 sps:$4 sm:$0xff]  }
  0x78   :  { %5368 = vmatprep.subr.bf16.mxu0 %v7956_v25  ;;  %5927 = vmatprep.subr.bf16.mxu1 %v7959_v26  ;;  %v8023_v25 = vld [vmem:[%s11767_s1 + $0x528] ss:$16 sps:$4 sm:$0xff]   ;;  %v8028_v26 = vld [vmem:[%s11767_s1 + $0x544] ss:$16 sps:$4 sm:$0xff]  }
  0x7b   :  { %5369 = vmatpush1.bf16.msra.mxu0 %v7954_v31  ;;  %5928 = vmatpush1.bf16.msra.mxu1 %v7957_v32  ;;  %v8037_v31 = vld [vmem:[%s11767_s1 + $0x56c] ss:$16 sps:$4 sm:$0xff]   ;;  %v8032_v32 = vld [vmem:[%s11767_s1 + $0x560] ss:$16 sps:$4 sm:$0xff]  }
  0x7c   :  { %5370 = vmatprep.subr.bf16.mxu0 %v7962_v33  ;;  %5929 = vmatprep.subr.bf16.mxu1 %v7965_v34  ;;  %v8035_v33 = vld [vmem:[%s11767_s1 + $0x568] ss:$16 sps:$4 sm:$0xff]   ;;  %v8040_v34 = vld [vmem:[%s11767_s1 + $0x584] ss:$16 sps:$4 sm:$0xff]  }
  0x7f   :  { %5371 = vmatpush1.bf16.msra.mxu0 %v7960_v37  ;;  %5930 = vmatpush1.bf16.msra.mxu1 %v7963_v40  ;;  %v8041_v37 = vld [vmem:[%s11767_s1 + $0x588] ss:$16 sps:$4 sm:$0xff]   ;;  %v8044_v40 = vld [vmem:[%s11767_s1 + $0x5a0] ss:$16 sps:$4 sm:$0xff]  }
  0x80   :  { %5383 = vmatprep.subr.bf16.mxu0 %v7968_v41  ;;  %5942 = vmatprep.subr.bf16.mxu1 %v7971_v42  ;;  %v8047_v41 = vld [vmem:[%s11767_s1 + $0x5a8] ss:$16 sps:$4 sm:$0xff]   ;;  %v8052_v42 = vld [vmem:[%s11767_s1 + $0x5c4] ss:$16 sps:$4 sm:$0xff]  }
  0x82   :  { %5373 = vmatmul.mubr.bf16.vlgmr.msra.gmra.mrb[0].mxu0 %v9268_v17  ;;  %5932 = vmatmul.mubr.bf16.vlgmr.msra.gmra.mrb[0].mxu1 %v9268_v17  ;;  %v7978_v17 = vld [vmem:[%s11767_s1 + $0x440] ss:$16 sps:$4 sm:$0xff]  }
  0x83   :  { %5384 = vmatpush1.bf16.msra.mxu0 %v7966_v45  ;;  %5943 = vmatpush1.bf16.msra.mxu1 %v7969_v49  ;;  %v8053_v45 = vld [vmem:[%s11767_s1 + $0x5c8] ss:$16 sps:$4 sm:$0xff]   ;;  %v8058_v49 = vld [vmem:[%s11767_s1 + $0x5e4] ss:$16 sps:$4 sm:$0xff]  }
  0x84   :  { %5385 = vmatprep.subr.bf16.mxu0 %v7974_v50  ;;  %5944 = vmatprep.subr.bf16.mxu1 %v7977_v52  ;;  %v8061_v50 = vld [vmem:[%s11767_s1 + $0x5ec] ss:$16 sps:$4 sm:$0xff]   ;;  %v8056_v52 = vld [vmem:[%s11767_s1 + $0x5e0] ss:$16 sps:$4 sm:$0xff]  }
  0x85   :  { %5415 = vmatprep.mubr.bf16.mxu0 %v1026_v53  ;;  %5974 = vmatprep.mubr.bf16.mxu1 %v1026_v53  ;;  %v8059_v53 = vld [vmem:[%s11767_s1 + $0x5e8] ss:$16 sps:$4 sm:$0xff]  }
  0x87   :  { %5386 = vmatpush1.bf16.msra.mxu0 %v7972_v56  ;;  %5945 = vmatpush1.bf16.msra.mxu1 %v7975_v57  ;;  %v8064_v56 = vld [vmem:[%s11767_s1 + $0x604] ss:$16 sps:$4 sm:$0xff]   ;;  %v8067_v57 = vld [vmem:[%s11767_s1 + $0x60c] ss:$16 sps:$4 sm:$0xff]  }
  0x88   :  { %5387 = vmatprep.subr.bf16.mxu0 %v7980_v58  ;;  %5946 = vmatprep.subr.bf16.mxu1 %v7983_v59  ;;  %v1022_v58 = vcombine.low %v9508_v47, %v9511_v48  ;;  %v8062_v59 = vld [vmem:[%s11767_s1 + $0x600] ss:$16 sps:$4 sm:$0xff]   ;;  %v8073_v47 = vld [vmem:[%s11767_s1 + $0x62c] ss:$16 sps:$4 sm:$0xff]  }
  0x89   :  { %v8068_v48 = vld [vmem:[%s11767_s1 + $0x620] ss:$16 sps:$4 sm:$0xff]  }
  0x8b   :  { %5388 = vmatpush1.bf16.msra.mxu0 %v7978_v17  ;;  %5947 = vmatpush1.bf16.msra.mxu1 %v7981_v60  ;;  %v8065_v17 = vld [vmem:[%s11767_s1 + $0x608] ss:$16 sps:$4 sm:$0xff]   ;;  %v8070_v60 = vld [vmem:[%s11767_s1 + $0x624] ss:$16 sps:$4 sm:$0xff]  }
  0x8c   :  { %5389 = vmatprep.subr.bf16.mxu0 %v7986_v61  ;;  %5948 = vmatprep.subr.bf16.mxu1 %v7989_v62  ;;  %v8071_v61 = vld [vmem:[%s11767_s1 + $0x628] ss:$16 sps:$4 sm:$0xff]   ;;  %v8076_v62 = vld [vmem:[%s11767_s1 + $0x644] ss:$16 sps:$4 sm:$0xff]  }
  0x8f   :  { %5390 = vmatpush1.bf16.msra.mxu0 %v7984_v63  ;;  %5949 = vmatpush1.bf16.msra.mxu1 %v7987_v0  ;;  %v8079_v63 = vld [vmem:[%s11767_s1 + $0x64c] ss:$16 sps:$4 sm:$0xff]   ;;  %v8074_v0 = vld [vmem:[%s11767_s1 + $0x640] ss:$16 sps:$4 sm:$0xff]  }
  0x90   :  { %5391 = vmatprep.subr.bf16.mxu0 %v7992_v1  ;;  %5950 = vmatprep.subr.bf16.mxu1 %v7995_v2  ;;  %v8077_v1 = vld [vmem:[%s11767_s1 + $0x648] ss:$16 sps:$4 sm:$0xff]   ;;  %v8082_v2 = vld [vmem:[%s11767_s1 + $0x664] ss:$16 sps:$4 sm:$0xff]  }
  0x93   :  { %5392 = vmatpush1.bf16.msra.mxu0 %v7990_v3  ;;  %5951 = vmatpush1.bf16.msra.mxu1 %v7993_v4  ;;  %v8080_v3 = vld [vmem:[%s11767_s1 + $0x660] ss:$16 sps:$4 sm:$0xff]   ;;  %v8083_v4 = vld [vmem:[%s11767_s1 + $0x668] ss:$16 sps:$4 sm:$0xff]  }
  0x94   :  { %5393 = vmatprep.subr.bf16.mxu0 %v7998_v5  ;;  %5952 = vmatprep.subr.bf16.mxu1 %v8001_v6  ;;  %v8088_v5 = vld [vmem:[%s11767_s1 + $0x684] ss:$16 sps:$4 sm:$0xff]   ;;  %v8091_v6 = vld [vmem:[%s11767_s1 + $0x68c] ss:$16 sps:$4 sm:$0xff]  }
  0x97   :  { %5394 = vmatpush1.bf16.msra.mxu0 %v7996_v7  ;;  %5953 = vmatpush1.bf16.msra.mxu1 %v7999_v8  ;;  %v8086_v7 = vld [vmem:[%s11767_s1 + $0x680] ss:$16 sps:$4 sm:$0xff]   ;;  %v8089_v8 = vld [vmem:[%s11767_s1 + $0x688] ss:$16 sps:$4 sm:$0xff]  }
  0x98   :  { %5395 = vmatprep.subr.bf16.mxu0 %v8004_v9  ;;  %5954 = vmatprep.subr.bf16.mxu1 %v8007_v10  ;;  %v8094_v9 = vld [vmem:[%s11767_s1 + $0x6a4] ss:$16 sps:$4 sm:$0xff]   ;;  %v8097_v10 = vld [vmem:[%s11767_s1 + $0x6ac] ss:$16 sps:$4 sm:$0xff]  }
  0x9b   :  { %5396 = vmatpush1.bf16.msra.mxu0 %v8002_v11  ;;  %5955 = vmatpush1.bf16.msra.mxu1 %v8005_v12  ;;  %v8092_v11 = vld [vmem:[%s11767_s1 + $0x6a0] ss:$16 sps:$4 sm:$0xff]   ;;  %v8095_v12 = vld [vmem:[%s11767_s1 + $0x6a8] ss:$16 sps:$4 sm:$0xff]  }
  0x9c   :  { %5397 = vmatprep.subr.bf16.mxu0 %v8010_v13  ;;  %5956 = vmatprep.subr.bf16.mxu1 %v8013_v14  ;;  %v8100_v13 = vld [vmem:[%s11767_s1 + $0x6c4] ss:$16 sps:$4 sm:$0xff]   ;;  %v8103_v14 = vld [vmem:[%s11767_s1 + $0x6cc] ss:$16 sps:$4 sm:$0xff]  }
  0x9f   :  { %5398 = vmatpush1.bf16.msra.mxu0 %v8008_v15  ;;  %5957 = vmatpush1.bf16.msra.mxu1 %v8011_v16  ;;  %v8098_v15 = vld [vmem:[%s11767_s1 + $0x6c0] ss:$16 sps:$4 sm:$0xff]   ;;  %v8101_v16 = vld [vmem:[%s11767_s1 + $0x6c8] ss:$16 sps:$4 sm:$0xff]  }
  0xa0   :  { %5399 = vmatprep.subr.bf16.mxu0 %v8016_v18  ;;  %5958 = vmatprep.subr.bf16.mxu1 %v8019_v19  ;;  %v8106_v18 = vld [vmem:[%s11767_s1 + $0x6e4] ss:$16 sps:$4 sm:$0xff]   ;;  %v8104_v19 = vld [vmem:[%s11767_s1 + $0x6e0] ss:$16 sps:$4 sm:$0xff]  }
  0xa3   :  { %5400 = vmatpush1.bf16.msra.mxu0 %v8014_v20  ;;  %5959 = vmatpush1.bf16.msra.mxu1 %v8017_v21  ;;  %v8109_v20 = vld [vmem:[%s11767_s1 + $0x6ec] ss:$16 sps:$4 sm:$0xff]   ;;  %v8107_v21 = vld [vmem:[%s11767_s1 + $0x6e8] ss:$16 sps:$4 sm:$0xff]  }
  0xa4   :  { %5401 = vmatprep.subr.bf16.mxu0 %v8022_v22  ;;  %5960 = vmatprep.subr.bf16.mxu1 %v8025_v23  ;;  %v8112_v22 = vld [vmem:[%s11767_s1 + $0x704] ss:$16 sps:$4 sm:$0xff]   ;;  %v8115_v23 = vld [vmem:[%s11767_s1 + $0x70c] ss:$16 sps:$4 sm:$0xff]  }
  0xa7   :  { %5402 = vmatpush1.bf16.msra.mxu0 %v8020_v24  ;;  %5961 = vmatpush1.bf16.msra.mxu1 %v8023_v25  ;;  %v8110_v24 = vld [vmem:[%s11767_s1 + $0x700] ss:$16 sps:$4 sm:$0xff]   ;;  %v8113_v25 = vld [vmem:[%s11767_s1 + $0x708] ss:$16 sps:$4 sm:$0xff]  }
  0xa8   :  { %5403 = vmatprep.subr.bf16.mxu0 %v8028_v26  ;;  %5962 = vmatprep.subr.bf16.mxu1 %v8031_v27  ;;  %v8118_v26 = vld [vmem:[%s11767_s1 + $0x724] ss:$16 sps:$4 sm:$0xff]   ;;  %v8121_v27 = vld [vmem:[%s11767_s1 + $0x72c] ss:$16 sps:$4 sm:$0xff]  }
  0xab   :  { %5404 = vmatpush1.bf16.msra.mxu0 %v8026_v28  ;;  %5963 = vmatpush1.bf16.msra.mxu1 %v8029_v29  ;;  %v8116_v28 = vld [vmem:[%s11767_s1 + $0x720] ss:$16 sps:$4 sm:$0xff]   ;;  %v8119_v29 = vld [vmem:[%s11767_s1 + $0x728] ss:$16 sps:$4 sm:$0xff]  }
  0xac   :  { %5405 = vmatprep.subr.bf16.mxu0 %v8034_v30  ;;  %5964 = vmatprep.subr.bf16.mxu1 %v8037_v31  ;;  %v8124_v30 = vld [vmem:[%s11767_s1 + $0x744] ss:$16 sps:$4 sm:$0xff]   ;;  %v8127_v31 = vld [vmem:[%s11767_s1 + $0x74c] ss:$16 sps:$4 sm:$0xff]  }
  0xaf   :  { %5406 = vmatpush1.bf16.msra.mxu0 %v8032_v32  ;;  %5965 = vmatpush1.bf16.msra.mxu1 %v8035_v33  ;;  %v8122_v32 = vld [vmem:[%s11767_s1 + $0x740] ss:$16 sps:$4 sm:$0xff]   ;;  %v8125_v33 = vld [vmem:[%s11767_s1 + $0x748] ss:$16 sps:$4 sm:$0xff]  }
  0xb0   :  { %5407 = vmatprep.subr.bf16.mxu0 %v8040_v34  ;;  %5966 = vmatprep.subr.bf16.mxu1 %v8043_v35  ;;  %v8130_v34 = vld [vmem:[%s11767_s1 + $0x764] ss:$16 sps:$4 sm:$0xff]   ;;  %v8133_v35 = vld [vmem:[%s11767_s1 + $0x76c] ss:$16 sps:$4 sm:$0xff]  }
  0xb3   :  { %5408 = vmatpush1.bf16.msra.mxu0 %v8038_v36  ;;  %5967 = vmatpush1.bf16.msra.mxu1 %v8041_v37  ;;  %v8128_v36 = vld [vmem:[%s11767_s1 + $0x760] ss:$16 sps:$4 sm:$0xff]   ;;  %v8131_v37 = vld [vmem:[%s11767_s1 + $0x768] ss:$16 sps:$4 sm:$0xff]  }
  0xb4   :  { %5409 = vmatprep.subr.bf16.mxu0 %v8046_v38  ;;  %5968 = vmatprep.subr.bf16.mxu1 %v8049_v39  ;;  %v8136_v38 = vld [vmem:[%s11767_s1 + $0x784] ss:$16 sps:$4 sm:$0xff]   ;;  %v8134_v39 = vld [vmem:[%s11767_s1 + $0x780] ss:$16 sps:$4 sm:$0xff]  }
  0xb7   :  { %5410 = vmatpush1.bf16.msra.mxu0 %v8044_v40  ;;  %5969 = vmatpush1.bf16.msra.mxu1 %v8047_v41  ;;  %v8139_v40 = vld [vmem:[%s11767_s1 + $0x78c] ss:$16 sps:$4 sm:$0xff]   ;;  %v8137_v41 = vld [vmem:[%s11767_s1 + $0x788] ss:$16 sps:$4 sm:$0xff]  }
  0xb8   :  { %5411 = vmatprep.subr.bf16.mxu0 %v8052_v42  ;;  %5970 = vmatprep.subr.bf16.mxu1 %v8055_v43  ;;  %v8142_v42 = vld [vmem:[%s11767_s1 + $0x7a4] ss:$16 sps:$4 sm:$0xff]   ;;  %v8145_v43 = vld [vmem:[%s11767_s1 + $0x7ac] ss:$16 sps:$4 sm:$0xff]  }
  0xbb   :  { %5412 = vmatpush1.bf16.msra.mxu0 %v8050_v44  ;;  %5971 = vmatpush1.bf16.msra.mxu1 %v8053_v45  ;;  %v8254_v44 = vld [vmem:[%s11766_s0 + $0x8] ss:$25 sps:$4 sm:$0xff]   ;;  %v8256_v45 = vld [vmem:[%s11766_s0 + $0x3a] ss:$25 sps:$4 sm:$0xff]  }
  0xbc   :  { %5413 = vmatprep.subr.bf16.mxu0 %v8058_v49  ;;  %5972 = vmatprep.subr.bf16.mxu1 %v8061_v50  ;;  %v8258_v49 = vld [vmem:[%s11766_s0 + $0x6c] ss:$25 sps:$4 sm:$0xff]   ;;  %v8260_v50 = vld [vmem:[%s11766_s0 + $0x9e] ss:$25 sps:$4 sm:$0xff]  }
  0xbf   :  { %5414 = vmatpush1.bf16.msra.mxu0 %v8056_v52  ;;  %5973 = vmatpush1.bf16.msra.mxu1 %v8059_v53  ;;  %v8140_v52 = vld [vmem:[%s11767_s1 + $0x7a0] ss:$16 sps:$4 sm:$0xff]   ;;  %v8143_v53 = vld [vmem:[%s11767_s1 + $0x7a8] ss:$16 sps:$4 sm:$0xff]  }
  0xc0   :  { %5426 = vmatprep.subr.bf16.mxu0 %v8064_v56  ;;  %5985 = vmatprep.subr.bf16.mxu1 %v8067_v57  ;;  %v8148_v56 = vld [vmem:[%s11767_s1 + $0x7c4] ss:$16 sps:$4 sm:$0xff]   ;;  %v8151_v57 = vld [vmem:[%s11767_s1 + $0x7cc] ss:$16 sps:$4 sm:$0xff]  }
  0xc2   :  { %5416 = vmatmul.mubr.bf16.vlgmr.msra.gmra.mrb[0].mxu0 %v1022_v58  ;;  %5975 = vmatmul.mubr.bf16.vlgmr.msra.gmra.mrb[0].mxu1 %v1022_v58  ;;  %v1042_v58 = vrot.slane %v8254_v44, %v9219_v54  ;;  %v8206_v44 = vld [vmem:[%s11767_s1 + $0x900] ss:$16 sps:$4 sm:$0xff]  }
  0xc3   :  { %5427 = vmatpush1.bf16.msra.mxu0 %v8062_v59  ;;  %5986 = vmatpush1.bf16.msra.mxu1 %v8065_v17  ;;  %v1056_v59 = vrot.slane %v8256_v45, %v9219_v54  ;;  %v1070_v17 = vrot.slane %v8258_v49, %v9219_v54  ;;  %v8211_v45 = vld [vmem:[%s11767_s1 + $0x90c] ss:$16 sps:$4 sm:$0xff]   ;;  %v8209_v49 = vld [vmem:[%s11767_s1 + $0x908] ss:$16 sps:$4 sm:$0xff]  }
  0xc4   :  { %5428 = vmatprep.subr.bf16.mxu0 %v8070_v60  ;;  %5987 = vmatprep.subr.bf16.mxu1 %v8073_v47  ;;  %v1084_v60 = vrot.slane %v8260_v50, %v9219_v54  ;;  %v8146_v47 = vld [vmem:[%s11767_s1 + $0x7c0] ss:$16 sps:$4 sm:$0xff]   ;;  %v8214_v50 = vld [vmem:[%s11767_s1 + $0x924] ss:$16 sps:$4 sm:$0xff]  }
  0xc5   :  { %5458 = vmatprep.mubr.bf16.mxu0 %v9519_v51  ;;  %6017 = vmatprep.mubr.bf16.mxu1 %v9519_v51  ;;  %v8085_v51 = vld [vmem:[%s11767_s1 + $0x66c] ss:$16 sps:$4 sm:$0xff]  }
  0xc7   :  { %5429 = vmatpush1.bf16.msra.mxu0 %v8068_v48  ;;  %5988 = vmatpush1.bf16.msra.mxu1 %v8071_v61  ;;  %v8149_v48 = vld [vmem:[%s11767_s1 + $0x7c8] ss:$16 sps:$4 sm:$0xff]   ;;  %v8154_v61 = vld [vmem:[%s11767_s1 + $0x7e4] ss:$16 sps:$4 sm:$0xff]  }
  0xc8   :  { %5430 = vmatprep.subr.bf16.mxu0 %v8076_v62  ;;  %5989 = vmatprep.subr.bf16.mxu1 %v8079_v63  ;;  %v8157_v62 = vld [vmem:[%s11767_s1 + $0x7ec] ss:$16 sps:$4 sm:$0xff]   ;;  %v1093_v63 = vcombine.high %v1042_v58, %v1056_v59 }
  0xcb   :  { %5431 = vmatpush1.bf16.msra.mxu0 %v8074_v0  ;;  %5990 = vmatpush1.bf16.msra.mxu1 %v8077_v1  ;;  %v1097_v0 = vcombine.high %v1070_v17, %v1084_v60  ;;  %v8152_v1 = vld [vmem:[%s11767_s1 + $0x7e0] ss:$16 sps:$4 sm:$0xff]  }
  0xcc   :  { %5432 = vmatprep.subr.bf16.mxu0 %v8082_v2  ;;  %5991 = vmatprep.subr.bf16.mxu1 %v8085_v51  ;;  %v1092_v2 = vcombine.low %v1042_v58, %v1056_v59  ;;  %v1096_v51 = vcombine.low %v1070_v17, %v1084_v60  ;;  %v8218_v58 = vld [vmem:[%s11767_s1 + $0x940] ss:$16 sps:$4 sm:$0xff]   ;;  %v8223_v59 = vld [vmem:[%s11767_s1 + $0x94c] ss:$16 sps:$4 sm:$0xff]   ;;  %v8221_v17 = vld [vmem:[%s11767_s1 + $0x948] ss:$16 sps:$4 sm:$0xff]  }
  0xcd   :  { %v8226_v60 = vld [vmem:[%s11767_s1 + $0x964] ss:$16 sps:$4 sm:$0xff]  }
  0xcf   :  { %5433 = vmatpush1.bf16.msra.mxu0 %v8080_v3  ;;  %5992 = vmatpush1.bf16.msra.mxu1 %v8083_v4  ;;  %v8155_v3 = vld [vmem:[%s11767_s1 + $0x7e8] ss:$16 sps:$4 sm:$0xff]   ;;  %v8160_v4 = vld [vmem:[%s11767_s1 + $0x804] ss:$16 sps:$4 sm:$0xff]  }
  0xd0   :  { %5434 = vmatprep.subr.bf16.mxu0 %v8088_v5  ;;  %5993 = vmatprep.subr.bf16.mxu1 %v8091_v6  ;;  %v8163_v5 = vld [vmem:[%s11767_s1 + $0x80c] ss:$16 sps:$4 sm:$0xff]   ;;  %v1120_v6 = vrot.slane %v1093_v63, %v9219_v54  ;;  %v8230_v63 = vld [vmem:[%s11767_s1 + $0x980] ss:$16 sps:$4 sm:$0xff]  }
  0xd3   :  { %5435 = vmatpush1.bf16.msra.mxu0 %v8086_v7  ;;  %5994 = vmatpush1.bf16.msra.mxu1 %v8089_v8  ;;  %v1148_v7 = vrot.slane %v1097_v0, %v9219_v54  ;;  %v8158_v8 = vld [vmem:[%s11767_s1 + $0x800] ss:$16 sps:$4 sm:$0xff]   ;;  %v8235_v0 = vld [vmem:[%s11767_s1 + $0x98c] ss:$16 sps:$4 sm:$0xff]  }
  0xd4   :  { %5436 = vmatprep.subr.bf16.mxu0 %v8094_v9  ;;  %5995 = vmatprep.subr.bf16.mxu1 %v8097_v10  ;;  %v9928_v9 = vrot.slane %v1092_v2, %v9219_v54  ;;  %v9931_v10 = vrot.slane %v1096_v51, %v9219_v54  ;;  %v8238_v2 = vld [vmem:[%s11767_s1 + $0x9a4] ss:$16 sps:$4 sm:$0xff]   ;;  %v8236_v51 = vld [vmem:[%s11767_s1 + $0x9a0] ss:$16 sps:$4 sm:$0xff]  }
  0xd7   :  { %5437 = vmatpush1.bf16.msra.mxu0 %v8092_v11  ;;  %5996 = vmatpush1.bf16.msra.mxu1 %v8095_v12  ;;  %v8161_v11 = vld [vmem:[%s11767_s1 + $0x808] ss:$16 sps:$4 sm:$0xff]   ;;  %v8166_v12 = vld [vmem:[%s11767_s1 + $0x824] ss:$16 sps:$4 sm:$0xff]  }
  0xd8   :  { %5438 = vmatprep.subr.bf16.mxu0 %v8100_v13  ;;  %5997 = vmatprep.subr.bf16.mxu1 %v8103_v14  ;;  %v9939_v13 = vcombine.high %v1120_v6, %v1148_v7  ;;  %v8169_v14 = vld [vmem:[%s11767_s1 + $0x82c] ss:$16 sps:$4 sm:$0xff]  }
  0xdb   :  { %5439 = vmatpush1.bf16.msra.mxu0 %v8098_v15  ;;  %5998 = vmatpush1.bf16.msra.mxu1 %v8101_v16  ;;  %v1160_v15 = vcombine.low %v1120_v6, %v1148_v7  ;;  %v9946_v16 = vcombine.high %v9928_v9, %v9931_v10  ;;  %v8242_v6 = vld [vmem:[%s11767_s1 + $0x9c0] ss:$16 sps:$4 sm:$0xff]   ;;  %v8247_v7 = vld [vmem:[%s11767_s1 + $0x9cc] ss:$16 sps:$4 sm:$0xff]  }
  0xdc   :  { %5440 = vmatprep.subr.bf16.mxu0 %v8106_v18  ;;  %5999 = vmatprep.subr.bf16.mxu1 %v8109_v20  ;;  %v8164_v18 = vld [vmem:[%s11767_s1 + $0x820] ss:$16 sps:$4 sm:$0xff]   ;;  %v8172_v20 = vld [vmem:[%s11767_s1 + $0x844] ss:$16 sps:$4 sm:$0xff]  }
  0xdf   :  { %5441 = vmatpush1.bf16.msra.mxu0 %v8104_v19  ;;  %6000 = vmatpush1.bf16.msra.mxu1 %v8107_v21  ;;  %v8167_v19 = vld [vmem:[%s11767_s1 + $0x828] ss:$16 sps:$4 sm:$0xff]   ;;  %v8175_v21 = vld [vmem:[%s11767_s1 + $0x84c] ss:$16 sps:$4 sm:$0xff]  }
  0xe0   :  { %5442 = vmatprep.subr.bf16.mxu0 %v8112_v22  ;;  %6001 = vmatprep.subr.bf16.mxu1 %v8115_v23  ;;  %v8173_v22 = vld [vmem:[%s11767_s1 + $0x848] ss:$16 sps:$4 sm:$0xff]   ;;  %v8178_v23 = vld [vmem:[%s11767_s1 + $0x864] ss:$16 sps:$4 sm:$0xff]  }
  0xe3   :  { %5443 = vmatpush1.bf16.msra.mxu0 %v8110_v24  ;;  %6002 = vmatpush1.bf16.msra.mxu1 %v8113_v25  ;;  %v8181_v24 = vld [vmem:[%s11767_s1 + $0x86c] ss:$16 sps:$4 sm:$0xff]   ;;  %v8176_v25 = vld [vmem:[%s11767_s1 + $0x860] ss:$16 sps:$4 sm:$0xff]  }
  0xe4   :  { %5444 = vmatprep.subr.bf16.mxu0 %v8118_v26  ;;  %6003 = vmatprep.subr.bf16.mxu1 %v8121_v27  ;;  %v8179_v26 = vld [vmem:[%s11767_s1 + $0x868] ss:$16 sps:$4 sm:$0xff]   ;;  %v8184_v27 = vld [vmem:[%s11767_s1 + $0x884] ss:$16 sps:$4 sm:$0xff]  }
  0xe7   :  { %5445 = vmatpush1.bf16.msra.mxu0 %v8116_v28  ;;  %6004 = vmatpush1.bf16.msra.mxu1 %v8119_v29  ;;  %v8187_v28 = vld [vmem:[%s11767_s1 + $0x88c] ss:$16 sps:$4 sm:$0xff]   ;;  %v8182_v29 = vld [vmem:[%s11767_s1 + $0x880] ss:$16 sps:$4 sm:$0xff]  }
  0xe8   :  { %5446 = vmatprep.subr.bf16.mxu0 %v8124_v30  ;;  %6005 = vmatprep.subr.bf16.mxu1 %v8127_v31  ;;  %v8185_v30 = vld [vmem:[%s11767_s1 + $0x888] ss:$16 sps:$4 sm:$0xff]   ;;  %v8190_v31 = vld [vmem:[%s11767_s1 + $0x8a4] ss:$16 sps:$4 sm:$0xff]  }
  0xeb   :  { %5447 = vmatpush1.bf16.msra.mxu0 %v8122_v32  ;;  %6006 = vmatpush1.bf16.msra.mxu1 %v8125_v33  ;;  %v8193_v32 = vld [vmem:[%s11767_s1 + $0x8ac] ss:$16 sps:$4 sm:$0xff]   ;;  %v8188_v33 = vld [vmem:[%s11767_s1 + $0x8a0] ss:$16 sps:$4 sm:$0xff]  }
  0xec   :  { %5448 = vmatprep.subr.bf16.mxu0 %v8130_v34  ;;  %6007 = vmatprep.subr.bf16.mxu1 %v8133_v35  ;;  %v8191_v34 = vld [vmem:[%s11767_s1 + $0x8a8] ss:$16 sps:$4 sm:$0xff]   ;;  %v8196_v35 = vld [vmem:[%s11767_s1 + $0x8c4] ss:$16 sps:$4 sm:$0xff]  }
  0xef   :  { %5449 = vmatpush1.bf16.msra.mxu0 %v8128_v36  ;;  %6008 = vmatpush1.bf16.msra.mxu1 %v8131_v37  ;;  %v8199_v36 = vld [vmem:[%s11767_s1 + $0x8cc] ss:$16 sps:$4 sm:$0xff]   ;;  %v8194_v37 = vld [vmem:[%s11767_s1 + $0x8c0] ss:$16 sps:$4 sm:$0xff]  }
  0xf0   :  { %5450 = vmatprep.subr.bf16.mxu0 %v8136_v38  ;;  %6009 = vmatprep.subr.bf16.mxu1 %v8139_v40  ;;  %v8197_v38 = vld [vmem:[%s11767_s1 + $0x8c8] ss:$16 sps:$4 sm:$0xff]   ;;  %v8205_v40 = vld [vmem:[%s11767_s1 + $0x8ec] ss:$16 sps:$4 sm:$0xff]  }
  0xf3   :  { %5451 = vmatpush1.bf16.msra.mxu0 %v8134_v39  ;;  %6010 = vmatpush1.bf16.msra.mxu1 %v8137_v41  ;;  %v8202_v39 = vld [vmem:[%s11767_s1 + $0x8e4] ss:$16 sps:$4 sm:$0xff]   ;;  %v8200_v41 = vld [vmem:[%s11767_s1 + $0x8e0] ss:$16 sps:$4 sm:$0xff]  }
  0xf4   :  { %5452 = vmatprep.subr.bf16.mxu0 %v8142_v42  ;;  %6011 = vmatprep.subr.bf16.mxu1 %v8145_v43  ;;  %v8203_v42 = vld [vmem:[%s11767_s1 + $0x8e8] ss:$16 sps:$4 sm:$0xff]   ;;  %v8208_v43 = vld [vmem:[%s11767_s1 + $0x904] ss:$16 sps:$4 sm:$0xff]  }
  0xf7   :  { %5453 = vmatpush1.bf16.msra.mxu0 %v8140_v52  ;;  %6012 = vmatpush1.bf16.msra.mxu1 %v8143_v53  ;;  %v8212_v52 = vld [vmem:[%s11767_s1 + $0x920] ss:$16 sps:$4 sm:$0xff]   ;;  %v8217_v53 = vld [vmem:[%s11767_s1 + $0x92c] ss:$16 sps:$4 sm:$0xff]  }
  0xf8   :  { %5454 = vmatprep.subr.bf16.mxu0 %v8148_v56  ;;  %6013 = vmatprep.subr.bf16.mxu1 %v8151_v57  ;;  %v8215_v56 = vld [vmem:[%s11767_s1 + $0x928] ss:$16 sps:$4 sm:$0xff]   ;;  %v8220_v57 = vld [vmem:[%s11767_s1 + $0x944] ss:$16 sps:$4 sm:$0xff]  }
  0xfb   :  { %5455 = vmatpush1.bf16.msra.mxu0 %v8146_v47  ;;  %6014 = vmatpush1.bf16.msra.mxu1 %v8149_v48  ;;  %v8224_v47 = vld [vmem:[%s11767_s1 + $0x960] ss:$16 sps:$4 sm:$0xff]   ;;  %v8229_v48 = vld [vmem:[%s11767_s1 + $0x96c] ss:$16 sps:$4 sm:$0xff]  }
  0xfc   :  { %5456 = vmatprep.subr.bf16.mxu0 %v8154_v61  ;;  %6015 = vmatprep.subr.bf16.mxu1 %v8157_v62  ;;  %v8227_v61 = vld [vmem:[%s11767_s1 + $0x968] ss:$16 sps:$4 sm:$0xff]   ;;  %v8232_v62 = vld [vmem:[%s11767_s1 + $0x984] ss:$16 sps:$4 sm:$0xff]  }
  0xff   :  { %5457 = vmatpush1.bf16.msra.mxu0 %v8152_v1  ;;  %6016 = vmatpush1.bf16.msra.mxu1 %v8155_v3  ;;  %v8233_v1 = vld [vmem:[%s11767_s1 + $0x988] ss:$16 sps:$4 sm:$0xff]   ;;  %v8241_v3 = vld [vmem:[%s11767_s1 + $0x9ac] ss:$16 sps:$4 sm:$0xff]  }
 0x100   :  { %5469 = vmatprep.subr.bf16.mxu0 %v8160_v4  ;;  %6028 = vmatprep.subr.bf16.mxu1 %v8163_v5  ;;  %v8239_v4 = vld [vmem:[%s11767_s1 + $0x9a8] ss:$16 sps:$4 sm:$0xff]   ;;  %v8244_v5 = vld [vmem:[%s11767_s1 + $0x9c4] ss:$16 sps:$4 sm:$0xff]  }
 0x102   :  { %5459 = vmatmul.mubr.bf16.vlgmr.msra.gmra.mrb[0].mxu0 %v9526_v55  ;;  %6018 = vmatmul.mubr.bf16.vlgmr.msra.gmra.mrb[0].mxu1 %v9526_v55  ;;  %v8170_v55 = vld [vmem:[%s11767_s1 + $0x840] ss:$16 sps:$4 sm:$0xff]  }
 0x103   :  { %5470 = vmatpush1.bf16.msra.mxu0 %v8158_v8  ;;  %6029 = vmatpush1.bf16.msra.mxu1 %v8161_v11  ;;  %v8245_v8 = vld [vmem:[%s11767_s1 + $0x9c8] ss:$16 sps:$4 sm:$0xff]   ;;  %v8250_v11 = vld [vmem:[%s11767_s1 + $0x9e4] ss:$16 sps:$4 sm:$0xff]  }
 0x104   :  { %5471 = vmatprep.subr.bf16.mxu0 %v8166_v12  ;;  %6030 = vmatprep.subr.bf16.mxu1 %v8169_v14  ;;  %v8253_v12 = vld [vmem:[%s11767_s1 + $0x9ec] ss:$16 sps:$4 sm:$0xff]   ;;  %v8248_v14 = vld [vmem:[%s11767_s1 + $0x9e0] ss:$16 sps:$4 sm:$0xff]  }
 0x105   :  { %5501 = vmatprep.mubr.bf16.mxu0 %v1160_v15  ;;  %6060 = vmatprep.mubr.bf16.mxu1 %v1160_v15  ;;  %v8251_v15 = vld [vmem:[%s11767_s1 + $0x9e8] ss:$16 sps:$4 sm:$0xff]  }
 0x107   :  { %5472 = vmatpush1.bf16.msra.mxu0 %v8164_v18  ;;  %6031 = vmatpush1.bf16.msra.mxu1 %v8167_v19  ;;  %v8264_v18 = vld [vmem:[%s11767_s1 + $0xa04] ss:$16 sps:$4 sm:$0xff]   ;;  %v8262_v19 = vld [vmem:[%s11767_s1 + $0xa00] ss:$16 sps:$4 sm:$0xff]  }
 0x108   :  { %5473 = vmatprep.subr.bf16.mxu0 %v8172_v20  ;;  %6032 = vmatprep.subr.bf16.mxu1 %v8175_v21  ;;  %v8267_v20 = vld [vmem:[%s11767_s1 + $0xa0c] ss:$16 sps:$4 sm:$0xff]   ;;  %v1156_v21 = vcombine.low %v9928_v9, %v9931_v10  ;;  %v8271_v10 = vld [vmem:[%s11767_s1 + $0xa28] ss:$16 sps:$4 sm:$0xff]  }
 0x109   :  { %v8273_v9 = vld [vmem:[%s11767_s1 + $0xa2c] ss:$16 sps:$4 sm:$0xff]  }
 0x10b   :  { %5474 = vmatpush1.bf16.msra.mxu0 %v8170_v55  ;;  %6033 = vmatpush1.bf16.msra.mxu1 %v8173_v22  ;;  %v8265_v55 = vld [vmem:[%s11767_s1 + $0xa08] ss:$16 sps:$4 sm:$0xff]   ;;  %v8270_v22 = vld [vmem:[%s11767_s1 + $0xa24] ss:$16 sps:$4 sm:$0xff]  }
 0x10c   :  { %5475 = vmatprep.subr.bf16.mxu0 %v8178_v23  ;;  %6034 = vmatprep.subr.bf16.mxu1 %v8181_v24  ;;  %v8268_v23 = vld [vmem:[%s11767_s1 + $0xa20] ss:$16 sps:$4 sm:$0xff]   ;;  %v8276_v24 = vld [vmem:[%s11767_s1 + $0xa44] ss:$16 sps:$4 sm:$0xff]  }
 0x10f   :  { %5476 = vmatpush1.bf16.msra.mxu0 %v8176_v25  ;;  %6035 = vmatpush1.bf16.msra.mxu1 %v8179_v26  ;;  %v8274_v25 = vld [vmem:[%s11767_s1 + $0xa40] ss:$16 sps:$4 sm:$0xff]   ;;  %v8279_v26 = vld [vmem:[%s11767_s1 + $0xa4c] ss:$16 sps:$4 sm:$0xff]  }
 0x110   :  { %5477 = vmatprep.subr.bf16.mxu0 %v8184_v27  ;;  %6036 = vmatprep.subr.bf16.mxu1 %v8187_v28  ;;  %v8277_v27 = vld [vmem:[%s11767_s1 + $0xa48] ss:$16 sps:$4 sm:$0xff]   ;;  %v8282_v28 = vld [vmem:[%s11767_s1 + $0xa64] ss:$16 sps:$4 sm:$0xff]  }
 0x113   :  { %5478 = vmatpush1.bf16.msra.mxu0 %v8182_v29  ;;  %6037 = vmatpush1.bf16.msra.mxu1 %v8185_v30  ;;  %v8280_v29 = vld [vmem:[%s11767_s1 + $0xa60] ss:$16 sps:$4 sm:$0xff]   ;;  %v8283_v30 = vld [vmem:[%s11767_s1 + $0xa68] ss:$16 sps:$4 sm:$0xff]  }
 0x114   :  { %5479 = vmatprep.subr.bf16.mxu0 %v8190_v31  ;;  %6038 = vmatprep.subr.bf16.mxu1 %v8193_v32  ;;  %v8288_v31 = vld [vmem:[%s11767_s1 + $0xa84] ss:$16 sps:$4 sm:$0xff]   ;;  %v8286_v32 = vld [vmem:[%s11767_s1 + $0xa80] ss:$16 sps:$4 sm:$0xff]  }
 0x117   :  { %5480 = vmatpush1.bf16.msra.mxu0 %v8188_v33  ;;  %6039 = vmatpush1.bf16.msra.mxu1 %v8191_v34  ;;  %v8291_v33 = vld [vmem:[%s11767_s1 + $0xa8c] ss:$16 sps:$4 sm:$0xff]   ;;  %v8289_v34 = vld [vmem:[%s11767_s1 + $0xa88] ss:$16 sps:$4 sm:$0xff]  }
 0x118   :  { %5481 = vmatprep.subr.bf16.mxu0 %v8196_v35  ;;  %6040 = vmatprep.subr.bf16.mxu1 %v8199_v36  ;;  %v8294_v35 = vld [vmem:[%s11767_s1 + $0xaa4] ss:$16 sps:$4 sm:$0xff]   ;;  %v8292_v36 = vld [vmem:[%s11767_s1 + $0xaa0] ss:$16 sps:$4 sm:$0xff]  }
 0x11b   :  { %5482 = vmatpush1.bf16.msra.mxu0 %v8194_v37  ;;  %6041 = vmatpush1.bf16.msra.mxu1 %v8197_v38  ;;  %v8297_v37 = vld [vmem:[%s11767_s1 + $0xaac] ss:$16 sps:$4 sm:$0xff]   ;;  %v8295_v38 = vld [vmem:[%s11767_s1 + $0xaa8] ss:$16 sps:$4 sm:$0xff]  }
 0x11c   :  { %5483 = vmatprep.subr.bf16.mxu0 %v8202_v39  ;;  %6042 = vmatprep.subr.bf16.mxu1 %v8205_v40  ;;  %v8300_v39 = vld [vmem:[%s11767_s1 + $0xac4] ss:$16 sps:$4 sm:$0xff]   ;;  %v8298_v40 = vld [vmem:[%s11767_s1 + $0xac0] ss:$16 sps:$4 sm:$0xff]  }
 0x11f   :  { %5484 = vmatpush1.bf16.msra.mxu0 %v8200_v41  ;;  %6043 = vmatpush1.bf16.msra.mxu1 %v8203_v42  ;;  %v8303_v41 = vld [vmem:[%s11767_s1 + $0xacc] ss:$16 sps:$4 sm:$0xff]   ;;  %v8301_v42 = vld [vmem:[%s11767_s1 + $0xac8] ss:$16 sps:$4 sm:$0xff]  }
 0x120   :  { %5485 = vmatprep.subr.bf16.mxu0 %v8208_v43  ;;  %6044 = vmatprep.subr.bf16.mxu1 %v8211_v45  ;;  %v8306_v43 = vld [vmem:[%s11767_s1 + $0xae4] ss:$16 sps:$4 sm:$0xff]   ;;  %v8309_v45 = vld [vmem:[%s11767_s1 + $0xaec] ss:$16 sps:$4 sm:$0xff]  }
 0x123   :  { %5486 = vmatpush1.bf16.msra.mxu0 %v8206_v44  ;;  %6045 = vmatpush1.bf16.msra.mxu1 %v8209_v49  ;;  %v8304_v44 = vld [vmem:[%s11767_s1 + $0xae0] ss:$16 sps:$4 sm:$0xff]   ;;  %v8307_v49 = vld [vmem:[%s11767_s1 + $0xae8] ss:$16 sps:$4 sm:$0xff]  }
 0x124   :  { %5487 = vmatprep.subr.bf16.mxu0 %v8214_v50  ;;  %6046 = vmatprep.subr.bf16.mxu1 %v8217_v53  ;;  %v8312_v50 = vld [vmem:[%s11767_s1 + $0xb04] ss:$16 sps:$4 sm:$0xff]   ;;  %v8315_v53 = vld [vmem:[%s11767_s1 + $0xb0c] ss:$16 sps:$4 sm:$0xff]  }
 0x127   :  { %5488 = vmatpush1.bf16.msra.mxu0 %v8212_v52  ;;  %6047 = vmatpush1.bf16.msra.mxu1 %v8215_v56  ;;  %v8310_v52 = vld [vmem:[%s11767_s1 + $0xb00] ss:$16 sps:$4 sm:$0xff]   ;;  %v8313_v56 = vld [vmem:[%s11767_s1 + $0xb08] ss:$16 sps:$4 sm:$0xff]  }
 0x128   :  { %5489 = vmatprep.subr.bf16.mxu0 %v8220_v57  ;;  %6048 = vmatprep.subr.bf16.mxu1 %v8223_v59  ;;  %v8318_v57 = vld [vmem:[%s11767_s1 + $0xb24] ss:$16 sps:$4 sm:$0xff]   ;;  %v8321_v59 = vld [vmem:[%s11767_s1 + $0xb2c] ss:$16 sps:$4 sm:$0xff]  }
 0x12b   :  { %5490 = vmatpush1.bf16.msra.mxu0 %v8218_v58  ;;  %6049 = vmatpush1.bf16.msra.mxu1 %v8221_v17  ;;  %v8316_v58 = vld [vmem:[%s11767_s1 + $0xb20] ss:$16 sps:$4 sm:$0xff]   ;;  %v8319_v17 = vld [vmem:[%s11767_s1 + $0xb28] ss:$16 sps:$4 sm:$0xff]  }
 0x12c   :  { %5491 = vmatprep.subr.bf16.mxu0 %v8226_v60  ;;  %6050 = vmatprep.subr.bf16.mxu1 %v8229_v48  ;;  %v8324_v60 = vld [vmem:[%s11767_s1 + $0xb44] ss:$16 sps:$4 sm:$0xff]   ;;  %v8327_v48 = vld [vmem:[%s11767_s1 + $0xb4c] ss:$16 sps:$4 sm:$0xff]  }
 0x12f   :  { %5492 = vmatpush1.bf16.msra.mxu0 %v8224_v47  ;;  %6051 = vmatpush1.bf16.msra.mxu1 %v8227_v61  ;;  %v8322_v47 = vld [vmem:[%s11767_s1 + $0xb40] ss:$16 sps:$4 sm:$0xff]   ;;  %v8325_v61 = vld [vmem:[%s11767_s1 + $0xb48] ss:$16 sps:$4 sm:$0xff]  }
 0x130   :  { %5493 = vmatprep.subr.bf16.mxu0 %v8232_v62  ;;  %6052 = vmatprep.subr.bf16.mxu1 %v8235_v0  ;;  %v8330_v62 = vld [vmem:[%s11767_s1 + $0xb64] ss:$16 sps:$4 sm:$0xff]   ;;  %v8333_v0 = vld [vmem:[%s11767_s1 + $0xb6c] ss:$16 sps:$4 sm:$0xff]  }
 0x133   :  { %5494 = vmatpush1.bf16.msra.mxu0 %v8230_v63  ;;  %6053 = vmatpush1.bf16.msra.mxu1 %v8233_v1  ;;  %v8328_v63 = vld [vmem:[%s11767_s1 + $0xb60] ss:$16 sps:$4 sm:$0xff]   ;;  %v8331_v1 = vld [vmem:[%s11767_s1 + $0xb68] ss:$16 sps:$4 sm:$0xff]  }
 0x134   :  { %5495 = vmatprep.subr.bf16.mxu0 %v8238_v2  ;;  %6054 = vmatprep.subr.bf16.mxu1 %v8241_v3  ;;  %v8336_v2 = vld [vmem:[%s11767_s1 + $0xb84] ss:$16 sps:$4 sm:$0xff]   ;;  %v8339_v3 = vld [vmem:[%s11767_s1 + $0xb8c] ss:$16 sps:$4 sm:$0xff]  }
 0x137   :  { %5496 = vmatpush1.bf16.msra.mxu0 %v8236_v51  ;;  %6055 = vmatpush1.bf16.msra.mxu1 %v8239_v4  ;;  %v8334_v51 = vld [vmem:[%s11767_s1 + $0xb80] ss:$16 sps:$4 sm:$0xff]   ;;  %v8337_v4 = vld [vmem:[%s11767_s1 + $0xb88] ss:$16 sps:$4 sm:$0xff]  }
 0x138   :  { %5497 = vmatprep.subr.bf16.mxu0 %v8244_v5  ;;  %6056 = vmatprep.subr.bf16.mxu1 %v8247_v7  ;;  %v8342_v5 = vld [vmem:[%s11767_s1 + $0xba4] ss:$16 sps:$4 sm:$0xff]  }
 0x139   :  { %v8454_v7 = vld [vmem:[%s11766_s0 + $0xc] ss:$25 sps:$4 sm:$0xff]  }
 0x13b   :  { %5498 = vmatpush1.bf16.msra.mxu0 %v8242_v6  ;;  %6057 = vmatpush1.bf16.msra.mxu1 %v8245_v8  ;;  %v8345_v6 = vld [vmem:[%s11767_s1 + $0xbac] ss:$16 sps:$4 sm:$0xff]  }
 0x13c   :  { %5499 = vmatprep.subr.bf16.mxu0 %v8250_v11  ;;  %6058 = vmatprep.subr.bf16.mxu1 %v8253_v12  ;;  %v8455_v8 = vld [vmem:[%s11766_s0 + $0x3e] ss:$25 sps:$4 sm:$0xff]   ;;  %v8456_v11 = vld [vmem:[%s11766_s0 + $0x70] ss:$25 sps:$4 sm:$0xff]  }
 0x13d   :  { %v8340_v12 = vld [vmem:[%s11767_s1 + $0xba0] ss:$16 sps:$4 sm:$0xff]  }
 0x13f   :  { %5500 = vmatpush1.bf16.msra.mxu0 %v8248_v14  ;;  %6059 = vmatpush1.bf16.msra.mxu1 %v8251_v15  ;;  %v8457_v14 = vld [vmem:[%s11766_s0 + $0xa2] ss:$25 sps:$4 sm:$0xff]  }
 0x140   :  { %5512 = vmatprep.subr.bf16.mxu0 %v8264_v18  ;;  %6071 = vmatprep.subr.bf16.mxu1 %v8267_v20  ;;  %v8343_v15 = vld [vmem:[%s11767_s1 + $0xba8] ss:$16 sps:$4 sm:$0xff]   ;;  %v8348_v18 = vld [vmem:[%s11767_s1 + $0xbc4] ss:$16 sps:$4 sm:$0xff]   ;;  %v8351_v20 = vld [vmem:[%s11767_s1 + $0xbcc] ss:$16 sps:$4 sm:$0xff]  }
 0x142   :  { %5502 = vmatmul.mubr.bf16.vlgmr.msra.gmra.mrb[0].mxu0 %v1156_v21  ;;  %6061 = vmatmul.mubr.bf16.vlgmr.msra.gmra.mrb[0].mxu1 %v1156_v21  ;;  %v1049_v21 = vrot.slane %v8454_v7, %v9219_v54  ;;  %v8406_v7 = vld [vmem:[%s11767_s1 + $0xd00] ss:$16 sps:$4 sm:$0xff]  }
 0x143   :  { %5513 = vmatpush1.bf16.msra.mxu0 %v8262_v19  ;;  %6072 = vmatpush1.bf16.msra.mxu1 %v8265_v55  ;;  %v8346_v19 = vld [vmem:[%s11767_s1 + $0xbc0] ss:$16 sps:$4 sm:$0xff]   ;;  %v1063_v55 = vrot.slane %v8455_v8, %v9219_v54  ;;  %v8411_v8 = vld [vmem:[%s11767_s1 + $0xd0c] ss:$16 sps:$4 sm:$0xff]  }
 0x144   :  { %5514 = vmatprep.subr.bf16.mxu0 %v8270_v22  ;;  %6073 = vmatprep.subr.bf16.mxu1 %v8273_v9  ;;  %v1077_v22 = vrot.slane %v8456_v11, %v9219_v54  ;;  %v8349_v9 = vld [vmem:[%s11767_s1 + $0xbc8] ss:$16 sps:$4 sm:$0xff]  }
 0x145   :  { %5544 = vmatprep.mubr.bf16.mxu0 %v9939_v13  ;;  %6103 = vmatprep.mubr.bf16.mxu1 %v9939_v13  ;;  %v8285_v13 = vld [vmem:[%s11767_s1 + $0xa6c] ss:$16 sps:$4 sm:$0xff]   ;;  %v8409_v11 = vld [vmem:[%s11767_s1 + $0xd08] ss:$16 sps:$4 sm:$0xff]  }
 0x147   :  { %5515 = vmatpush1.bf16.msra.mxu0 %v8268_v23  ;;  %6074 = vmatpush1.bf16.msra.mxu1 %v8271_v10  ;;  %v1091_v23 = vrot.slane %v8457_v14, %v9219_v54  ;;  %v8354_v10 = vld [vmem:[%s11767_s1 + $0xbe4] ss:$16 sps:$4 sm:$0xff]   ;;  %v8412_v14 = vld [vmem:[%s11767_s1 + $0xd20] ss:$16 sps:$4 sm:$0xff]  }
 0x148   :  { %5516 = vmatprep.subr.bf16.mxu0 %v8276_v24  ;;  %6075 = vmatprep.subr.bf16.mxu1 %v8279_v26  ;;  %v8352_v24 = vld [vmem:[%s11767_s1 + $0xbe0] ss:$16 sps:$4 sm:$0xff]   ;;  %v1095_v26 = vcombine.high %v1049_v21, %v1063_v55 }
 0x14b   :  { %5517 = vmatpush1.bf16.msra.mxu0 %v8274_v25  ;;  %6076 = vmatpush1.bf16.msra.mxu1 %v8277_v27  ;;  %v8357_v25 = vld [vmem:[%s11767_s1 + $0xbec] ss:$16 sps:$4 sm:$0xff]   ;;  %v1099_v27 = vcombine.high %v1077_v22, %v1091_v23 }
 0x14c   :  { %5518 = vmatprep.subr.bf16.mxu0 %v8282_v28  ;;  %6077 = vmatprep.subr.bf16.mxu1 %v8285_v13  ;;  %v1094_v28 = vcombine.low %v1049_v21, %v1063_v55  ;;  %v8355_v13 = vld [vmem:[%s11767_s1 + $0xbe8] ss:$16 sps:$4 sm:$0xff]   ;;  %v8423_v21 = vld [vmem:[%s11767_s1 + $0xd4c] ss:$16 sps:$4 sm:$0xff]  }
 0x14d   :  { %v8421_v55 = vld [vmem:[%s11767_s1 + $0xd48] ss:$16 sps:$4 sm:$0xff]  }
 0x14f   :  { %5519 = vmatpush1.bf16.msra.mxu0 %v8280_v29  ;;  %6078 = vmatpush1.bf16.msra.mxu1 %v8283_v30  ;;  %v1098_v29 = vcombine.low %v1077_v22, %v1091_v23  ;;  %v8360_v30 = vld [vmem:[%s11767_s1 + $0xc04] ss:$16 sps:$4 sm:$0xff]   ;;  %v8424_v23 = vld [vmem:[%s11767_s1 + $0xd60] ss:$16 sps:$4 sm:$0xff]  }
 0x150   :  { %5520 = vmatprep.subr.bf16.mxu0 %v8288_v31  ;;  %6079 = vmatprep.subr.bf16.mxu1 %v8291_v33  ;;  %v8358_v31 = vld [vmem:[%s11767_s1 + $0xc00] ss:$16 sps:$4 sm:$0xff]   ;;  %v1127_v33 = vrot.slane %v1095_v26, %v9219_v54  ;;  %v8426_v22 = vld [vmem:[%s11767_s1 + $0xd64] ss:$16 sps:$4 sm:$0xff]   ;;  %v8435_v26 = vld [vmem:[%s11767_s1 + $0xd8c] ss:$16 sps:$4 sm:$0xff]  }
 0x153   :  { %5521 = vmatpush1.bf16.msra.mxu0 %v8286_v32  ;;  %6080 = vmatpush1.bf16.msra.mxu1 %v8289_v34  ;;  %v8363_v32 = vld [vmem:[%s11767_s1 + $0xc0c] ss:$16 sps:$4 sm:$0xff]   ;;  %v1155_v34 = vrot.slane %v1099_v27, %v9219_v54  ;;  %v8433_v27 = vld [vmem:[%s11767_s1 + $0xd88] ss:$16 sps:$4 sm:$0xff]  }
 0x154   :  { %5522 = vmatprep.subr.bf16.mxu0 %v8294_v35  ;;  %6081 = vmatprep.subr.bf16.mxu1 %v8297_v37  ;;  %v10348_v35 = vrot.slane %v1094_v28, %v9219_v54  ;;  %v8361_v37 = vld [vmem:[%s11767_s1 + $0xc08] ss:$16 sps:$4 sm:$0xff]   ;;  %v8438_v28 = vld [vmem:[%s11767_s1 + $0xda4] ss:$16 sps:$4 sm:$0xff]  }
 0x157   :  { %5523 = vmatpush1.bf16.msra.mxu0 %v8292_v36  ;;  %6082 = vmatpush1.bf16.msra.mxu1 %v8295_v38  ;;  %v10351_v36 = vrot.slane %v1098_v29, %v9219_v54  ;;  %v8366_v38 = vld [vmem:[%s11767_s1 + $0xc24] ss:$16 sps:$4 sm:$0xff]   ;;  %v8436_v29 = vld [vmem:[%s11767_s1 + $0xda0] ss:$16 sps:$4 sm:$0xff]  }
 0x158   :  { %5524 = vmatprep.subr.bf16.mxu0 %v8300_v39  ;;  %6083 = vmatprep.subr.bf16.mxu1 %v8303_v41  ;;  %v10359_v39 = vcombine.high %v1127_v33, %v1155_v34  ;;  %v8369_v41 = vld [vmem:[%s11767_s1 + $0xc2c] ss:$16 sps:$4 sm:$0xff]  }
 0x15b   :  { %5525 = vmatpush1.bf16.msra.mxu0 %v8298_v40  ;;  %6084 = vmatpush1.bf16.msra.mxu1 %v8301_v42  ;;  %v8364_v40 = vld [vmem:[%s11767_s1 + $0xc20] ss:$16 sps:$4 sm:$0xff]   ;;  %v1162_v42 = vcombine.low %v1127_v33, %v1155_v34  ;;  %v8447_v33 = vld [vmem:[%s11767_s1 + $0xdcc] ss:$16 sps:$4 sm:$0xff]   ;;  %v8445_v34 = vld [vmem:[%s11767_s1 + $0xdc8] ss:$16 sps:$4 sm:$0xff]  }
 0x15c   :  { %5526 = vmatprep.subr.bf16.mxu0 %v8306_v43  ;;  %6085 = vmatprep.subr.bf16.mxu1 %v8309_v45  ;;  %v10369_v43 = vcombine.high %v10348_v35, %v10351_v36  ;;  %v8372_v45 = vld [vmem:[%s11767_s1 + $0xc44] ss:$16 sps:$4 sm:$0xff]  }
 0x15f   :  { %5527 = vmatpush1.bf16.msra.mxu0 %v8304_v44  ;;  %6086 = vmatpush1.bf16.msra.mxu1 %v8307_v49  ;;  %v8367_v44 = vld [vmem:[%s11767_s1 + $0xc28] ss:$16 sps:$4 sm:$0xff]   ;;  %v8370_v49 = vld [vmem:[%s11767_s1 + $0xc40] ss:$16 sps:$4 sm:$0xff]  }
 0x160   :  { %5528 = vmatprep.subr.bf16.mxu0 %v8312_v50  ;;  %6087 = vmatprep.subr.bf16.mxu1 %v8315_v53  ;;  %v8375_v50 = vld [vmem:[%s11767_s1 + $0xc4c] ss:$16 sps:$4 sm:$0xff]   ;;  %v8376_v53 = vld [vmem:[%s11767_s1 + $0xc60] ss:$16 sps:$4 sm:$0xff]  }
 0x163   :  { %5529 = vmatpush1.bf16.msra.mxu0 %v8310_v52  ;;  %6088 = vmatpush1.bf16.msra.mxu1 %v8313_v56  ;;  %v8378_v52 = vld [vmem:[%s11767_s1 + $0xc64] ss:$16 sps:$4 sm:$0xff]   ;;  %v8381_v56 = vld [vmem:[%s11767_s1 + $0xc6c] ss:$16 sps:$4 sm:$0xff]  }
 0x164   :  { %5530 = vmatprep.subr.bf16.mxu0 %v8318_v57  ;;  %6089 = vmatprep.subr.bf16.mxu1 %v8321_v59  ;;  %v8379_v57 = vld [vmem:[%s11767_s1 + $0xc68] ss:$16 sps:$4 sm:$0xff]   ;;  %v8382_v59 = vld [vmem:[%s11767_s1 + $0xc80] ss:$16 sps:$4 sm:$0xff]  }
 0x167   :  { %5531 = vmatpush1.bf16.msra.mxu0 %v8316_v58  ;;  %6090 = vmatpush1.bf16.msra.mxu1 %v8319_v17  ;;  %v8384_v58 = vld [vmem:[%s11767_s1 + $0xc84] ss:$16 sps:$4 sm:$0xff]   ;;  %v8387_v17 = vld [vmem:[%s11767_s1 + $0xc8c] ss:$16 sps:$4 sm:$0xff]  }
 0x168   :  { %5532 = vmatprep.subr.bf16.mxu0 %v8324_v60  ;;  %6091 = vmatprep.subr.bf16.mxu1 %v8327_v48  ;;  %v8385_v60 = vld [vmem:[%s11767_s1 + $0xc88] ss:$16 sps:$4 sm:$0xff]   ;;  %v8388_v48 = vld [vmem:[%s11767_s1 + $0xca0] ss:$16 sps:$4 sm:$0xff]  }
 0x16b   :  { %5533 = vmatpush1.bf16.msra.mxu0 %v8322_v47  ;;  %6092 = vmatpush1.bf16.msra.mxu1 %v8325_v61  ;;  %v8390_v47 = vld [vmem:[%s11767_s1 + $0xca4] ss:$16 sps:$4 sm:$0xff]   ;;  %v8393_v61 = vld [vmem:[%s11767_s1 + $0xcac] ss:$16 sps:$4 sm:$0xff]  }
 0x16c   :  { %5534 = vmatprep.subr.bf16.mxu0 %v8330_v62  ;;  %6093 = vmatprep.subr.bf16.mxu1 %v8333_v0  ;;  %v8391_v62 = vld [vmem:[%s11767_s1 + $0xca8] ss:$16 sps:$4 sm:$0xff]   ;;  %v8394_v0 = vld [vmem:[%s11767_s1 + $0xcc0] ss:$16 sps:$4 sm:$0xff]  }
 0x16f   :  { %5535 = vmatpush1.bf16.msra.mxu0 %v8328_v63  ;;  %6094 = vmatpush1.bf16.msra.mxu1 %v8331_v1  ;;  %v8396_v63 = vld [vmem:[%s11767_s1 + $0xcc4] ss:$16 sps:$4 sm:$0xff]   ;;  %v8399_v1 = vld [vmem:[%s11767_s1 + $0xccc] ss:$16 sps:$4 sm:$0xff]  }
 0x170   :  { %5536 = vmatprep.subr.bf16.mxu0 %v8336_v2  ;;  %6095 = vmatprep.subr.bf16.mxu1 %v8339_v3  ;;  %v8397_v2 = vld [vmem:[%s11767_s1 + $0xcc8] ss:$16 sps:$4 sm:$0xff]   ;;  %v8400_v3 = vld [vmem:[%s11767_s1 + $0xce0] ss:$16 sps:$4 sm:$0xff]  }
 0x173   :  { %5537 = vmatpush1.bf16.msra.mxu0 %v8334_v51  ;;  %6096 = vmatpush1.bf16.msra.mxu1 %v8337_v4  ;;  %v8402_v51 = vld [vmem:[%s11767_s1 + $0xce4] ss:$16 sps:$4 sm:$0xff]   ;;  %v8405_v4 = vld [vmem:[%s11767_s1 + $0xcec] ss:$16 sps:$4 sm:$0xff]  }
 0x174   :  { %5538 = vmatprep.subr.bf16.mxu0 %v8342_v5  ;;  %6097 = vmatprep.subr.bf16.mxu1 %v8345_v6  ;;  %v8403_v5 = vld [vmem:[%s11767_s1 + $0xce8] ss:$16 sps:$4 sm:$0xff]   ;;  %v8408_v6 = vld [vmem:[%s11767_s1 + $0xd04] ss:$16 sps:$4 sm:$0xff]  }
 0x177   :  { %5539 = vmatpush1.bf16.msra.mxu0 %v8340_v12  ;;  %6098 = vmatpush1.bf16.msra.mxu1 %v8343_v15  ;;  %v8414_v12 = vld [vmem:[%s11767_s1 + $0xd24] ss:$16 sps:$4 sm:$0xff]   ;;  %v8417_v15 = vld [vmem:[%s11767_s1 + $0xd2c] ss:$16 sps:$4 sm:$0xff]  }
 0x178   :  { %5540 = vmatprep.subr.bf16.mxu0 %v8348_v18  ;;  %6099 = vmatprep.subr.bf16.mxu1 %v8351_v20  ;;  %v8415_v18 = vld [vmem:[%s11767_s1 + $0xd28] ss:$16 sps:$4 sm:$0xff]   ;;  %v8418_v20 = vld [vmem:[%s11767_s1 + $0xd40] ss:$16 sps:$4 sm:$0xff]  }
 0x17b   :  { %5541 = vmatpush1.bf16.msra.mxu0 %v8346_v19  ;;  %6100 = vmatpush1.bf16.msra.mxu1 %v8349_v9  ;;  %v8420_v19 = vld [vmem:[%s11767_s1 + $0xd44] ss:$16 sps:$4 sm:$0xff]   ;;  %v8429_v9 = vld [vmem:[%s11767_s1 + $0xd6c] ss:$16 sps:$4 sm:$0xff]  }
 0x17c   :  { %5542 = vmatprep.subr.bf16.mxu0 %v8354_v10  ;;  %6101 = vmatprep.subr.bf16.mxu1 %v8357_v25  ;;  %v8427_v10 = vld [vmem:[%s11767_s1 + $0xd68] ss:$16 sps:$4 sm:$0xff]   ;;  %v8430_v25 = vld [vmem:[%s11767_s1 + $0xd80] ss:$16 sps:$4 sm:$0xff]  }
 0x17f   :  { %5543 = vmatpush1.bf16.msra.mxu0 %v8352_v24  ;;  %6102 = vmatpush1.bf16.msra.mxu1 %v8355_v13  ;;  %v8432_v24 = vld [vmem:[%s11767_s1 + $0xd84] ss:$16 sps:$4 sm:$0xff]   ;;  %v8441_v13 = vld [vmem:[%s11767_s1 + $0xdac] ss:$16 sps:$4 sm:$0xff]  }
 0x180   :  { %5555 = vmatprep.subr.bf16.mxu0 %v8360_v30  ;;  %6114 = vmatprep.subr.bf16.mxu1 %v8363_v32  ;;  %v8439_v30 = vld [vmem:[%s11767_s1 + $0xda8] ss:$16 sps:$4 sm:$0xff]   ;;  %v8442_v32 = vld [vmem:[%s11767_s1 + $0xdc0] ss:$16 sps:$4 sm:$0xff]  }
 0x182   :  { %5545 = vmatmul.mubr.bf16.vlgmr.msra.gmra.mrb[0].mxu0 %v9946_v16  ;;  %6104 = vmatmul.mubr.bf16.vlgmr.msra.gmra.mrb[0].mxu1 %v9946_v16  ;;  %v8373_v16 = vld [vmem:[%s11767_s1 + $0xc48] ss:$16 sps:$4 sm:$0xff]  }
 0x183   :  { %5556 = vmatpush1.bf16.msra.mxu0 %v8358_v31  ;;  %6115 = vmatpush1.bf16.msra.mxu1 %v8361_v37  ;;  %v8444_v31 = vld [vmem:[%s11767_s1 + $0xdc4] ss:$16 sps:$4 sm:$0xff]  }
 0x184   :  { %5557 = vmatprep.subr.bf16.mxu0 %v8366_v38  ;;  %6116 = vmatprep.subr.bf16.mxu1 %v8369_v41  ;;  %v8450_v37 = vld [vmem:[%s11767_s1 + $0xde4] ss:$16 sps:$4 sm:$0xff]   ;;  %v8453_v38 = vld [vmem:[%s11767_s1 + $0xdec] ss:$16 sps:$4 sm:$0xff]   ;;  %v8451_v41 = vld [vmem:[%s11767_s1 + $0xde8] ss:$16 sps:$4 sm:$0xff]  }
 0x185   :  { %5587 = vmatprep.mubr.bf16.mxu0 %v1162_v42  ;;  %6146 = vmatprep.mubr.bf16.mxu1 %v1162_v42  ;;  %v8460_v42 = vld [vmem:[%s11767_s1 + $0xe04] ss:$16 sps:$4 sm:$0xff]  }
 0x187   :  { %5558 = vmatpush1.bf16.msra.mxu0 %v8364_v40  ;;  %6117 = vmatpush1.bf16.msra.mxu1 %v8367_v44  ;;  %v8448_v40 = vld [vmem:[%s11767_s1 + $0xde0] ss:$16 sps:$4 sm:$0xff]  }
 0x188   :  { %5559 = vmatprep.subr.bf16.mxu0 %v8372_v45  ;;  %6118 = vmatprep.subr.bf16.mxu1 %v8375_v50  ;;  %v8458_v44 = vld [vmem:[%s11767_s1 + $0xe00] ss:$16 sps:$4 sm:$0xff]   ;;  %v8463_v45 = vld [vmem:[%s11767_s1 + $0xe0c] ss:$16 sps:$4 sm:$0xff]   ;;  %v8461_v50 = vld [vmem:[%s11767_s1 + $0xe08] ss:$16 sps:$4 sm:$0xff]  }
 0x18b   :  { %5560 = vmatpush1.bf16.msra.mxu0 %v8370_v49  ;;  %6119 = vmatpush1.bf16.msra.mxu1 %v8373_v16  ;;  %v1158_v49 = vcombine.low %v10348_v35, %v10351_v36  ;;  %v8466_v16 = vld [vmem:[%s11767_s1 + $0xe24] ss:$16 sps:$4 sm:$0xff]   ;;  %v8469_v35 = vld [vmem:[%s11767_s1 + $0xe2c] ss:$16 sps:$4 sm:$0xff]   ;;  %v8467_v36 = vld [vmem:[%s11767_s1 + $0xe28] ss:$16 sps:$4 sm:$0xff]  }
 0x18c   :  { %5561 = vmatprep.subr.bf16.mxu0 %v8378_v52  ;;  %6120 = vmatprep.subr.bf16.mxu1 %v8381_v56  ;;  %v8464_v52 = vld [vmem:[%s11767_s1 + $0xe20] ss:$16 sps:$4 sm:$0xff]  }
 0x18d   :  { %v8470_v56 = vld [vmem:[%s11767_s1 + $0xe40] ss:$16 sps:$4 sm:$0xff]  }
 0x18f   :  { %5562 = vmatpush1.bf16.msra.mxu0 %v8376_v53  ;;  %6121 = vmatpush1.bf16.msra.mxu1 %v8379_v57  ;;  %v8472_v53 = vld [vmem:[%s11767_s1 + $0xe44] ss:$16 sps:$4 sm:$0xff]   ;;  %v8475_v57 = vld [vmem:[%s11767_s1 + $0xe4c] ss:$16 sps:$4 sm:$0xff]  }
 0x190   :  { %5563 = vmatprep.subr.bf16.mxu0 %v8384_v58  ;;  %6122 = vmatprep.subr.bf16.mxu1 %v8387_v17  ;;  %v8473_v58 = vld [vmem:[%s11767_s1 + $0xe48] ss:$16 sps:$4 sm:$0xff]   ;;  %v8476_v17 = vld [vmem:[%s11767_s1 + $0xe60] ss:$16 sps:$4 sm:$0xff]  }
 0x193   :  { %5564 = vmatpush1.bf16.msra.mxu0 %v8382_v59  ;;  %6123 = vmatpush1.bf16.msra.mxu1 %v8385_v60  ;;  %v8478_v59 = vld [vmem:[%s11767_s1 + $0xe64] ss:$16 sps:$4 sm:$0xff]   ;;  %v8479_v60 = vld [vmem:[%s11767_s1 + $0xe68] ss:$16 sps:$4 sm:$0xff]  }
 0x194   :  { %5565 = vmatprep.subr.bf16.mxu0 %v8390_v47  ;;  %6124 = vmatprep.subr.bf16.mxu1 %v8393_v61  ;;  %v8484_v47 = vld [vmem:[%s11767_s1 + $0xe84] ss:$16 sps:$4 sm:$0xff]   ;;  %v8487_v61 = vld [vmem:[%s11767_s1 + $0xe8c] ss:$16 sps:$4 sm:$0xff]  }
 0x197   :  { %5566 = vmatpush1.bf16.msra.mxu0 %v8388_v48  ;;  %6125 = vmatpush1.bf16.msra.mxu1 %v8391_v62  ;;  %v8482_v48 = vld [vmem:[%s11767_s1 + $0xe80] ss:$16 sps:$4 sm:$0xff]   ;;  %v8485_v62 = vld [vmem:[%s11767_s1 + $0xe88] ss:$16 sps:$4 sm:$0xff]  }
 0x198   :  { %5567 = vmatprep.subr.bf16.mxu0 %v8396_v63  ;;  %6126 = vmatprep.subr.bf16.mxu1 %v8399_v1  ;;  %v8490_v63 = vld [vmem:[%s11767_s1 + $0xea4] ss:$16 sps:$4 sm:$0xff]   ;;  %v8493_v1 = vld [vmem:[%s11767_s1 + $0xeac] ss:$16 sps:$4 sm:$0xff]  }
 0x19b   :  { %5568 = vmatpush1.bf16.msra.mxu0 %v8394_v0  ;;  %6127 = vmatpush1.bf16.msra.mxu1 %v8397_v2  ;;  %v8488_v0 = vld [vmem:[%s11767_s1 + $0xea0] ss:$16 sps:$4 sm:$0xff]   ;;  %v8491_v2 = vld [vmem:[%s11767_s1 + $0xea8] ss:$16 sps:$4 sm:$0xff]  }
 0x19c   :  { %5569 = vmatprep.subr.bf16.mxu0 %v8402_v51  ;;  %6128 = vmatprep.subr.bf16.mxu1 %v8405_v4  ;;  %v8496_v51 = vld [vmem:[%s11767_s1 + $0xec4] ss:$16 sps:$4 sm:$0xff]   ;;  %v8499_v4 = vld [vmem:[%s11767_s1 + $0xecc] ss:$16 sps:$4 sm:$0xff]  }
 0x19f   :  { %5570 = vmatpush1.bf16.msra.mxu0 %v8400_v3  ;;  %6129 = vmatpush1.bf16.msra.mxu1 %v8403_v5  ;;  %v8494_v3 = vld [vmem:[%s11767_s1 + $0xec0] ss:$16 sps:$4 sm:$0xff]   ;;  %v8497_v5 = vld [vmem:[%s11767_s1 + $0xec8] ss:$16 sps:$4 sm:$0xff]  }
 0x1a0   :  { %5571 = vmatprep.subr.bf16.mxu0 %v8408_v6  ;;  %6130 = vmatprep.subr.bf16.mxu1 %v8411_v8  ;;  %v8502_v6 = vld [vmem:[%s11767_s1 + $0xee4] ss:$16 sps:$4 sm:$0xff]   ;;  %v8505_v8 = vld [vmem:[%s11767_s1 + $0xeec] ss:$16 sps:$4 sm:$0xff]  }
 0x1a3   :  { %5572 = vmatpush1.bf16.msra.mxu0 %v8406_v7  ;;  %6131 = vmatpush1.bf16.msra.mxu1 %v8409_v11  ;;  %v8500_v7 = vld [vmem:[%s11767_s1 + $0xee0] ss:$16 sps:$4 sm:$0xff]   ;;  %v8503_v11 = vld [vmem:[%s11767_s1 + $0xee8] ss:$16 sps:$4 sm:$0xff]  }
 0x1a4   :  { %5573 = vmatprep.subr.bf16.mxu0 %v8414_v12  ;;  %6132 = vmatprep.subr.bf16.mxu1 %v8417_v15  ;;  %v8508_v12 = vld [vmem:[%s11767_s1 + $0xf04] ss:$16 sps:$4 sm:$0xff]   ;;  %v8511_v15 = vld [vmem:[%s11767_s1 + $0xf0c] ss:$16 sps:$4 sm:$0xff]  }
 0x1a7   :  { %5574 = vmatpush1.bf16.msra.mxu0 %v8412_v14  ;;  %6133 = vmatpush1.bf16.msra.mxu1 %v8415_v18  ;;  %v8506_v14 = vld [vmem:[%s11767_s1 + $0xf00] ss:$16 sps:$4 sm:$0xff]   ;;  %v8509_v18 = vld [vmem:[%s11767_s1 + $0xf08] ss:$16 sps:$4 sm:$0xff]  }
 0x1a8   :  { %5575 = vmatprep.subr.bf16.mxu0 %v8420_v19  ;;  %6134 = vmatprep.subr.bf16.mxu1 %v8423_v21  ;;  %v8514_v19 = vld [vmem:[%s11767_s1 + $0xf24] ss:$16 sps:$4 sm:$0xff]   ;;  %v8517_v21 = vld [vmem:[%s11767_s1 + $0xf2c] ss:$16 sps:$4 sm:$0xff]  }
 0x1ab   :  { %5576 = vmatpush1.bf16.msra.mxu0 %v8418_v20  ;;  %6135 = vmatpush1.bf16.msra.mxu1 %v8421_v55  ;;  %v8512_v20 = vld [vmem:[%s11767_s1 + $0xf20] ss:$16 sps:$4 sm:$0xff]   ;;  %v8515_v55 = vld [vmem:[%s11767_s1 + $0xf28] ss:$16 sps:$4 sm:$0xff]  }
 0x1ac   :  { %5577 = vmatprep.subr.bf16.mxu0 %v8426_v22  ;;  %6136 = vmatprep.subr.bf16.mxu1 %v8429_v9  ;;  %v8520_v22 = vld [vmem:[%s11767_s1 + $0xf44] ss:$16 sps:$4 sm:$0xff]   ;;  %v8523_v9 = vld [vmem:[%s11767_s1 + $0xf4c] ss:$16 sps:$4 sm:$0xff]  }
 0x1af   :  { %5578 = vmatpush1.bf16.msra.mxu0 %v8424_v23  ;;  %6137 = vmatpush1.bf16.msra.mxu1 %v8427_v10  ;;  %v8518_v23 = vld [vmem:[%s11767_s1 + $0xf40] ss:$16 sps:$4 sm:$0xff]   ;;  %v8521_v10 = vld [vmem:[%s11767_s1 + $0xf48] ss:$16 sps:$4 sm:$0xff]  }
 0x1b0   :  { %5579 = vmatprep.subr.bf16.mxu0 %v8432_v24  ;;  %6138 = vmatprep.subr.bf16.mxu1 %v8435_v26  ;;  %v8526_v24 = vld [vmem:[%s11767_s1 + $0xf64] ss:$16 sps:$4 sm:$0xff]   ;;  %v8529_v26 = vld [vmem:[%s11767_s1 + $0xf6c] ss:$16 sps:$4 sm:$0xff]  }
 0x1b3   :  { %5580 = vmatpush1.bf16.msra.mxu0 %v8430_v25  ;;  %6139 = vmatpush1.bf16.msra.mxu1 %v8433_v27  ;;  %v8524_v25 = vld [vmem:[%s11767_s1 + $0xf60] ss:$16 sps:$4 sm:$0xff]   ;;  %v8527_v27 = vld [vmem:[%s11767_s1 + $0xf68] ss:$16 sps:$4 sm:$0xff]  }
 0x1b4   :  { %5581 = vmatprep.subr.bf16.mxu0 %v8438_v28  ;;  %6140 = vmatprep.subr.bf16.mxu1 %v8441_v13  ;;  %v8532_v28 = vld [vmem:[%s11767_s1 + $0xf84] ss:$16 sps:$4 sm:$0xff]   ;;  %v8535_v13 = vld [vmem:[%s11767_s1 + $0xf8c] ss:$16 sps:$4 sm:$0xff]  }
 0x1b7   :  { %5582 = vmatpush1.bf16.msra.mxu0 %v8436_v29  ;;  %6141 = vmatpush1.bf16.msra.mxu1 %v8439_v30  ;;  %v8530_v29 = vld [vmem:[%s11767_s1 + $0xf80] ss:$16 sps:$4 sm:$0xff]   ;;  %v8533_v30 = vld [vmem:[%s11767_s1 + $0xf88] ss:$16 sps:$4 sm:$0xff]  }
 0x1b8   :  { %5583 = vmatprep.subr.bf16.mxu0 %v8444_v31  ;;  %6142 = vmatprep.subr.bf16.mxu1 %v8447_v33  ;;  %v8538_v31 = vld [vmem:[%s11767_s1 + $0xfa4] ss:$16 sps:$4 sm:$0xff]   ;;  %v8650_v33 = vld [vmem:[%s11766_s0 + $0x10] ss:$25 sps:$4 sm:$0xff]  }
 0x1bb   :  { %5584 = vmatpush1.bf16.msra.mxu0 %v8442_v32  ;;  %6143 = vmatpush1.bf16.msra.mxu1 %v8445_v34  ;;  %v8541_v32 = vld [vmem:[%s11767_s1 + $0xfac] ss:$16 sps:$4 sm:$0xff]  }
 0x1bc   :  { %5585 = vmatprep.subr.bf16.mxu0 %v8450_v37  ;;  %6144 = vmatprep.subr.bf16.mxu1 %v8453_v38  ;;  %v8652_v34 = vld [vmem:[%s11766_s0 + $0x42] ss:$25 sps:$4 sm:$0xff]   ;;  %v8654_v37 = vld [vmem:[%s11766_s0 + $0x74] ss:$25 sps:$4 sm:$0xff]  }
 0x1bd   :  { %v8536_v38 = vld [vmem:[%s11767_s1 + $0xfa0] ss:$16 sps:$4 sm:$0xff]  }
 0x1bf   :  { %5586 = vmatpush1.bf16.msra.mxu0 %v8448_v40  ;;  %6145 = vmatpush1.bf16.msra.mxu1 %v8451_v41  ;;  %v8656_v40 = vld [vmem:[%s11766_s0 + $0xa6] ss:$25 sps:$4 sm:$0xff]  }
 0x1c0   :  { %5598 = vmatprep.subr.bf16.mxu0 %v8460_v42  ;;  %6157 = vmatprep.subr.bf16.mxu1 %v8463_v45  ;;  %v8539_v41 = vld [vmem:[%s11767_s1 + $0xfa8] ss:$16 sps:$4 sm:$0xff]   ;;  %v8544_v42 = vld [vmem:[%s11767_s1 + $0xfc4] ss:$16 sps:$4 sm:$0xff]   ;;  %v8547_v45 = vld [vmem:[%s11767_s1 + $0xfcc] ss:$16 sps:$4 sm:$0xff]  }
 0x1c2   :  { %5588 = vmatmul.mubr.bf16.vlgmr.msra.gmra.mrb[0].mxu0 %v1158_v49  ;;  %6147 = vmatmul.mubr.bf16.vlgmr.msra.gmra.mrb[0].mxu1 %v1158_v49  ;;  %v1178_v49 = vrot.slane %v8650_v33, %v9219_v54  ;;  %v8607_v33 = vld [vmem:[%s11767_s1 + $0x110c] ss:$16 sps:$4 sm:$0xff]  }
 0x1c3   :  { %5599 = vmatpush1.bf16.msra.mxu0 %v8458_v44  ;;  %6158 = vmatpush1.bf16.msra.mxu1 %v8461_v50  ;;  %v8542_v44 = vld [vmem:[%s11767_s1 + $0xfc0] ss:$16 sps:$4 sm:$0xff]   ;;  %v1192_v50 = vrot.slane %v8652_v34, %v9219_v54 }
 0x1c4   :  { %5600 = vmatprep.subr.bf16.mxu0 %v8466_v16  ;;  %6159 = vmatprep.subr.bf16.mxu1 %v8469_v35  ;;  %v1206_v16 = vrot.slane %v8654_v37, %v9219_v54  ;;  %v8545_v35 = vld [vmem:[%s11767_s1 + $0xfc8] ss:$16 sps:$4 sm:$0xff]   ;;  %v8602_v34 = vld [vmem:[%s11767_s1 + $0x1100] ss:$16 sps:$4 sm:$0xff]  }
 0x1c5   :  { %5630 = vmatprep.mubr.bf16.mxu0 %v10359_v39  ;;  %6189 = vmatprep.mubr.bf16.mxu1 %v10359_v39  ;;  %v8481_v39 = vld [vmem:[%s11767_s1 + $0xe6c] ss:$16 sps:$4 sm:$0xff]   ;;  %v8605_v37 = vld [vmem:[%s11767_s1 + $0x1108] ss:$16 sps:$4 sm:$0xff]  }
 0x1c7   :  { %5601 = vmatpush1.bf16.msra.mxu0 %v8464_v52  ;;  %6160 = vmatpush1.bf16.msra.mxu1 %v8467_v36  ;;  %v1220_v52 = vrot.slane %v8656_v40, %v9219_v54  ;;  %v8550_v36 = vld [vmem:[%s11767_s1 + $0xfe4] ss:$16 sps:$4 sm:$0xff]   ;;  %v8613_v40 = vld [vmem:[%s11767_s1 + $0x112c] ss:$16 sps:$4 sm:$0xff]  }
 0x1c8   :  { %5602 = vmatprep.subr.bf16.mxu0 %v8472_v53  ;;  %6161 = vmatprep.subr.bf16.mxu1 %v8475_v57  ;;  %v8548_v53 = vld [vmem:[%s11767_s1 + $0xfe0] ss:$16 sps:$4 sm:$0xff]   ;;  %v1229_v57 = vcombine.high %v1178_v49, %v1192_v50 }
 0x1cb   :  { %5603 = vmatpush1.bf16.msra.mxu0 %v8470_v56  ;;  %6162 = vmatpush1.bf16.msra.mxu1 %v8473_v58  ;;  %v8553_v56 = vld [vmem:[%s11767_s1 + $0xfec] ss:$16 sps:$4 sm:$0xff]   ;;  %v1233_v58 = vcombine.high %v1206_v16, %v1220_v52 }
 0x1cc   :  { %5604 = vmatprep.subr.bf16.mxu0 %v8478_v59  ;;  %6163 = vmatprep.subr.bf16.mxu1 %v8481_v39  ;;  %v1228_v59 = vcombine.low %v1178_v49, %v1192_v50  ;;  %v8551_v39 = vld [vmem:[%s11767_s1 + $0xfe8] ss:$16 sps:$4 sm:$0xff]   ;;  %v8614_v49 = vld [vmem:[%s11767_s1 + $0x1140] ss:$16 sps:$4 sm:$0xff]  }
 0x1cd   :  { %v8617_v50 = vld [vmem:[%s11767_s1 + $0x1148] ss:$16 sps:$4 sm:$0xff]  }
 0x1cf   :  { %5605 = vmatpush1.bf16.msra.mxu0 %v8476_v17  ;;  %6164 = vmatpush1.bf16.msra.mxu1 %v8479_v60  ;;  %v1232_v17 = vcombine.low %v1206_v16, %v1220_v52  ;;  %v8556_v60 = vld [vmem:[%s11767_s1 + $0x1004] ss:$16 sps:$4 sm:$0xff]   ;;  %v8625_v52 = vld [vmem:[%s11767_s1 + $0x116c] ss:$16 sps:$4 sm:$0xff]  }
 0x1d0   :  { %5606 = vmatprep.subr.bf16.mxu0 %v8484_v47  ;;  %6165 = vmatprep.subr.bf16.mxu1 %v8487_v61  ;;  %v8554_v47 = vld [vmem:[%s11767_s1 + $0x1000] ss:$16 sps:$4 sm:$0xff]   ;;  %v1256_v61 = vrot.slane %v1229_v57, %v9219_v54  ;;  %v8622_v16 = vld [vmem:[%s11767_s1 + $0x1164] ss:$16 sps:$4 sm:$0xff]  }
 0x1d1   :  { %v8626_v57 = vld [vmem:[%s11767_s1 + $0x1180] ss:$16 sps:$4 sm:$0xff]  }
 0x1d3   :  { %5607 = vmatpush1.bf16.msra.mxu0 %v8482_v48  ;;  %6166 = vmatpush1.bf16.msra.mxu1 %v8485_v62  ;;  %v8559_v48 = vld [vmem:[%s11767_s1 + $0x100c] ss:$16 sps:$4 sm:$0xff]   ;;  %v1284_v62 = vrot.slane %v1233_v58, %v9219_v54  ;;  %v8629_v58 = vld [vmem:[%s11767_s1 + $0x1188] ss:$16 sps:$4 sm:$0xff]  }
 0x1d4   :  { %5608 = vmatprep.subr.bf16.mxu0 %v8490_v63  ;;  %6167 = vmatprep.subr.bf16.mxu1 %v8493_v1  ;;  %v10768_v63 = vrot.slane %v1228_v59, %v9219_v54  ;;  %v8557_v1 = vld [vmem:[%s11767_s1 + $0x1008] ss:$16 sps:$4 sm:$0xff]   ;;  %v8634_v59 = vld [vmem:[%s11767_s1 + $0x11a4] ss:$16 sps:$4 sm:$0xff]  }
 0x1d7   :  { %5609 = vmatpush1.bf16.msra.mxu0 %v8488_v0  ;;  %6168 = vmatpush1.bf16.msra.mxu1 %v8491_v2  ;;  %v10771_v0 = vrot.slane %v1232_v17, %v9219_v54  ;;  %v8562_v2 = vld [vmem:[%s11767_s1 + $0x1024] ss:$16 sps:$4 sm:$0xff]   ;;  %v8637_v17 = vld [vmem:[%s11767_s1 + $0x11ac] ss:$16 sps:$4 sm:$0xff]  }
 0x1d8   :  { %5610 = vmatprep.subr.bf16.mxu0 %v8496_v51  ;;  %6169 = vmatprep.subr.bf16.mxu1 %v8499_v4  ;;  %v10779_v51 = vcombine.high %v1256_v61, %v1284_v62  ;;  %v1296_v4 = vcombine.low %v1256_v61, %v1284_v62  ;;  %v8638_v61 = vld [vmem:[%s11767_s1 + $0x11c0] ss:$16 sps:$4 sm:$0xff]   ;;  %v8641_v62 = vld [vmem:[%s11767_s1 + $0x11c8] ss:$16 sps:$4 sm:$0xff]  }
 0x1db   :  { %5611 = vmatpush1.bf16.msra.mxu0 %v8494_v3  ;;  %6170 = vmatpush1.bf16.msra.mxu1 %v8497_v5  ;;  %v8565_v3 = vld [vmem:[%s11767_s1 + $0x102c] ss:$16 sps:$4 sm:$0xff]   ;;  %v10786_v5 = vcombine.high %v10768_v63, %v10771_v0 }
 0x1dc   :  { %5612 = vmatprep.subr.bf16.mxu0 %v8502_v6  ;;  %6171 = vmatprep.subr.bf16.mxu1 %v8505_v8  ;;  %v8560_v6 = vld [vmem:[%s11767_s1 + $0x1020] ss:$16 sps:$4 sm:$0xff]   ;;  %v8568_v8 = vld [vmem:[%s11767_s1 + $0x1044] ss:$16 sps:$4 sm:$0xff]  }
 0x1df   :  { %5613 = vmatpush1.bf16.msra.mxu0 %v8500_v7  ;;  %6172 = vmatpush1.bf16.msra.mxu1 %v8503_v11  ;;  %v8563_v7 = vld [vmem:[%s11767_s1 + $0x1028] ss:$16 sps:$4 sm:$0xff]   ;;  %v8571_v11 = vld [vmem:[%s11767_s1 + $0x104c] ss:$16 sps:$4 sm:$0xff]  }
 0x1e0   :  { %5614 = vmatprep.subr.bf16.mxu0 %v8508_v12  ;;  %6173 = vmatprep.subr.bf16.mxu1 %v8511_v15  ;;  %v8569_v12 = vld [vmem:[%s11767_s1 + $0x1048] ss:$16 sps:$4 sm:$0xff]   ;;  %v8577_v15 = vld [vmem:[%s11767_s1 + $0x106c] ss:$16 sps:$4 sm:$0xff]  }
 0x1e3   :  { %5615 = vmatpush1.bf16.msra.mxu0 %v8506_v14  ;;  %6174 = vmatpush1.bf16.msra.mxu1 %v8509_v18  ;;  %v8574_v14 = vld [vmem:[%s11767_s1 + $0x1064] ss:$16 sps:$4 sm:$0xff]   ;;  %v8572_v18 = vld [vmem:[%s11767_s1 + $0x1060] ss:$16 sps:$4 sm:$0xff]  }
 0x1e4   :  { %5616 = vmatprep.subr.bf16.mxu0 %v8514_v19  ;;  %6175 = vmatprep.subr.bf16.mxu1 %v8517_v21  ;;  %v8575_v19 = vld [vmem:[%s11767_s1 + $0x1068] ss:$16 sps:$4 sm:$0xff]   ;;  %v8583_v21 = vld [vmem:[%s11767_s1 + $0x108c] ss:$16 sps:$4 sm:$0xff]  }
 0x1e7   :  { %5617 = vmatpush1.bf16.msra.mxu0 %v8512_v20  ;;  %6176 = vmatpush1.bf16.msra.mxu1 %v8515_v55  ;;  %v8580_v20 = vld [vmem:[%s11767_s1 + $0x1084] ss:$16 sps:$4 sm:$0xff]   ;;  %v8578_v55 = vld [vmem:[%s11767_s1 + $0x1080] ss:$16 sps:$4 sm:$0xff]  }
 0x1e8   :  { %5618 = vmatprep.subr.bf16.mxu0 %v8520_v22  ;;  %6177 = vmatprep.subr.bf16.mxu1 %v8523_v9  ;;  %v8581_v22 = vld [vmem:[%s11767_s1 + $0x1088] ss:$16 sps:$4 sm:$0xff]   ;;  %v8589_v9 = vld [vmem:[%s11767_s1 + $0x10ac] ss:$16 sps:$4 sm:$0xff]  }
 0x1eb   :  { %5619 = vmatpush1.bf16.msra.mxu0 %v8518_v23  ;;  %6178 = vmatpush1.bf16.msra.mxu1 %v8521_v10  ;;  %v8586_v23 = vld [vmem:[%s11767_s1 + $0x10a4] ss:$16 sps:$4 sm:$0xff]   ;;  %v8584_v10 = vld [vmem:[%s11767_s1 + $0x10a0] ss:$16 sps:$4 sm:$0xff]  }
 0x1ec   :  { %5620 = vmatprep.subr.bf16.mxu0 %v8526_v24  ;;  %6179 = vmatprep.subr.bf16.mxu1 %v8529_v26  ;;  %v8587_v24 = vld [vmem:[%s11767_s1 + $0x10a8] ss:$16 sps:$4 sm:$0xff]   ;;  %v8595_v26 = vld [vmem:[%s11767_s1 + $0x10cc] ss:$16 sps:$4 sm:$0xff]  }
 0x1ef   :  { %5621 = vmatpush1.bf16.msra.mxu0 %v8524_v25  ;;  %6180 = vmatpush1.bf16.msra.mxu1 %v8527_v27  ;;  %v8592_v25 = vld [vmem:[%s11767_s1 + $0x10c4] ss:$16 sps:$4 sm:$0xff]   ;;  %v8590_v27 = vld [vmem:[%s11767_s1 + $0x10c0] ss:$16 sps:$4 sm:$0xff]  }
 0x1f0   :  { %5622 = vmatprep.subr.bf16.mxu0 %v8532_v28  ;;  %6181 = vmatprep.subr.bf16.mxu1 %v8535_v13  ;;  %v8593_v28 = vld [vmem:[%s11767_s1 + $0x10c8] ss:$16 sps:$4 sm:$0xff]   ;;  %v8601_v13 = vld [vmem:[%s11767_s1 + $0x10ec] ss:$16 sps:$4 sm:$0xff]  }
 0x1f3   :  { %5623 = vmatpush1.bf16.msra.mxu0 %v8530_v29  ;;  %6182 = vmatpush1.bf16.msra.mxu1 %v8533_v30  ;;  %v8598_v29 = vld [vmem:[%s11767_s1 + $0x10e4] ss:$16 sps:$4 sm:$0xff]   ;;  %v8596_v30 = vld [vmem:[%s11767_s1 + $0x10e0] ss:$16 sps:$4 sm:$0xff]  }
 0x1f4   :  { %5624 = vmatprep.subr.bf16.mxu0 %v8538_v31  ;;  %6183 = vmatprep.subr.bf16.mxu1 %v8541_v32  ;;  %v8599_v31 = vld [vmem:[%s11767_s1 + $0x10e8] ss:$16 sps:$4 sm:$0xff]   ;;  %v8604_v32 = vld [vmem:[%s11767_s1 + $0x1104] ss:$16 sps:$4 sm:$0xff]  }
 0x1f7   :  { %5625 = vmatpush1.bf16.msra.mxu0 %v8536_v38  ;;  %6184 = vmatpush1.bf16.msra.mxu1 %v8539_v41  ;;  %v8610_v38 = vld [vmem:[%s11767_s1 + $0x1124] ss:$16 sps:$4 sm:$0xff]   ;;  %v8608_v41 = vld [vmem:[%s11767_s1 + $0x1120] ss:$16 sps:$4 sm:$0xff]  }
 0x1f8   :  { %5626 = vmatprep.subr.bf16.mxu0 %v8544_v42  ;;  %6185 = vmatprep.subr.bf16.mxu1 %v8547_v45  ;;  %v8611_v42 = vld [vmem:[%s11767_s1 + $0x1128] ss:$16 sps:$4 sm:$0xff]   ;;  %v8619_v45 = vld [vmem:[%s11767_s1 + $0x114c] ss:$16 sps:$4 sm:$0xff]  }
 0x1fb   :  { %5627 = vmatpush1.bf16.msra.mxu0 %v8542_v44  ;;  %6186 = vmatpush1.bf16.msra.mxu1 %v8545_v35  ;;  %v8616_v44 = vld [vmem:[%s11767_s1 + $0x1144] ss:$16 sps:$4 sm:$0xff]   ;;  %v8620_v35 = vld [vmem:[%s11767_s1 + $0x1160] ss:$16 sps:$4 sm:$0xff]  }
 0x1fc   :  { %5628 = vmatprep.subr.bf16.mxu0 %v8550_v36  ;;  %6187 = vmatprep.subr.bf16.mxu1 %v8553_v56  ;;  %v8623_v36 = vld [vmem:[%s11767_s1 + $0x1168] ss:$16 sps:$4 sm:$0xff]   ;;  %v8631_v56 = vld [vmem:[%s11767_s1 + $0x118c] ss:$16 sps:$4 sm:$0xff]  }
 0x1ff   :  { %5629 = vmatpush1.bf16.msra.mxu0 %v8548_v53  ;;  %6188 = vmatpush1.bf16.msra.mxu1 %v8551_v39  ;;  %v8628_v53 = vld [vmem:[%s11767_s1 + $0x1184] ss:$16 sps:$4 sm:$0xff]   ;;  %v8632_v39 = vld [vmem:[%s11767_s1 + $0x11a0] ss:$16 sps:$4 sm:$0xff]  }
 0x200   :  { %5641 = vmatprep.subr.bf16.mxu0 %v8556_v60  ;;  %6200 = vmatprep.subr.bf16.mxu1 %v8559_v48  ;;  %v8635_v60 = vld [vmem:[%s11767_s1 + $0x11a8] ss:$16 sps:$4 sm:$0xff]   ;;  %v8643_v48 = vld [vmem:[%s11767_s1 + $0x11cc] ss:$16 sps:$4 sm:$0xff]  }
 0x202   :  { %5631 = vmatmul.mubr.bf16.vlgmr.msra.gmra.mrb[0].mxu0 %v10369_v43  ;;  %6190 = vmatmul.mubr.bf16.vlgmr.msra.gmra.mrb[0].mxu1 %v10369_v43  ;;  %v8566_v43 = vld [vmem:[%s11767_s1 + $0x1040] ss:$16 sps:$4 sm:$0xff]  }
 0x203   :  { %5642 = vmatpush1.bf16.msra.mxu0 %v8554_v47  ;;  %6201 = vmatpush1.bf16.msra.mxu1 %v8557_v1  ;;  %v8640_v47 = vld [vmem:[%s11767_s1 + $0x11c4] ss:$16 sps:$4 sm:$0xff]  }
 0x204   :  { %5643 = vmatprep.subr.bf16.mxu0 %v8562_v2  ;;  %6202 = vmatprep.subr.bf16.mxu1 %v8565_v3  ;;  %v8646_v1 = vld [vmem:[%s11767_s1 + $0x11e4] ss:$16 sps:$4 sm:$0xff]   ;;  %v8649_v2 = vld [vmem:[%s11767_s1 + $0x11ec] ss:$16 sps:$4 sm:$0xff]   ;;  %v8644_v3 = vld [vmem:[%s11767_s1 + $0x11e0] ss:$16 sps:$4 sm:$0xff]  }
 0x205   :  { %5673 = vmatprep.mubr.bf16.mxu0 %v1296_v4  ;;  %6232 = vmatprep.mubr.bf16.mxu1 %v1296_v4  ;;  %v8647_v4 = vld [vmem:[%s11767_s1 + $0x11e8] ss:$16 sps:$4 sm:$0xff]  }
 0x207   :  { %5644 = vmatpush1.bf16.msra.mxu0 %v8560_v6  ;;  %6203 = vmatpush1.bf16.msra.mxu1 %v8563_v7  ;;  %v8660_v6 = vld [vmem:[%s11767_s1 + $0x1204] ss:$16 sps:$4 sm:$0xff]   ;;  %v8663_v7 = vld [vmem:[%s11767_s1 + $0x120c] ss:$16 sps:$4 sm:$0xff]  }
 0x208   :  { %5645 = vmatprep.subr.bf16.mxu0 %v8568_v8  ;;  %6204 = vmatprep.subr.bf16.mxu1 %v8571_v11  ;;  %v1292_v8 = vcombine.low %v10768_v63, %v10771_v0  ;;  %v8658_v11 = vld [vmem:[%s11767_s1 + $0x1200] ss:$16 sps:$4 sm:$0xff]   ;;  %v8669_v63 = vld [vmem:[%s11767_s1 + $0x122c] ss:$16 sps:$4 sm:$0xff]  }
 0x209   :  { %v8664_v0 = vld [vmem:[%s11767_s1 + $0x1220] ss:$16 sps:$4 sm:$0xff]  }
 0x20b   :  { %5646 = vmatpush1.bf16.msra.mxu0 %v8566_v43  ;;  %6205 = vmatpush1.bf16.msra.mxu1 %v8569_v12  ;;  %v8661_v43 = vld [vmem:[%s11767_s1 + $0x1208] ss:$16 sps:$4 sm:$0xff]   ;;  %v8666_v12 = vld [vmem:[%s11767_s1 + $0x1224] ss:$16 sps:$4 sm:$0xff]  }
 0x20c   :  { %5647 = vmatprep.subr.bf16.mxu0 %v8574_v14  ;;  %6206 = vmatprep.subr.bf16.mxu1 %v8577_v15  ;;  %v8667_v14 = vld [vmem:[%s11767_s1 + $0x1228] ss:$16 sps:$4 sm:$0xff]   ;;  %v8672_v15 = vld [vmem:[%s11767_s1 + $0x1244] ss:$16 sps:$4 sm:$0xff]  }
 0x20f   :  { %5648 = vmatpush1.bf16.msra.mxu0 %v8572_v18  ;;  %6207 = vmatpush1.bf16.msra.mxu1 %v8575_v19  ;;  %v8675_v18 = vld [vmem:[%s11767_s1 + $0x124c] ss:$16 sps:$4 sm:$0xff]   ;;  %v8670_v19 = vld [vmem:[%s11767_s1 + $0x1240] ss:$16 sps:$4 sm:$0xff]  }
 0x210   :  { %5649 = vmatprep.subr.bf16.mxu0 %v8580_v20  ;;  %6208 = vmatprep.subr.bf16.mxu1 %v8583_v21  ;;  %v8673_v20 = vld [vmem:[%s11767_s1 + $0x1248] ss:$16 sps:$4 sm:$0xff]   ;;  %v8678_v21 = vld [vmem:[%s11767_s1 + $0x1264] ss:$16 sps:$4 sm:$0xff]  }
 0x213   :  { %5650 = vmatpush1.bf16.msra.mxu0 %v8578_v55  ;;  %6209 = vmatpush1.bf16.msra.mxu1 %v8581_v22  ;;  %v8676_v55 = vld [vmem:[%s11767_s1 + $0x1260] ss:$16 sps:$4 sm:$0xff]   ;;  %v8679_v22 = vld [vmem:[%s11767_s1 + $0x1268] ss:$16 sps:$4 sm:$0xff]  }
 0x214   :  { %5651 = vmatprep.subr.bf16.mxu0 %v8586_v23  ;;  %6210 = vmatprep.subr.bf16.mxu1 %v8589_v9  ;;  %v8684_v23 = vld [vmem:[%s11767_s1 + $0x1284] ss:$16 sps:$4 sm:$0xff]   ;;  %v8687_v9 = vld [vmem:[%s11767_s1 + $0x128c] ss:$16 sps:$4 sm:$0xff]  }
 0x217   :  { %5652 = vmatpush1.bf16.msra.mxu0 %v8584_v10  ;;  %6211 = vmatpush1.bf16.msra.mxu1 %v8587_v24  ;;  %v8682_v10 = vld [vmem:[%s11767_s1 + $0x1280] ss:$16 sps:$4 sm:$0xff]   ;;  %v8685_v24 = vld [vmem:[%s11767_s1 + $0x1288] ss:$16 sps:$4 sm:$0xff]  }
 0x218   :  { %5653 = vmatprep.subr.bf16.mxu0 %v8592_v25  ;;  %6212 = vmatprep.subr.bf16.mxu1 %v8595_v26  ;;  %v8690_v25 = vld [vmem:[%s11767_s1 + $0x12a4] ss:$16 sps:$4 sm:$0xff]   ;;  %v8693_v26 = vld [vmem:[%s11767_s1 + $0x12ac] ss:$16 sps:$4 sm:$0xff]  }
 0x21b   :  { %5654 = vmatpush1.bf16.msra.mxu0 %v8590_v27  ;;  %6213 = vmatpush1.bf16.msra.mxu1 %v8593_v28  ;;  %v8688_v27 = vld [vmem:[%s11767_s1 + $0x12a0] ss:$16 sps:$4 sm:$0xff]   ;;  %v8691_v28 = vld [vmem:[%s11767_s1 + $0x12a8] ss:$16 sps:$4 sm:$0xff]  }
 0x21c   :  { %5655 = vmatprep.subr.bf16.mxu0 %v8598_v29  ;;  %6214 = vmatprep.subr.bf16.mxu1 %v8601_v13  ;;  %v8696_v29 = vld [vmem:[%s11767_s1 + $0x12c4] ss:$16 sps:$4 sm:$0xff]   ;;  %v8699_v13 = vld [vmem:[%s11767_s1 + $0x12cc] ss:$16 sps:$4 sm:$0xff]  }
 0x21f   :  { %5656 = vmatpush1.bf16.msra.mxu0 %v8596_v30  ;;  %6215 = vmatpush1.bf16.msra.mxu1 %v8599_v31  ;;  %v8694_v30 = vld [vmem:[%s11767_s1 + $0x12c0] ss:$16 sps:$4 sm:$0xff]   ;;  %v8697_v31 = vld [vmem:[%s11767_s1 + $0x12c8] ss:$16 sps:$4 sm:$0xff]  }
 0x220   :  { %5657 = vmatprep.subr.bf16.mxu0 %v8604_v32  ;;  %6216 = vmatprep.subr.bf16.mxu1 %v8607_v33  ;;  %v8702_v32 = vld [vmem:[%s11767_s1 + $0x12e4] ss:$16 sps:$4 sm:$0xff]   ;;  %v8705_v33 = vld [vmem:[%s11767_s1 + $0x12ec] ss:$16 sps:$4 sm:$0xff]  }
 0x223   :  { %5658 = vmatpush1.bf16.msra.mxu0 %v8602_v34  ;;  %6217 = vmatpush1.bf16.msra.mxu1 %v8605_v37  ;;  %v8700_v34 = vld [vmem:[%s11767_s1 + $0x12e0] ss:$16 sps:$4 sm:$0xff]   ;;  %v8703_v37 = vld [vmem:[%s11767_s1 + $0x12e8] ss:$16 sps:$4 sm:$0xff]  }
 0x224   :  { %5659 = vmatprep.subr.bf16.mxu0 %v8610_v38  ;;  %6218 = vmatprep.subr.bf16.mxu1 %v8613_v40  ;;  %v8708_v38 = vld [vmem:[%s11767_s1 + $0x1304] ss:$16 sps:$4 sm:$0xff]   ;;  %v8711_v40 = vld [vmem:[%s11767_s1 + $0x130c] ss:$16 sps:$4 sm:$0xff]  }
 0x227   :  { %5660 = vmatpush1.bf16.msra.mxu0 %v8608_v41  ;;  %6219 = vmatpush1.bf16.msra.mxu1 %v8611_v42  ;;  %v8706_v41 = vld [vmem:[%s11767_s1 + $0x1300] ss:$16 sps:$4 sm:$0xff]   ;;  %v8709_v42 = vld [vmem:[%s11767_s1 + $0x1308] ss:$16 sps:$4 sm:$0xff]  }
 0x228   :  { %5661 = vmatprep.subr.bf16.mxu0 %v8616_v44  ;;  %6220 = vmatprep.subr.bf16.mxu1 %v8619_v45  ;;  %v8714_v44 = vld [vmem:[%s11767_s1 + $0x1324] ss:$16 sps:$4 sm:$0xff]   ;;  %v8717_v45 = vld [vmem:[%s11767_s1 + $0x132c] ss:$16 sps:$4 sm:$0xff]  }
 0x22b   :  { %5662 = vmatpush1.bf16.msra.mxu0 %v8614_v49  ;;  %6221 = vmatpush1.bf16.msra.mxu1 %v8617_v50  ;;  %v8712_v49 = vld [vmem:[%s11767_s1 + $0x1320] ss:$16 sps:$4 sm:$0xff]   ;;  %v8715_v50 = vld [vmem:[%s11767_s1 + $0x1328] ss:$16 sps:$4 sm:$0xff]  }
 0x22c   :  { %5663 = vmatprep.subr.bf16.mxu0 %v8622_v16  ;;  %6222 = vmatprep.subr.bf16.mxu1 %v8625_v52  ;;  %v8720_v16 = vld [vmem:[%s11767_s1 + $0x1344] ss:$16 sps:$4 sm:$0xff]   ;;  %v8723_v52 = vld [vmem:[%s11767_s1 + $0x134c] ss:$16 sps:$4 sm:$0xff]  }
 0x22f   :  { %5664 = vmatpush1.bf16.msra.mxu0 %v8620_v35  ;;  %6223 = vmatpush1.bf16.msra.mxu1 %v8623_v36  ;;  %v8718_v35 = vld [vmem:[%s11767_s1 + $0x1340] ss:$16 sps:$4 sm:$0xff]   ;;  %v8721_v36 = vld [vmem:[%s11767_s1 + $0x1348] ss:$16 sps:$4 sm:$0xff]  }
 0x230   :  { %5665 = vmatprep.subr.bf16.mxu0 %v8628_v53  ;;  %6224 = vmatprep.subr.bf16.mxu1 %v8631_v56  ;;  %v8726_v53 = vld [vmem:[%s11767_s1 + $0x1364] ss:$16 sps:$4 sm:$0xff]   ;;  %v8729_v56 = vld [vmem:[%s11767_s1 + $0x136c] ss:$16 sps:$4 sm:$0xff]  }
 0x233   :  { %5666 = vmatpush1.bf16.msra.mxu0 %v8626_v57  ;;  %6225 = vmatpush1.bf16.msra.mxu1 %v8629_v58  ;;  %v8724_v57 = vld [vmem:[%s11767_s1 + $0x1360] ss:$16 sps:$4 sm:$0xff]   ;;  %v8727_v58 = vld [vmem:[%s11767_s1 + $0x1368] ss:$16 sps:$4 sm:$0xff]  }
 0x234   :  { %5667 = vmatprep.subr.bf16.mxu0 %v8634_v59  ;;  %6226 = vmatprep.subr.bf16.mxu1 %v8637_v17  ;;  %v8732_v59 = vld [vmem:[%s11767_s1 + $0x1384] ss:$16 sps:$4 sm:$0xff]   ;;  %v8735_v17 = vld [vmem:[%s11767_s1 + $0x138c] ss:$16 sps:$4 sm:$0xff]  }
 0x237   :  { %5668 = vmatpush1.bf16.msra.mxu0 %v8632_v39  ;;  %6227 = vmatpush1.bf16.msra.mxu1 %v8635_v60  ;;  %v8730_v39 = vld [vmem:[%s11767_s1 + $0x1380] ss:$16 sps:$4 sm:$0xff]   ;;  %v8733_v60 = vld [vmem:[%s11767_s1 + $0x1388] ss:$16 sps:$4 sm:$0xff]  }
 0x238   :  { %5669 = vmatprep.subr.bf16.mxu0 %v8640_v47  ;;  %6228 = vmatprep.subr.bf16.mxu1 %v8643_v48  ;;  %v8738_v47 = vld [vmem:[%s11767_s1 + $0x13a4] ss:$16 sps:$4 sm:$0xff]   ;;  %v8741_v48 = vld [vmem:[%s11767_s1 + $0x13ac] ss:$16 sps:$4 sm:$0xff]  }
 0x23b   :  { %5670 = vmatpush1.bf16.msra.mxu0 %v8638_v61  ;;  %6229 = vmatpush1.bf16.msra.mxu1 %v8641_v62  ;;  %v8850_v61 = vld [vmem:[%s11766_s0 + $0x14] ss:$25 sps:$4 sm:$0xff]   ;;  %v8851_v62 = vld [vmem:[%s11766_s0 + $0x46] ss:$25 sps:$4 sm:$0xff]  }
 0x23c   :  { %5671 = vmatprep.subr.bf16.mxu0 %v8646_v1  ;;  %6230 = vmatprep.subr.bf16.mxu1 %v8649_v2  ;;  %v8852_v1 = vld [vmem:[%s11766_s0 + $0x78] ss:$25 sps:$4 sm:$0xff]   ;;  %v8853_v2 = vld [vmem:[%s11766_s0 + $0xaa] ss:$25 sps:$4 sm:$0xff]  }
 0x23f   :  { %5672 = vmatpush1.bf16.msra.mxu0 %v8644_v3  ;;  %6231 = vmatpush1.bf16.msra.mxu1 %v8647_v4  ;;  %v8736_v3 = vld [vmem:[%s11767_s1 + $0x13a0] ss:$16 sps:$4 sm:$0xff]   ;;  %v8739_v4 = vld [vmem:[%s11767_s1 + $0x13a8] ss:$16 sps:$4 sm:$0xff]  }
 0x240   :  { %5684 = vmatprep.subr.bf16.mxu0 %v8660_v6  ;;  %6243 = vmatprep.subr.bf16.mxu1 %v8663_v7  ;;  %v8744_v6 = vld [vmem:[%s11767_s1 + $0x13c4] ss:$16 sps:$4 sm:$0xff]   ;;  %v8747_v7 = vld [vmem:[%s11767_s1 + $0x13cc] ss:$16 sps:$4 sm:$0xff]  }
 0x242   :  { %5674 = vmatmul.mubr.bf16.vlgmr.msra.gmra.mrb[0].mxu0 %v1292_v8  ;;  %6233 = vmatmul.mubr.bf16.vlgmr.msra.gmra.mrb[0].mxu1 %v1292_v8  ;;  %v1185_v8 = vrot.slane %v8850_v61, %v9219_v54  ;;  %v8807_v61 = vld [vmem:[%s11767_s1 + $0x150c] ss:$16 sps:$4 sm:$0xff]  }
 0x243   :  { %5685 = vmatpush1.bf16.msra.mxu0 %v8658_v11  ;;  %6244 = vmatpush1.bf16.msra.mxu1 %v8661_v43  ;;  %v1199_v11 = vrot.slane %v8851_v62, %v9219_v54  ;;  %v1213_v43 = vrot.slane %v8852_v1, %v9219_v54  ;;  %v8802_v62 = vld [vmem:[%s11767_s1 + $0x1500] ss:$16 sps:$4 sm:$0xff]   ;;  %v8805_v1 = vld [vmem:[%s11767_s1 + $0x1508] ss:$16 sps:$4 sm:$0xff]  }
 0x244   :  { %5686 = vmatprep.subr.bf16.mxu0 %v8666_v12  ;;  %6245 = vmatprep.subr.bf16.mxu1 %v8669_v63  ;;  %v1227_v12 = vrot.slane %v8853_v2, %v9219_v54  ;;  %v8742_v63 = vld [vmem:[%s11767_s1 + $0x13c0] ss:$16 sps:$4 sm:$0xff]   ;;  %v8810_v2 = vld [vmem:[%s11767_s1 + $0x1524] ss:$16 sps:$4 sm:$0xff]  }
 0x245   :  { %5716 = vmatprep.mubr.bf16.mxu0 %v10779_v51  ;;  %6275 = vmatprep.mubr.bf16.mxu1 %v10779_v51  ;;  %v8681_v51 = vld [vmem:[%s11767_s1 + $0x126c] ss:$16 sps:$4 sm:$0xff]  }
 0x247   :  { %5687 = vmatpush1.bf16.msra.mxu0 %v8664_v0  ;;  %6246 = vmatpush1.bf16.msra.mxu1 %v8667_v14  ;;  %v8745_v0 = vld [vmem:[%s11767_s1 + $0x13c8] ss:$16 sps:$4 sm:$0xff]   ;;  %v8750_v14 = vld [vmem:[%s11767_s1 + $0x13e4] ss:$16 sps:$4 sm:$0xff]  }
 0x248   :  { %5688 = vmatprep.subr.bf16.mxu0 %v8672_v15  ;;  %6247 = vmatprep.subr.bf16.mxu1 %v8675_v18  ;;  %v8753_v15 = vld [vmem:[%s11767_s1 + $0x13ec] ss:$16 sps:$4 sm:$0xff]   ;;  %v1231_v18 = vcombine.high %v1185_v8, %v1199_v11 }
 0x24b   :  { %5689 = vmatpush1.bf16.msra.mxu0 %v8670_v19  ;;  %6248 = vmatpush1.bf16.msra.mxu1 %v8673_v20  ;;  %v1235_v19 = vcombine.high %v1213_v43, %v1227_v12  ;;  %v8748_v20 = vld [vmem:[%s11767_s1 + $0x13e0] ss:$16 sps:$4 sm:$0xff]  }
 0x24c   :  { %5690 = vmatprep.subr.bf16.mxu0 %v8678_v21  ;;  %6249 = vmatprep.subr.bf16.mxu1 %v8681_v51  ;;  %v1230_v21 = vcombine.low %v1185_v8, %v1199_v11  ;;  %v1234_v51 = vcombine.low %v1213_v43, %v1227_v12  ;;  %v8819_v8 = vld [vmem:[%s11767_s1 + $0x154c] ss:$16 sps:$4 sm:$0xff]   ;;  %v8814_v11 = vld [vmem:[%s11767_s1 + $0x1540] ss:$16 sps:$4 sm:$0xff]   ;;  %v8817_v43 = vld [vmem:[%s11767_s1 + $0x1548] ss:$16 sps:$4 sm:$0xff]  }
 0x24d   :  { %v8822_v12 = vld [vmem:[%s11767_s1 + $0x1564] ss:$16 sps:$4 sm:$0xff]  }
 0x24f   :  { %5691 = vmatpush1.bf16.msra.mxu0 %v8676_v55  ;;  %6250 = vmatpush1.bf16.msra.mxu1 %v8679_v22  ;;  %v8751_v55 = vld [vmem:[%s11767_s1 + $0x13e8] ss:$16 sps:$4 sm:$0xff]   ;;  %v8756_v22 = vld [vmem:[%s11767_s1 + $0x1404] ss:$16 sps:$4 sm:$0xff]  }
 0x250   :  { %5692 = vmatprep.subr.bf16.mxu0 %v8684_v23  ;;  %6251 = vmatprep.subr.bf16.mxu1 %v8687_v9  ;;  %v8759_v23 = vld [vmem:[%s11767_s1 + $0x140c] ss:$16 sps:$4 sm:$0xff]   ;;  %v1263_v9 = vrot.slane %v1231_v18, %v9219_v54 }
 0x251   :  { %v8831_v18 = vld [vmem:[%s11767_s1 + $0x158c] ss:$16 sps:$4 sm:$0xff]  }
 0x253   :  { %5693 = vmatpush1.bf16.msra.mxu0 %v8682_v10  ;;  %6252 = vmatpush1.bf16.msra.mxu1 %v8685_v24  ;;  %v1291_v10 = vrot.slane %v1235_v19, %v9219_v54  ;;  %v8754_v24 = vld [vmem:[%s11767_s1 + $0x1400] ss:$16 sps:$4 sm:$0xff]  }
 0x254   :  { %5694 = vmatprep.subr.bf16.mxu0 %v8690_v25  ;;  %6253 = vmatprep.subr.bf16.mxu1 %v8693_v26  ;;  %v11188_v25 = vrot.slane %v1230_v21, %v9219_v54  ;;  %v11191_v26 = vrot.slane %v1234_v51, %v9219_v54  ;;  %v8826_v19 = vld [vmem:[%s11767_s1 + $0x1580] ss:$16 sps:$4 sm:$0xff]   ;;  %v8834_v21 = vld [vmem:[%s11767_s1 + $0x15a4] ss:$16 sps:$4 sm:$0xff]   ;;  %v8837_v51 = vld [vmem:[%s11767_s1 + $0x15ac] ss:$16 sps:$4 sm:$0xff]  }
 0x257   :  { %5695 = vmatpush1.bf16.msra.mxu0 %v8688_v27  ;;  %6254 = vmatpush1.bf16.msra.mxu1 %v8691_v28  ;;  %v8757_v27 = vld [vmem:[%s11767_s1 + $0x1408] ss:$16 sps:$4 sm:$0xff]   ;;  %v8762_v28 = vld [vmem:[%s11767_s1 + $0x1424] ss:$16 sps:$4 sm:$0xff]  }
 0x258   :  { %5696 = vmatprep.subr.bf16.mxu0 %v8696_v29  ;;  %6255 = vmatprep.subr.bf16.mxu1 %v8699_v13  ;;  %v11199_v29 = vcombine.high %v1263_v9, %v1291_v10  ;;  %v8765_v13 = vld [vmem:[%s11767_s1 + $0x142c] ss:$16 sps:$4 sm:$0xff]  }
 0x25b   :  { %5697 = vmatpush1.bf16.msra.mxu0 %v8694_v30  ;;  %6256 = vmatpush1.bf16.msra.mxu1 %v8697_v31  ;;  %v1298_v30 = vcombine.low %v1263_v9, %v1291_v10  ;;  %v11206_v31 = vcombine.high %v11188_v25, %v11191_v26  ;;  %v8843_v9 = vld [vmem:[%s11767_s1 + $0x15cc] ss:$16 sps:$4 sm:$0xff]   ;;  %v8838_v10 = vld [vmem:[%s11767_s1 + $0x15c0] ss:$16 sps:$4 sm:$0xff]  }
 0x25c   :  { %5698 = vmatprep.subr.bf16.mxu0 %v8702_v32  ;;  %6257 = vmatprep.subr.bf16.mxu1 %v8705_v33  ;;  %v8760_v32 = vld [vmem:[%s11767_s1 + $0x1420] ss:$16 sps:$4 sm:$0xff]   ;;  %v8763_v33 = vld [vmem:[%s11767_s1 + $0x1428] ss:$16 sps:$4 sm:$0xff]  }
 0x25f   :  { %5699 = vmatpush1.bf16.msra.mxu0 %v8700_v34  ;;  %6258 = vmatpush1.bf16.msra.mxu1 %v8703_v37  ;;  %v8768_v34 = vld [vmem:[%s11767_s1 + $0x1444] ss:$16 sps:$4 sm:$0xff]   ;;  %v8771_v37 = vld [vmem:[%s11767_s1 + $0x144c] ss:$16 sps:$4 sm:$0xff]  }
 0x260   :  { %5700 = vmatprep.subr.bf16.mxu0 %v8708_v38  ;;  %6259 = vmatprep.subr.bf16.mxu1 %v8711_v40  ;;  %v8769_v38 = vld [vmem:[%s11767_s1 + $0x1448] ss:$16 sps:$4 sm:$0xff]   ;;  %v8774_v40 = vld [vmem:[%s11767_s1 + $0x1464] ss:$16 sps:$4 sm:$0xff]  }
 0x263   :  { %5701 = vmatpush1.bf16.msra.mxu0 %v8706_v41  ;;  %6260 = vmatpush1.bf16.msra.mxu1 %v8709_v42  ;;  %v8777_v41 = vld [vmem:[%s11767_s1 + $0x146c] ss:$16 sps:$4 sm:$0xff]   ;;  %v8772_v42 = vld [vmem:[%s11767_s1 + $0x1460] ss:$16 sps:$4 sm:$0xff]  }
 0x264   :  { %5702 = vmatprep.subr.bf16.mxu0 %v8714_v44  ;;  %6261 = vmatprep.subr.bf16.mxu1 %v8717_v45  ;;  %v8775_v44 = vld [vmem:[%s11767_s1 + $0x1468] ss:$16 sps:$4 sm:$0xff]   ;;  %v8780_v45 = vld [vmem:[%s11767_s1 + $0x1484] ss:$16 sps:$4 sm:$0xff]  }
 0x267   :  { %5703 = vmatpush1.bf16.msra.mxu0 %v8712_v49  ;;  %6262 = vmatpush1.bf16.msra.mxu1 %v8715_v50  ;;  %v8783_v49 = vld [vmem:[%s11767_s1 + $0x148c] ss:$16 sps:$4 sm:$0xff]   ;;  %v8778_v50 = vld [vmem:[%s11767_s1 + $0x1480] ss:$16 sps:$4 sm:$0xff]  }
 0x268   :  { %5704 = vmatprep.subr.bf16.mxu0 %v8720_v16  ;;  %6263 = vmatprep.subr.bf16.mxu1 %v8723_v52  ;;  %v8781_v16 = vld [vmem:[%s11767_s1 + $0x1488] ss:$16 sps:$4 sm:$0xff]   ;;  %v8786_v52 = vld [vmem:[%s11767_s1 + $0x14a4] ss:$16 sps:$4 sm:$0xff]  }
 0x26b   :  { %5705 = vmatpush1.bf16.msra.mxu0 %v8718_v35  ;;  %6264 = vmatpush1.bf16.msra.mxu1 %v8721_v36  ;;  %v8789_v35 = vld [vmem:[%s11767_s1 + $0x14ac] ss:$16 sps:$4 sm:$0xff]   ;;  %v8784_v36 = vld [vmem:[%s11767_s1 + $0x14a0] ss:$16 sps:$4 sm:$0xff]  }
 0x26c   :  { %5706 = vmatprep.subr.bf16.mxu0 %v8726_v53  ;;  %6265 = vmatprep.subr.bf16.mxu1 %v8729_v56  ;;  %v8787_v53 = vld [vmem:[%s11767_s1 + $0x14a8] ss:$16 sps:$4 sm:$0xff]   ;;  %v8792_v56 = vld [vmem:[%s11767_s1 + $0x14c4] ss:$16 sps:$4 sm:$0xff]  }
 0x26f   :  { %5707 = vmatpush1.bf16.msra.mxu0 %v8724_v57  ;;  %6266 = vmatpush1.bf16.msra.mxu1 %v8727_v58  ;;  %v8795_v57 = vld [vmem:[%s11767_s1 + $0x14cc] ss:$16 sps:$4 sm:$0xff]   ;;  %v8790_v58 = vld [vmem:[%s11767_s1 + $0x14c0] ss:$16 sps:$4 sm:$0xff]  }
 0x270   :  { %5708 = vmatprep.subr.bf16.mxu0 %v8732_v59  ;;  %6267 = vmatprep.subr.bf16.mxu1 %v8735_v17  ;;  %v8793_v59 = vld [vmem:[%s11767_s1 + $0x14c8] ss:$16 sps:$4 sm:$0xff]   ;;  %v8798_v17 = vld [vmem:[%s11767_s1 + $0x14e4] ss:$16 sps:$4 sm:$0xff]  }
 0x273   :  { %5709 = vmatpush1.bf16.msra.mxu0 %v8730_v39  ;;  %6268 = vmatpush1.bf16.msra.mxu1 %v8733_v60  ;;  %v8801_v39 = vld [vmem:[%s11767_s1 + $0x14ec] ss:$16 sps:$4 sm:$0xff]   ;;  %v8796_v60 = vld [vmem:[%s11767_s1 + $0x14e0] ss:$16 sps:$4 sm:$0xff]  }
 0x274   :  { %5710 = vmatprep.subr.bf16.mxu0 %v8738_v47  ;;  %6269 = vmatprep.subr.bf16.mxu1 %v8741_v48  ;;  %v8799_v47 = vld [vmem:[%s11767_s1 + $0x14e8] ss:$16 sps:$4 sm:$0xff]   ;;  %v8804_v48 = vld [vmem:[%s11767_s1 + $0x1504] ss:$16 sps:$4 sm:$0xff]  }
 0x277   :  { %5711 = vmatpush1.bf16.msra.mxu0 %v8736_v3  ;;  %6270 = vmatpush1.bf16.msra.mxu1 %v8739_v4  ;;  %v8813_v3 = vld [vmem:[%s11767_s1 + $0x152c] ss:$16 sps:$4 sm:$0xff]   ;;  %v8808_v4 = vld [vmem:[%s11767_s1 + $0x1520] ss:$16 sps:$4 sm:$0xff]  }
 0x278   :  { %5712 = vmatprep.subr.bf16.mxu0 %v8744_v6  ;;  %6271 = vmatprep.subr.bf16.mxu1 %v8747_v7  ;;  %v8811_v6 = vld [vmem:[%s11767_s1 + $0x1528] ss:$16 sps:$4 sm:$0xff]   ;;  %v8816_v7 = vld [vmem:[%s11767_s1 + $0x1544] ss:$16 sps:$4 sm:$0xff]  }
 0x27b   :  { %5713 = vmatpush1.bf16.msra.mxu0 %v8742_v63  ;;  %6272 = vmatpush1.bf16.msra.mxu1 %v8745_v0  ;;  %v8825_v63 = vld [vmem:[%s11767_s1 + $0x156c] ss:$16 sps:$4 sm:$0xff]   ;;  %v8820_v0 = vld [vmem:[%s11767_s1 + $0x1560] ss:$16 sps:$4 sm:$0xff]  }
 0x27c   :  { %5714 = vmatprep.subr.bf16.mxu0 %v8750_v14  ;;  %6273 = vmatprep.subr.bf16.mxu1 %v8753_v15  ;;  %v8823_v14 = vld [vmem:[%s11767_s1 + $0x1568] ss:$16 sps:$4 sm:$0xff]   ;;  %v8828_v15 = vld [vmem:[%s11767_s1 + $0x1584] ss:$16 sps:$4 sm:$0xff]  }
 0x27f   :  { %5715 = vmatpush1.bf16.msra.mxu0 %v8748_v20  ;;  %6274 = vmatpush1.bf16.msra.mxu1 %v8751_v55  ;;  %v8829_v20 = vld [vmem:[%s11767_s1 + $0x1588] ss:$16 sps:$4 sm:$0xff]   ;;  %v8832_v55 = vld [vmem:[%s11767_s1 + $0x15a0] ss:$16 sps:$4 sm:$0xff]  }
 0x280   :  { %5727 = vmatprep.subr.bf16.mxu0 %v8756_v22  ;;  %6286 = vmatprep.subr.bf16.mxu1 %v8759_v23  ;;  %v8835_v22 = vld [vmem:[%s11767_s1 + $0x15a8] ss:$16 sps:$4 sm:$0xff]   ;;  %v8840_v23 = vld [vmem:[%s11767_s1 + $0x15c4] ss:$16 sps:$4 sm:$0xff]  }
 0x282   :  { %5717 = vmatmul.mubr.bf16.vlgmr.msra.gmra.mrb[0].mxu0 %v10786_v5  ;;  %6276 = vmatmul.mubr.bf16.vlgmr.msra.gmra.mrb[0].mxu1 %v10786_v5  ;;  %v8766_v5 = vld [vmem:[%s11767_s1 + $0x1440] ss:$16 sps:$4 sm:$0xff]  }
 0x283   :  { %5728 = vmatpush1.bf16.msra.mxu0 %v8754_v24  ;;  %6287 = vmatpush1.bf16.msra.mxu1 %v8757_v27  ;;  %v8841_v24 = vld [vmem:[%s11767_s1 + $0x15c8] ss:$16 sps:$4 sm:$0xff]   ;;  %v8846_v27 = vld [vmem:[%s11767_s1 + $0x15e4] ss:$16 sps:$4 sm:$0xff]  }
 0x284   :  { %5729 = vmatprep.subr.bf16.mxu0 %v8762_v28  ;;  %6288 = vmatprep.subr.bf16.mxu1 %v8765_v13  ;;  %v8849_v28 = vld [vmem:[%s11767_s1 + $0x15ec] ss:$16 sps:$4 sm:$0xff]   ;;  %v8844_v13 = vld [vmem:[%s11767_s1 + $0x15e0] ss:$16 sps:$4 sm:$0xff]  }
 0x285   :  { %5759 = vmatprep.mubr.bf16.mxu0 %v1298_v30  ;;  %6318 = vmatprep.mubr.bf16.mxu1 %v1298_v30  ;;  %v8847_v30 = vld [vmem:[%s11767_s1 + $0x15e8] ss:$16 sps:$4 sm:$0xff]  }
 0x287   :  { %5730 = vmatpush1.bf16.msra.mxu0 %v8760_v32  ;;  %6289 = vmatpush1.bf16.msra.mxu1 %v8763_v33  ;;  %v8856_v32 = vld [vmem:[%s11767_s1 + $0x1604] ss:$16 sps:$4 sm:$0xff]   ;;  %v8859_v33 = vld [vmem:[%s11767_s1 + $0x160c] ss:$16 sps:$4 sm:$0xff]  }
 0x288   :  { %5731 = vmatprep.subr.bf16.mxu0 %v8768_v34  ;;  %6290 = vmatprep.subr.bf16.mxu1 %v8771_v37  ;;  %v1294_v34 = vcombine.low %v11188_v25, %v11191_v26  ;;  %v8854_v37 = vld [vmem:[%s11767_s1 + $0x1600] ss:$16 sps:$4 sm:$0xff]   ;;  %v8865_v25 = vld [vmem:[%s11767_s1 + $0x162c] ss:$16 sps:$4 sm:$0xff]  }
 0x289   :  { %v8860_v26 = vld [vmem:[%s11767_s1 + $0x1620] ss:$16 sps:$4 sm:$0xff]  }
 0x28b   :  { %5732 = vmatpush1.bf16.msra.mxu0 %v8766_v5  ;;  %6291 = vmatpush1.bf16.msra.mxu1 %v8769_v38  ;;  %v8857_v5 = vld [vmem:[%s11767_s1 + $0x1608] ss:$16 sps:$4 sm:$0xff]   ;;  %v8862_v38 = vld [vmem:[%s11767_s1 + $0x1624] ss:$16 sps:$4 sm:$0xff]  }
 0x28c   :  { %5733 = vmatprep.subr.bf16.mxu0 %v8774_v40  ;;  %6292 = vmatprep.subr.bf16.mxu1 %v8777_v41  ;;  %v8863_v40 = vld [vmem:[%s11767_s1 + $0x1628] ss:$16 sps:$4 sm:$0xff]   ;;  %v8868_v41 = vld [vmem:[%s11767_s1 + $0x1644] ss:$16 sps:$4 sm:$0xff]  }
 0x28f   :  { %5734 = vmatpush1.bf16.msra.mxu0 %v8772_v42  ;;  %6293 = vmatpush1.bf16.msra.mxu1 %v8775_v44  ;;  %v8871_v42 = vld [vmem:[%s11767_s1 + $0x164c] ss:$16 sps:$4 sm:$0xff]   ;;  %v8866_v44 = vld [vmem:[%s11767_s1 + $0x1640] ss:$16 sps:$4 sm:$0xff]  }
 0x290   :  { %5735 = vmatprep.subr.bf16.mxu0 %v8780_v45  ;;  %6294 = vmatprep.subr.bf16.mxu1 %v8783_v49  ;;  %v8869_v45 = vld [vmem:[%s11767_s1 + $0x1648] ss:$16 sps:$4 sm:$0xff]   ;;  %v8874_v49 = vld [vmem:[%s11767_s1 + $0x1664] ss:$16 sps:$4 sm:$0xff]  }
 0x293   :  { %5736 = vmatpush1.bf16.msra.mxu0 %v8778_v50  ;;  %6295 = vmatpush1.bf16.msra.mxu1 %v8781_v16  ;;  %v8872_v50 = vld [vmem:[%s11767_s1 + $0x1660] ss:$16 sps:$4 sm:$0xff]   ;;  %v8875_v16 = vld [vmem:[%s11767_s1 + $0x1668] ss:$16 sps:$4 sm:$0xff]  }
 0x294   :  { %5737 = vmatprep.subr.bf16.mxu0 %v8786_v52  ;;  %6296 = vmatprep.subr.bf16.mxu1 %v8789_v35  ;;  %v8880_v52 = vld [vmem:[%s11767_s1 + $0x1684] ss:$16 sps:$4 sm:$0xff]   ;;  %v8883_v35 = vld [vmem:[%s11767_s1 + $0x168c] ss:$16 sps:$4 sm:$0xff]  }
 0x297   :  { %5738 = vmatpush1.bf16.msra.mxu0 %v8784_v36  ;;  %6297 = vmatpush1.bf16.msra.mxu1 %v8787_v53  ;;  %v8878_v36 = vld [vmem:[%s11767_s1 + $0x1680] ss:$16 sps:$4 sm:$0xff]   ;;  %v8881_v53 = vld [vmem:[%s11767_s1 + $0x1688] ss:$16 sps:$4 sm:$0xff]  }
 0x298   :  { %5739 = vmatprep.subr.bf16.mxu0 %v8792_v56  ;;  %6298 = vmatprep.subr.bf16.mxu1 %v8795_v57  ;;  %v8886_v56 = vld [vmem:[%s11767_s1 + $0x16a4] ss:$16 sps:$4 sm:$0xff]   ;;  %v8889_v57 = vld [vmem:[%s11767_s1 + $0x16ac] ss:$16 sps:$4 sm:$0xff]  }
 0x29b   :  { %5740 = vmatpush1.bf16.msra.mxu0 %v8790_v58  ;;  %6299 = vmatpush1.bf16.msra.mxu1 %v8793_v59  ;;  %v8884_v58 = vld [vmem:[%s11767_s1 + $0x16a0] ss:$16 sps:$4 sm:$0xff]   ;;  %v8887_v59 = vld [vmem:[%s11767_s1 + $0x16a8] ss:$16 sps:$4 sm:$0xff]  }
 0x29c   :  { %5741 = vmatprep.subr.bf16.mxu0 %v8798_v17  ;;  %6300 = vmatprep.subr.bf16.mxu1 %v8801_v39  ;;  %v8892_v17 = vld [vmem:[%s11767_s1 + $0x16c4] ss:$16 sps:$4 sm:$0xff]   ;;  %v8895_v39 = vld [vmem:[%s11767_s1 + $0x16cc] ss:$16 sps:$4 sm:$0xff]  }
 0x29f   :  { %5742 = vmatpush1.bf16.msra.mxu0 %v8796_v60  ;;  %6301 = vmatpush1.bf16.msra.mxu1 %v8799_v47  ;;  %v8890_v60 = vld [vmem:[%s11767_s1 + $0x16c0] ss:$16 sps:$4 sm:$0xff]   ;;  %v8893_v47 = vld [vmem:[%s11767_s1 + $0x16c8] ss:$16 sps:$4 sm:$0xff]  }
 0x2a0   :  { %5743 = vmatprep.subr.bf16.mxu0 %v8804_v48  ;;  %6302 = vmatprep.subr.bf16.mxu1 %v8807_v61  ;;  %v8898_v48 = vld [vmem:[%s11767_s1 + $0x16e4] ss:$16 sps:$4 sm:$0xff]   ;;  %v8901_v61 = vld [vmem:[%s11767_s1 + $0x16ec] ss:$16 sps:$4 sm:$0xff]  }
 0x2a3   :  { %5744 = vmatpush1.bf16.msra.mxu0 %v8802_v62  ;;  %6303 = vmatpush1.bf16.msra.mxu1 %v8805_v1  ;;  %v8896_v62 = vld [vmem:[%s11767_s1 + $0x16e0] ss:$16 sps:$4 sm:$0xff]   ;;  %v8899_v1 = vld [vmem:[%s11767_s1 + $0x16e8] ss:$16 sps:$4 sm:$0xff]  }
 0x2a4   :  { %5745 = vmatprep.subr.bf16.mxu0 %v8810_v2  ;;  %6304 = vmatprep.subr.bf16.mxu1 %v8813_v3  ;;  %v8904_v2 = vld [vmem:[%s11767_s1 + $0x1704] ss:$16 sps:$4 sm:$0xff]   ;;  %v8907_v3 = vld [vmem:[%s11767_s1 + $0x170c] ss:$16 sps:$4 sm:$0xff]  }
 0x2a7   :  { %5746 = vmatpush1.bf16.msra.mxu0 %v8808_v4  ;;  %6305 = vmatpush1.bf16.msra.mxu1 %v8811_v6  ;;  %v8902_v4 = vld [vmem:[%s11767_s1 + $0x1700] ss:$16 sps:$4 sm:$0xff]   ;;  %v8905_v6 = vld [vmem:[%s11767_s1 + $0x1708] ss:$16 sps:$4 sm:$0xff]  }
 0x2a8   :  { %5747 = vmatprep.subr.bf16.mxu0 %v8816_v7  ;;  %6306 = vmatprep.subr.bf16.mxu1 %v8819_v8  ;;  %v8910_v7 = vld [vmem:[%s11767_s1 + $0x1724] ss:$16 sps:$4 sm:$0xff]   ;;  %v8913_v8 = vld [vmem:[%s11767_s1 + $0x172c] ss:$16 sps:$4 sm:$0xff]  }
 0x2ab   :  { %5748 = vmatpush1.bf16.msra.mxu0 %v8814_v11  ;;  %6307 = vmatpush1.bf16.msra.mxu1 %v8817_v43  ;;  %v8908_v11 = vld [vmem:[%s11767_s1 + $0x1720] ss:$16 sps:$4 sm:$0xff]   ;;  %v8911_v43 = vld [vmem:[%s11767_s1 + $0x1728] ss:$16 sps:$4 sm:$0xff]  }
 0x2ac   :  { %5749 = vmatprep.subr.bf16.mxu0 %v8822_v12  ;;  %6308 = vmatprep.subr.bf16.mxu1 %v8825_v63  ;;  %v8916_v12 = vld [vmem:[%s11767_s1 + $0x1744] ss:$16 sps:$4 sm:$0xff]   ;;  %v8919_v63 = vld [vmem:[%s11767_s1 + $0x174c] ss:$16 sps:$4 sm:$0xff]  }
 0x2af   :  { %5750 = vmatpush1.bf16.msra.mxu0 %v8820_v0  ;;  %6309 = vmatpush1.bf16.msra.mxu1 %v8823_v14  ;;  %v8914_v0 = vld [vmem:[%s11767_s1 + $0x1740] ss:$16 sps:$4 sm:$0xff]   ;;  %v8917_v14 = vld [vmem:[%s11767_s1 + $0x1748] ss:$16 sps:$4 sm:$0xff]  }
 0x2b0   :  { %5751 = vmatprep.subr.bf16.mxu0 %v8828_v15  ;;  %6310 = vmatprep.subr.bf16.mxu1 %v8831_v18  ;;  %v8922_v15 = vld [vmem:[%s11767_s1 + $0x1764] ss:$16 sps:$4 sm:$0xff]   ;;  %v8925_v18 = vld [vmem:[%s11767_s1 + $0x176c] ss:$16 sps:$4 sm:$0xff]  }
 0x2b3   :  { %5752 = vmatpush1.bf16.msra.mxu0 %v8826_v19  ;;  %6311 = vmatpush1.bf16.msra.mxu1 %v8829_v20  ;;  %v8920_v19 = vld [vmem:[%s11767_s1 + $0x1760] ss:$16 sps:$4 sm:$0xff]   ;;  %v8923_v20 = vld [vmem:[%s11767_s1 + $0x1768] ss:$16 sps:$4 sm:$0xff]  }
 0x2b4   :  { %5753 = vmatprep.subr.bf16.mxu0 %v8834_v21  ;;  %6312 = vmatprep.subr.bf16.mxu1 %v8837_v51  ;;  %v8928_v21 = vld [vmem:[%s11767_s1 + $0x1784] ss:$16 sps:$4 sm:$0xff]   ;;  %v8931_v51 = vld [vmem:[%s11767_s1 + $0x178c] ss:$16 sps:$4 sm:$0xff]  }
 0x2b7   :  { %5754 = vmatpush1.bf16.msra.mxu0 %v8832_v55  ;;  %6313 = vmatpush1.bf16.msra.mxu1 %v8835_v22  ;;  %v8926_v55 = vld [vmem:[%s11767_s1 + $0x1780] ss:$16 sps:$4 sm:$0xff]   ;;  %v8929_v22 = vld [vmem:[%s11767_s1 + $0x1788] ss:$16 sps:$4 sm:$0xff]  }
 0x2b8   :  { %5755 = vmatprep.subr.bf16.mxu0 %v8840_v23  ;;  %6314 = vmatprep.subr.bf16.mxu1 %v8843_v9  ;;  %v8934_v23 = vld [vmem:[%s11767_s1 + $0x17a4] ss:$16 sps:$4 sm:$0xff]   ;;  %v8937_v9 = vld [vmem:[%s11767_s1 + $0x17ac] ss:$16 sps:$4 sm:$0xff]  }
 0x2bb   :  { %5756 = vmatpush1.bf16.msra.mxu0 %v8838_v10  ;;  %6315 = vmatpush1.bf16.msra.mxu1 %v8841_v24  ;;  %v8932_v10 = vld [vmem:[%s11767_s1 + $0x17a0] ss:$16 sps:$4 sm:$0xff]   ;;  %v8935_v24 = vld [vmem:[%s11767_s1 + $0x17a8] ss:$16 sps:$4 sm:$0xff]  }
 0x2bc   :  { %5757 = vmatprep.subr.bf16.mxu0 %v8846_v27  ;;  %6316 = vmatprep.subr.bf16.mxu1 %v8849_v28  ;;  %v8940_v27 = vld [vmem:[%s11767_s1 + $0x17c4] ss:$16 sps:$4 sm:$0xff]   ;;  %v8943_v28 = vld [vmem:[%s11767_s1 + $0x17cc] ss:$16 sps:$4 sm:$0xff]  }
 0x2bf   :  { %5758 = vmatpush1.bf16.msra.mxu0 %v8844_v13  ;;  %6317 = vmatpush1.bf16.msra.mxu1 %v8847_v30  ;;  %v8938_v13 = vld [vmem:[%s11767_s1 + $0x17c0] ss:$16 sps:$4 sm:$0xff]   ;;  %v8941_v30 = vld [vmem:[%s11767_s1 + $0x17c8] ss:$16 sps:$4 sm:$0xff]  }
 0x2c0   :  { %5770 = vmatprep.subr.bf16.mxu0 %v8856_v32  ;;  %6329 = vmatprep.subr.bf16.mxu1 %v8859_v33  ;;  %v8946_v32 = vld [vmem:[%s11767_s1 + $0x17e4] ss:$16 sps:$4 sm:$0xff]   ;;  %v8949_v33 = vld [vmem:[%s11767_s1 + $0x17ec] ss:$16 sps:$4 sm:$0xff]  }
 0x2c2   :  { %5760 = vmatmul.mubr.bf16.vlgmr.msra.gmra.mrb[0].mxu0 %v1294_v34  ;;  %6319 = vmatmul.mubr.bf16.vlgmr.msra.gmra.mrb[0].mxu1 %v1294_v34  ;;  %v8944_v34 = vld [vmem:[%s11767_s1 + $0x17e0] ss:$16 sps:$4 sm:$0xff]  }
 0x2c3   :  { %5771 = vmatpush1.bf16.msra.mxu0 %v8854_v37  ;;  %6330 = vmatpush1.bf16.msra.mxu1 %v8857_v5  ;;  %v8947_v37 = vld [vmem:[%s11767_s1 + $0x17e8] ss:$16 sps:$4 sm:$0xff]   ;;  %v8952_v5 = vld [vmem:[%s11767_s1 + $0x1804] ss:$16 sps:$4 sm:$0xff]  }
 0x2c4   :  { %5772 = vmatprep.subr.bf16.mxu0 %v8862_v38  ;;  %6331 = vmatprep.subr.bf16.mxu1 %v8865_v25  ;;  %v8955_v38 = vld [vmem:[%s11767_s1 + $0x180c] ss:$16 sps:$4 sm:$0xff]   ;;  %v8974_v25 = vld [vmem:[%s11766_s0 + $0x18] ss:$25 sps:$4 sm:$0x11]  }
 0x2c5   :  { %5802 = vmatprep.mubr.bf16.mxu0 %v11199_v29  ;;  %6361 = vmatprep.mubr.bf16.mxu1 %v11199_v29  ;;  %v8877_v29 = vld [vmem:[%s11767_s1 + $0x166c] ss:$16 sps:$4 sm:$0xff]  }
 0x2c7   :  { %5773 = vmatpush1.bf16.msra.mxu0 %v8860_v26  ;;  %6332 = vmatpush1.bf16.msra.mxu1 %v8863_v40  ;;  %v8975_v26 = vld [vmem:[%s11766_s0 + $0x4a] ss:$25 sps:$4 sm:$0x11]   ;;  %v8976_v40 = vld [vmem:[%s11766_s0 + $0x7c] ss:$25 sps:$4 sm:$0x11]  }
 0x2c8   :  { %5774 = vmatprep.subr.bf16.mxu0 %v8868_v41  ;;  %6333 = vmatprep.subr.bf16.mxu1 %v8871_v42  ;;  %v8977_v41 = vld [vmem:[%s11766_s0 + $0xae] ss:$25 sps:$4 sm:$0x11]   ;;  %v8950_v42 = vld [vmem:[%s11767_s1 + $0x1800] ss:$16 sps:$4 sm:$0xff]  }
 0x2cb   :  { %5775 = vmatpush1.bf16.msra.mxu0 %v8866_v44  ;;  %6334 = vmatpush1.bf16.msra.mxu1 %v8869_v45  ;;  %v8953_v44 = vld [vmem:[%s11767_s1 + $0x1808] ss:$16 sps:$4 sm:$0xff]   ;;  %v8958_v45 = vld [vmem:[%s11767_s1 + $0x1824] ss:$16 sps:$4 sm:$0xff]  }
 0x2cc   :  { %5776 = vmatprep.subr.bf16.mxu0 %v8874_v49  ;;  %6335 = vmatprep.subr.bf16.mxu1 %v8877_v29  ;;  %v8961_v49 = vld [vmem:[%s11767_s1 + $0x182c] ss:$16 sps:$4 sm:$0xff]   ;;  %v1310_v29 = vrot.slane %v8974_v25, %v9219_v54  ;;  %v846_v25 = vsub.s32 1, %v9198_v46 }
 0x2cf   :  { %5777 = vmatpush1.bf16.msra.mxu0 %v8872_v50  ;;  %6336 = vmatpush1.bf16.msra.mxu1 %v8875_v16  ;;  %v1317_v50 = vrot.slane %v8975_v26, %v9219_v54  ;;  %v1324_v16 = vrot.slane %v8976_v40, %v9219_v54  ;;  %v854_v26 = vsub.s32 3, %v9198_v46 }
 0x2d0   :  { %5778 = vmatprep.subr.bf16.mxu0 %v8880_v52  ;;  %6337 = vmatprep.subr.bf16.mxu1 %v8883_v35  ;;  %v1331_v52 = vrot.slane %v8977_v41, %v9219_v54  ;;  %v8956_v35 = vld [vmem:[%s11767_s1 + $0x1820] ss:$16 sps:$4 sm:$0xff]  }
 0x2d3   :  { %5779 = vmatpush1.bf16.msra.mxu0 %v8878_v36  ;;  %6338 = vmatpush1.bf16.msra.mxu1 %v8881_v53  ;;  %v8959_v36 = vld [vmem:[%s11767_s1 + $0x1828] ss:$16 sps:$4 sm:$0xff]   ;;  %v8964_v53 = vld [vmem:[%s11767_s1 + $0x1844] ss:$16 sps:$4 sm:$0xff]  }
 0x2d4   :  { %5780 = vmatprep.subr.bf16.mxu0 %v8886_v56  ;;  %6339 = vmatprep.subr.bf16.mxu1 %v8889_v57  ;;  %v8967_v56 = vld [vmem:[%s11767_s1 + $0x184c] ss:$16 sps:$4 sm:$0xff]   ;;  %v1332_v57 = vcombine.low %v1310_v29, %v1317_v50 }
 0x2d7   :  { %5781 = vmatpush1.bf16.msra.mxu0 %v8884_v58  ;;  %6340 = vmatpush1.bf16.msra.mxu1 %v8887_v59  ;;  %v1333_v58 = vcombine.low %v1324_v16, %v1331_v52  ;;  %v8962_v59 = vld [vmem:[%s11767_s1 + $0x1840] ss:$16 sps:$4 sm:$0xff]  }
 0x2d8   :  { %5782 = vmatprep.subr.bf16.mxu0 %v8892_v17  ;;  %6341 = vmatprep.subr.bf16.mxu1 %v8895_v39  ;;  %v8965_v17 = vld [vmem:[%s11767_s1 + $0x1848] ss:$16 sps:$4 sm:$0xff]   ;;  %v8970_v39 = vld [vmem:[%s11767_s1 + $0x1864] ss:$16 sps:$4 sm:$0xff]  }
 0x2db   :  { %5783 = vmatpush1.bf16.msra.mxu0 %v8890_v60  ;;  %6342 = vmatpush1.bf16.msra.mxu1 %v8893_v47  ;;  %v8973_v60 = vld [vmem:[%s11767_s1 + $0x186c] ss:$16 sps:$4 sm:$0xff]   ;;  %v1340_v47 = vrot.slane %v1332_v57, %v9219_v54 }
 0x2dc   :  { %5784 = vmatprep.subr.bf16.mxu0 %v8898_v48  ;;  %6343 = vmatprep.subr.bf16.mxu1 %v8901_v61  ;;  %v1347_v48 = vrot.slane %v1333_v58, %v9219_v54  ;;  %v8968_v61 = vld [vmem:[%s11767_s1 + $0x1860] ss:$16 sps:$4 sm:$0xff]  }
 0x2dd   :  { %v8979_v54 = vld [vmem:[%s11769_s3 + $0xc0] sm:$0xff]  }
 0x2df   :  { %5785 = vmatpush1.bf16.msra.mxu0 %v8896_v62  ;;  %6344 = vmatpush1.bf16.msra.mxu1 %v8899_v1  ;;  %v8971_v62 = vld [vmem:[%s11767_s1 + $0x1868] ss:$16 sps:$4 sm:$0xff]   ;;  %v8978_v1 = vld [vmem:[%s11769_s3 + $0x40] sm:$0xff]  }
 0x2e0   :  { %5786 = vmatprep.subr.bf16.mxu0 %v8904_v2  ;;  %6345 = vmatprep.subr.bf16.mxu1 %v8907_v3  ;;  %v1348_v2 = vcombine.low %v1340_v47, %v1347_v48  ;;  %v8980_v3 = vld [vmem:[%s11769_s3] sm:$0xff]  }
 0x2e3   :  { %5787 = vmatpush1.bf16.msra.mxu0 %v8902_v4  ;;  %6346 = vmatpush1.bf16.msra.mxu1 %v8905_v6  ;;  %v8981_v4 = vld [vmem:[%s11769_s3 + $0x80] sm:$0xff]   ;;  %v8982_v6 = vld [vmem:[%s11769_s3 + $0x48] sm:$0xff]  }
 0x2e4   :  { %5788 = vmatprep.subr.bf16.mxu0 %v8910_v7  ;;  %6347 = vmatprep.subr.bf16.mxu1 %v8913_v8  ;;  %v8983_v7 = vld [vmem:[%s11769_s3 + $0xc8] sm:$0xff]  }
 0x2e5   :  { %v8984_v8 = vld [vmem:[%s11769_s3 + $0x8] sm:$0xff]  }
 0x2e7   :  { %5789 = vmatpush1.bf16.msra.mxu0 %v8908_v11  ;;  %6348 = vmatpush1.bf16.msra.mxu1 %v8911_v43  ;;  %v8985_v11 = vld [vmem:[%s11769_s3 + $0x88] sm:$0xff]   ;;  %v8986_v43 = vld [vmem:[%s11769_s3 + $0x50] sm:$0xff]  }
 0x2e8   :  { %5790 = vmatprep.subr.bf16.mxu0 %v8916_v12  ;;  %6349 = vmatprep.subr.bf16.mxu1 %v8919_v63  ;;  %v8987_v12 = vld [vmem:[%s11769_s3 + $0xd0] sm:$0xff]  }
 0x2e9   :  { %v8988_v63 = vld [vmem:[%s11769_s3 + $0x10] sm:$0xff]  }
 0x2eb   :  { %5791 = vmatpush1.bf16.msra.mxu0 %v8914_v0  ;;  %6350 = vmatpush1.bf16.msra.mxu1 %v8917_v14  ;;  %v8989_v0 = vld [vmem:[%s11769_s3 + $0x90] sm:$0xff]   ;;  %v8990_v14 = vld [vmem:[%s11769_s3 + $0x58] sm:$0xff]  }
 0x2ec   :  { %5792 = vmatprep.subr.bf16.mxu0 %v8922_v15  ;;  %6351 = vmatprep.subr.bf16.mxu1 %v8925_v18  ;;  %v8991_v15 = vld [vmem:[%s11769_s3 + $0xd8] sm:$0xff]  }
 0x2ed   :  { %v8992_v18 = vld [vmem:[%s11769_s3 + $0x18] sm:$0xff]  }
 0x2ef   :  { %5793 = vmatpush1.bf16.msra.mxu0 %v8920_v19  ;;  %6352 = vmatpush1.bf16.msra.mxu1 %v8923_v20  ;;  %v8993_v19 = vld [vmem:[%s11769_s3 + $0x98] sm:$0xff]   ;;  %v8994_v20 = vld [vmem:[%s11769_s3 + $0x60] sm:$0xff]  }
 0x2f0   :  { %5794 = vmatprep.subr.bf16.mxu0 %v8928_v21  ;;  %6353 = vmatprep.subr.bf16.mxu1 %v8931_v51  ;;  %v8995_v21 = vld [vmem:[%s11769_s3 + $0xe0] sm:$0xff]  }
 0x2f1   :  { %v8996_v51 = vld [vmem:[%s11769_s3 + $0x20] sm:$0xff]  }
 0x2f3   :  { %5795 = vmatpush1.bf16.msra.mxu0 %v8926_v55  ;;  %6354 = vmatpush1.bf16.msra.mxu1 %v8929_v22  ;;  %v8997_v55 = vld [vmem:[%s11769_s3 + $0xa0] sm:$0xff]   ;;  %v8998_v22 = vld [vmem:[%s11769_s3 + $0x68] sm:$0xff]  }
 0x2f4   :  { %5796 = vmatprep.subr.bf16.mxu0 %v8934_v23  ;;  %6355 = vmatprep.subr.bf16.mxu1 %v8937_v9  ;;  %v8999_v23 = vld [vmem:[%s11769_s3 + $0xe8] sm:$0xff]  }
 0x2f5   :  { %v9000_v9 = vld [vmem:[%s11769_s3 + $0x28] sm:$0xff]  }
 0x2f7   :  { %5797 = vmatpush1.bf16.msra.mxu0 %v8932_v10  ;;  %6356 = vmatpush1.bf16.msra.mxu1 %v8935_v24  ;;  %v9001_v10 = vld [vmem:[%s11769_s3 + $0xa8] sm:$0xff]   ;;  %v9002_v24 = vld [vmem:[%s11769_s3 + $0x70] sm:$0xff]  }
 0x2f8   :  { %5798 = vmatprep.subr.bf16.mxu0 %v8940_v27  ;;  %6357 = vmatprep.subr.bf16.mxu1 %v8943_v28  ;;  %v9003_v27 = vld [vmem:[%s11769_s3 + $0xf0] sm:$0xff]  }
 0x2f9   :  { %v9004_v28 = vld [vmem:[%s11769_s3 + $0x30] sm:$0xff]  }
 0x2fb   :  { %5799 = vmatpush1.bf16.msra.mxu0 %v8938_v13  ;;  %6358 = vmatpush1.bf16.msra.mxu1 %v8941_v30  ;;  %v9005_v13 = vld [vmem:[%s11769_s3 + $0xb0] sm:$0xff]   ;;  %v9006_v30 = vld [vmem:[%s11769_s3 + $0x78] sm:$0xff]  }
 0x2fc   :  { %5800 = vmatprep.subr.bf16.mxu0 %v8946_v32  ;;  %6359 = vmatprep.subr.bf16.mxu1 %v8949_v33  ;;  %v9007_v32 = vld [vmem:[%s11769_s3 + $0xf8] sm:$0xff]  }
 0x2fd   :  { %v9008_v33 = vld [vmem:[%s11769_s3 + $0x38] sm:$0xff]  }
 0x2ff   :  { %5801 = vmatpush1.bf16.msra.mxu0 %v8944_v34  ;;  %6360 = vmatpush1.bf16.msra.mxu1 %v8947_v37  ;;  %v9009_v34 = vld [vmem:[%s11769_s3 + $0xb8] sm:$0xff]   ;;  %v842_v37 = vsub.s32 0, %v9198_v46 }
 0x300   :  { %5813 = vmatprep.subr.bf16.mxu0 %v8952_v5  ;;  %6372 = vmatprep.subr.bf16.mxu1 %v8955_v38  ;;  %v838_v5 = vld [vmem:[%s11768_s2] sm:$0xf]  ;;  %v850_v38 = vsub.s32 2, %v9198_v46 }
 0x301   :  { %v843_v40 = vrot.slane %v838_v5, %v842_v37 }
 0x302   :  { %5803 = vmatmul.mubr.bf16.vlgmr.msra.gmra.mrb[0].mxu0 %v11206_v31  ;;  %6362 = vmatmul.mubr.bf16.vlgmr.msra.gmra.mrb[0].mxu1 %v11206_v31  ;;  %v9035_v31 = vmov 0   ;;  %v851_v41 = vrot.slane %v838_v5, %v850_v38 }
 0x303   :  { %5814 = vmatpush1.bf16.msra.mxu0 %v8950_v42  ;;  %6373 = vmatpush1.bf16.msra.mxu1 %v8953_v44  ;;  %v847_v42 = vrot.slane %v838_v5, %v846_v25  ;;  %v855_v44 = vrot.slane %v838_v5, %v854_v26 }
 0x304   :  { %5815 = vmatprep.subr.bf16.mxu0 %v8958_v45  ;;  %6374 = vmatprep.subr.bf16.mxu1 %v8961_v49 }
 0x305   :  { %5845 = vmatprep.mubr.bf16.mxu0 %v9035_v31  ;;  %6404 = vmatprep.mubr.bf16.mxu1 %v9035_v31 }
 0x307   :  { %5816 = vmatpush1.bf16.msra.mxu0 %v8956_v35  ;;  %6375 = vmatpush1.bf16.msra.mxu1 %v8959_v36 }
 0x308   :  { %5817 = vmatprep.subr.bf16.mxu0 %v8964_v53  ;;  %6376 = vmatprep.subr.bf16.mxu1 %v8967_v56 }
 0x30b   :  { %5818 = vmatpush1.bf16.msra.mxu0 %v8962_v59  ;;  %6377 = vmatpush1.bf16.msra.mxu1 %v8965_v17 }
 0x30c   :  { %5819 = vmatprep.subr.bf16.mxu0 %v8970_v39  ;;  %6378 = vmatprep.subr.bf16.mxu1 %v8973_v60 }
 0x30f   :  { %5820 = vmatpush1.bf16.msra.mxu0 %v8968_v61  ;;  %6379 = vmatpush1.bf16.msra.mxu1 %v8971_v62 }
 0x310   :  { %7609 = vmatprep.subr.bf16.mxu0 %v8978_v1  ;;  %7631 = vmatprep.subr.bf16.mxu1 %v8979_v54 }
 0x312   :  { %7574 = vmatmul.mubr.msk.bf16.vlgmr.msra.gmra.mrb[0].mxu0 %vm5293_vm0, %v1348_v2  ;;  %7575 = vmatmul.mubr.msk.bf16.vlgmr.msra.gmra.mrb[0].mxu1 %vm5293_vm0, %v1348_v2 }
 0x313   :  { %7610 = vmatpush3.bf16.msra.mxu0 %v8980_v3  ;;  %7632 = vmatpush3.bf16.msra.mxu1 %v8981_v4 }
 0x314   :  { %7611 = vmatprep.subr.bf16.mxu0 %v8982_v6  ;;  %7633 = vmatprep.subr.bf16.mxu1 %v8983_v7 }
 0x317   :  { %7612 = vmatpush3.bf16.msra.mxu0 %v8984_v8  ;;  %7634 = vmatpush3.bf16.msra.mxu1 %v8985_v11  ;;  %v7576_v11 = vld [vmem:[%s11770_s4] ss:$0 sm:$0xff] }
 0x318   :  { %7613 = vmatprep.subr.bf16.mxu0 %v8986_v43  ;;  %7635 = vmatprep.subr.bf16.mxu1 %v8987_v12 }
 0x31b   :  { %7614 = vmatpush3.bf16.msra.mxu0 %v8988_v63  ;;  %7636 = vmatpush3.bf16.msra.mxu1 %v8989_v0 }
 0x31c   :  { %7615 = vmatprep.subr.bf16.mxu0 %v8990_v14  ;;  %7637 = vmatprep.subr.bf16.mxu1 %v8991_v15 }
 0x31f   :  { %7616 = vmatpush3.bf16.msra.mxu0 %v8992_v18  ;;  %7638 = vmatpush3.bf16.msra.mxu1 %v8993_v19 }
 0x320   :  { %7617 = vmatprep.subr.bf16.mxu0 %v8994_v20  ;;  %7639 = vmatprep.subr.bf16.mxu1 %v8995_v21 }
 0x323   :  { %7618 = vmatpush3.bf16.msra.mxu0 %v8996_v51  ;;  %7640 = vmatpush3.bf16.msra.mxu1 %v8997_v55 }
 0x324   :  { %7619 = vmatprep.subr.bf16.mxu0 %v8998_v22  ;;  %7641 = vmatprep.subr.bf16.mxu1 %v8999_v23 }
 0x327   :  { %7620 = vmatpush3.bf16.msra.mxu0 %v9000_v9  ;;  %7642 = vmatpush3.bf16.msra.mxu1 %v9001_v10 }
 0x328   :  { %7621 = vmatprep.subr.bf16.mxu0 %v9002_v24  ;;  %7643 = vmatprep.subr.bf16.mxu1 %v9003_v27 }
 0x32b   :  { %7622 = vmatpush3.bf16.msra.mxu0 %v9004_v28  ;;  %7644 = vmatpush3.bf16.msra.mxu1 %v9005_v13 }
 0x32c   :  { %7623 = vmatprep.subr.bf16.mxu0 %v9006_v30  ;;  %7645 = vmatprep.subr.bf16.mxu1 %v9007_v32 }
 0x32f   :  { %7624 = vmatpush3.bf16.msra.mxu0 %v9008_v33  ;;  %7646 = vmatpush3.bf16.msra.mxu1 %v9009_v34 }
 0x3e5   :  { %v5847_v45 = vpop.f32.mrb[0].mxu0  ;;  %v6406_v29 = vpop.f32.mrb[0].mxu1 }
 0x3e6   :  { %v7653_v49 = vadd.f32 %v5847_v45, %v843_v40  ;;  %v5849_v50 = vpop.f32.mrb[1].mxu0  ;;  %v7657_v16 = vadd.f32 %v6406_v29, %v851_v41  ;;  %v6408_v35 = vpop.f32.mrb[1].mxu1 }
 0x3e7   :  { %v7654_v52 = vadd.f32 %v5849_v50, %v847_v42  ;;  %v5851_v36 = vpop.f32.mrb[2].mxu0  ;;  %v7658_v53 = vadd.f32 %v6408_v35, %v855_v44  ;;  %v6410_v31 = vpop.f32.mrb[2].mxu1 }
 0x3e8   :  { %v7655_v56 = vadd.f32 %v5851_v36, %v843_v40  ;;  %v5853_v57 = vpop.f32.mrb[3].mxu0  ;;  %v7659_v58 = vadd.f32 %v6410_v31, %v851_v41  ;;  %v6412_v17 = vpop.f32.mrb[3].mxu1  ;;  %v6415_v46 = vmax.f32 %v7653_v49, 0.0  ;;  %v6417_v47 = vmax.f32 %v7657_v16, 0.0 }
 0x3e9   :  { %v7656_v59 = vadd.f32 %v5853_v57, %v847_v42  ;;  %v7660_v60 = vadd.f32 %v6412_v17, %v855_v44  ;;  %v6416_v48 = vmax.f32 %v7654_v52, 0.0  ;;  %v6418_v1 = vmax.f32 %v7658_v53, 0.0 }
 0x3ea   :  { %v6419_v39 = vmax.f32 %v7655_v56, 0.0  ;;  %v6421_v61 = vmax.f32 %v7659_v58, 0.0 }
 0x3eb   :  { %v6420_v62 = vmax.f32 %v7656_v59, 0.0  ;;  %v6422_v2 = vmax.f32 %v7660_v60, 0.0 }
 0x3ec   :  { %v6423_v54 = vpack.c.bf16 %v6419_v39, %v6415_v46  ;;  %v6425_v3 = vpack.c.bf16 %v6421_v61, %v6417_v47 }
 0x3ed   :  { %v6424_v4 = vpack.c.bf16 %v6420_v62, %v6416_v48  ;;  %v6426_v6 = vpack.c.bf16 %v6422_v2, %v6418_v1 }
 0x3ef   :  { %6722 = vmatprep.mubr.bf16.mxu0 %v6424_v4  ;;  %6763 = vmatprep.mubr.bf16.mxu1 %v6426_v6 }
 0x3f0   :  { %6723 = vmatmul.mubr.bf16.vlgmr.msra.gmra.mrb[4].mxu0 %v6423_v54  ;;  %6764 = vmatmul.mubr.bf16.vlgmr.msra.gmra.mrb[4].mxu1 %v6425_v3 }
 0x4c3   :  { %v7625_v7 = vpop.f32.mrb[4].mxu0  ;;  %v7647_v8 = vpop.f32.mrb[4].mxu1 }
 0x4c4   :  { %v7626_v43 = vpop.f32.mrb[5].mxu0  ;;  %v7648_v63 = vpop.f32.mrb[5].mxu1 }
 0x4c5   :  { %v7627_v12 = vadd.f32 %v7626_v43, %v7625_v7  ;;  %v7628_v0 = vpop.f32.mrb[6].mxu0  ;;  %v7649_v14 = vadd.f32 %v7648_v63, %v7647_v8  ;;  %v7650_v15 = vpop.f32.mrb[6].mxu1 }
 0x4c6   :  { %v7629_v18 = vpop.f32.mrb[7].mxu0  ;;  %v7651_v21 = vpop.f32.mrb[7].mxu1 }
 0x4c7   :  { %v6725_v19 = vadd.f32 %v7627_v12, %v7576_v11  ;;  %v7630_v20 = vadd.f32 %v7629_v18, %v7628_v0  ;;  %v7652_v51 = vadd.f32 %v7651_v21, %v7650_v15 }
 0x4c9   :  { %v6766_v55 = vadd.f32 %v7649_v14, %v6725_v19  ;;  %v6728_v22 = vadd.f32 %v7630_v20, %v7576_v11 }
 0x4cb   :  { %6772 = vst [vmem:[#allocation2] sm:$0xff] %v6766_v55  ;;  %v6769_v23 = vadd.f32 %v7652_v51, %v6728_v22 }
 0x4cd   :  { %6773 = vst [vmem:[#allocation2 + $0x8] sm:$0xff] %v6769_v23 }
 0x4ce   :  { %6778 = vsyncadd [#allocation3], 224  ;;  %s9036_s26 = smov [#allocation2]  }
 0x4cf   :  { %s6779_s27 = sshll.u32 %s9036_s26, 4  ;;  %s6780_s27 = int_to_ptr.vmem [resolvable:$true] %s6779_s27 }
 0x4d0   :  { %s9010_s4 = scalar_lea.vmem %s6780_s27, 32  ;;  %s9014_s28 = scalar_lea.vmem %s6780_s27, 256 }
 0x4d1   :  { %p9011_p0 = scmp.ne.s32.totalorder %s6780_s27, %s9010_s4  ;;  %p9015_p1 = scmp.lt.s32.totalorder %s6780_s27, %s6780_s27 }
 0x4d2   :  { %p9016_p2 = scmp.lt.s32.totalorder %s9014_s28, %s9010_s4 }
 0x4d4   :  { %p9017_p3 = por %p9016_p2, %p9015_p1 }
 0x4d6   :  { %p9018_p4 = pnand %p9017_p3, %p9011_p0 }
 0x4d8   :  { %9021 = shalt.err (!%p9018_p4)
}
 0x4d9   :  { %s9022_s6 = scalar_lea.hbm %s11771_s5, 32 }
 0x4da   :  { %p9023_p5 = scmp.ne.s32.totalorder %s11771_s5, %s9022_s6  ;;  %p9026_p6 = scmp.lt.u32.totalorder %s9022_s6, %s11771_s5 }
 0x4dc   :  { %p9028_p7 = pnand %p9026_p6, %p9023_p5 }
 0x4de   :  { %9031 = shalt.err (!%p9028_p7)
}
 0x4df   :  { %s9037_s11 = smov 32   ;;  %s9038_s12 = smov 2  }
 0x4e0   :  { %6785 = dma.vmem_to_hbm [thread:$0]  %s6780_s27, 32, %s11771_s5, [#allocation3], %s9037_s11, %s9037_s11, %s9038_s12  }
 0x4e1   :  { %9032 = dma.done.wait [#allocation3], 256  }
 0x4e2   :  { %9033 = vsyncadd [#allocation3], 4294967040 }
 0x4e3   :  { %6789 = vsyncpa [#allocation3], 1 }

</bundles_post_ra>
